<compile_context>
chip_gen: v7x
topology: tpu7x:2x2x1
jax: 0.10.0
libtpu: 0.0.40
codegen_flags: <defaults>
</compile_context>

<pallas_src>
import functools
import numpy as np
import jax
import jax.numpy as jnp
from jax import lax
from jax.experimental import pallas as pl
from jax.experimental.pallas import tpu as pltpu


# ----------------------------- small config consistent with the module -------
IMG_SIZE = 16
PATCH_SIZE = 4
IN_CHANS = 4
EMBED_DIM = 64
DEPTH = 2
NUM_HEADS = 4
HEAD_DIM = EMBED_DIM // NUM_HEADS
MLP_RATIO = 4.0
MLP_DIM = int(EMBED_DIM * MLP_RATIO)
Z_DIM = 8
HIDDEN_DIM = 16
DIM_OUT = EMBED_DIM // 8                     # hypernet-generated conv out-channels
P2 = PATCH_SIZE * PATCH_SIZE
NUM_PATCHES = (IMG_SIZE // PATCH_SIZE) ** 2
SEQ_LEN = NUM_PATCHES + 1                    # + cls token
NUM_CLASSES = 8                              # HyperViTAdapt classifier head
LN_EPS = 1e-6

# ----- static row layout of the packed (NUM_VEC_ROWS, 64) vector slab --------
#   rows [0, S)               : cls/pos/conv1x1-bias token slab
#   rows [S + 7*l, S + 7*l+7) : ln1_w, ln1_b, q_b, proj_b(+v_b fold), ln2_w,
#                               ln2_b, fc2_b                       (layer l)
#   last 3 rows               : norm_w, norm_b, head_b (zero-padded to 64)
_BIAS_OFF = 0
_LAYER_OFF = SEQ_LEN
_RPL = 7
_NORM_W_ROW = _LAYER_OFF + DEPTH * _RPL
_NORM_B_ROW = _NORM_W_ROW + 1
_HEAD_B_ROW = _NORM_B_ROW + 1
_NUM_VEC_ROWS = _HEAD_B_ROW + 1


# ------------------------------------ shared math ----------------------------
def _layer_norm(x, w, b):
    mu = jnp.mean(x, axis=-1, keepdims=True)
    var = jnp.mean((x - mu) ** 2, axis=-1, keepdims=True)
    return (x - mu) * lax.rsqrt(var + LN_EPS) * w + b


def _gelu_tanh(x):
    # tanh-approx GELU (EUP path); |err| vs exact erf-GELU is tiny at these scales.
    c = float(np.sqrt(2.0 / np.pi))
    return 0.5 * x * (1.0 + jnp.tanh(c * (x + 0.044715 * x * x * x)))


# ------------------------------------ fused Pallas kernel --------------------
def fused_forward_kernel(patches_ref, wcomb_ref, vec_ref, qkvw_ref, projw_ref,
                         fc1w_ref, fc1b_ref, fc2w_ref, headw_ref, out_ref,
                         *, depth, num_heads, head_dim):
    f32 = jnp.float32
    bf16 = jnp.bfloat16
    D = wcomb_ref.shape[-1]

    def vrow(r):                               # static (1, D) row of the packed slab
        return vec_ref[r:r + 1, :]

    # 1) patch embed (hypernet + 1x1 conv pre-folded into wcomb on the host)
    #    plus the cls/pos/conv-bias slab.  patches has a zero row at the cls
    #    position, so one matmul builds the whole (S, D) token slab.
    bias_seq = vec_ref[_BIAS_OFF:_BIAS_OFF + SEQ_LEN, :]
    x = jnp.dot(patches_ref[...].astype(bf16), wcomb_ref[...],
                preferred_element_type=f32) + bias_seq           # (S, D) f32

    scale = float(head_dim) ** -0.5

    # 2) transformer blocks (statically unrolled)
    for l in range(depth):
        base = _LAYER_OFF + l * _RPL

        # --- attention: fused QKV matmul, per-head softmax, one fused proj ---
        hln = _layer_norm(x, vrow(base + 0), vrow(base + 1)).astype(bf16)
        qkv = jnp.dot(hln, qkvw_ref[l], preferred_element_type=f32)     # (S, 3D)
        # K bias dropped (cancels in softmax); V bias folded into proj_b (host).
        q = (qkv[:, :D] + vrow(base + 2)).astype(bf16)
        k = qkv[:, D:2 * D].astype(bf16)
        v = qkv[:, 2 * D:].astype(bf16)

        heads = []
        for h in range(num_heads):
            sl = slice(h * head_dim, (h + 1) * head_dim)
            s = lax.dot_general(q[:, sl], k[:, sl], (((1,), (1,)), ((), ())),
                                preferred_element_type=f32) * scale     # (S, S)
            s = s - jnp.max(s, axis=-1, keepdims=True)
            e = jnp.exp(s)
            p = e * pl.reciprocal(jnp.sum(e, axis=-1, keepdims=True), approx=True)
            heads.append(jnp.dot(p.astype(bf16), v[:, sl],
                                 preferred_element_type=f32))           # (S, hd)
        attn = jnp.concatenate(heads, axis=-1).astype(bf16)             # (S, D)
        x = x + jnp.dot(attn, projw_ref[l],
                        preferred_element_type=f32) + vrow(base + 3)

        # --- MLP ---
        h2 = _layer_norm(x, vrow(base + 4), vrow(base + 5)).astype(bf16)
        h2 = jnp.dot(h2, fc1w_ref[l], preferred_element_type=f32) + fc1b_ref[l]
        h2 = _gelu_tanh(h2).astype(bf16)
        x = x + jnp.dot(h2, fc2w_ref[l],
                        preferred_element_type=f32) + vrow(base + 6)

    # 3) cls row (static row slice), final LN, classifier head.
    cls = _layer_norm(x[0:1, :], vrow(_NORM_W_ROW), vrow(_NORM_B_ROW))
    logits = (jnp.dot(cls.astype(bf16), headw_ref[...], preferred_element_type=f32)
              + vec_ref[_HEAD_B_ROW:_HEAD_B_ROW + 1, :NUM_CLASSES])
    out_ref[...] = logits


# ------------------------------------ parameters -----------------------------
def init_params(key):
    ks = iter(jax.random.split(key, 64))

    def nrm(shape, std):
        return (std * jax.random.normal(next(ks), shape)).astype(jnp.float32)

    p = {
        'conv1_emb': nrm((IN_CHANS, Z_DIM), 1.0),            # nn.Embedding ~ N(0,1)
        'hyper': {
            'w1': nrm((Z_DIM, HIDDEN_DIM), 0.2),
            'b1': nrm((1, HIDDEN_DIM), 0.05),
            'w2': nrm((HIDDEN_DIM, DIM_OUT * P2), 0.2),
            'b2': nrm((1, DIM_OUT * P2), 0.05),
        },
        # Conv2d(dim_out, embed, k=1) stored transposed for x @ W
        'conv1x1_w_t': nrm((DIM_OUT, EMBED_DIM), 0.1),
        'conv1x1_b': nrm((1, EMBED_DIM), 0.05),
        'cls_token': nrm((1, 1, EMBED_DIM), 0.02),
        'pos_embed': nrm((1, SEQ_LEN, EMBED_DIM), 0.02),
        'norm_w': jnp.ones((1, EMBED_DIM), jnp.float32),
        'norm_b': jnp.zeros((1, EMBED_DIM), jnp.float32),
        'head_w': nrm((EMBED_DIM, NUM_CLASSES), 0.02),
        'head_b': nrm((1, NUM_CLASSES), 0.02),
        'blocks': [],
    }
    for _ in range(DEPTH):
        p['blocks'].append({
            'ln1_w': jnp.ones((1, EMBED_DIM), jnp.float32),
            'ln1_b': jnp.zeros((1, EMBED_DIM), jnp.float32),
            'qkv_w': nrm((EMBED_DIM, 3 * EMBED_DIM), 0.02),  # qkv_bias=True
            'qkv_b': nrm((1, 3 * EMBED_DIM), 0.02),
            'proj_w': nrm((EMBED_DIM, EMBED_DIM), 0.02),
            'proj_b': nrm((1, EMBED_DIM), 0.02),
            'ln2_w': jnp.ones((1, EMBED_DIM), jnp.float32),
            'ln2_b': jnp.zeros((1, EMBED_DIM), jnp.float32),
            'fc1_w': nrm((EMBED_DIM, MLP_DIM), 0.02),
            'fc1_b': nrm((1, MLP_DIM), 0.02),
            'fc2_w': nrm((MLP_DIM, EMBED_DIM), 0.02),
            'fc2_b': nrm((1, EMBED_DIM), 0.02),
        })
    return p


def prepare_kernel_params(params):
    """One-time host-side weight folding / packing (no activations touched)."""
    f32, bf16 = jnp.float32, jnp.bfloat16
    D = EMBED_DIM

    # cls/pos/conv1x1-bias folded into one additive (S, D) slab
    bias_seq = jnp.concatenate(
        [params['cls_token'][0] + params['pos_embed'][0, :1],
         params['pos_embed'][0, 1:] + params['conv1x1_b']], axis=0)        # (S, D)

    rows = [bias_seq]
    qkv_w, proj_w, fc1_w, fc1_b, fc2_w = [], [], [], [], []
    for blk in params['blocks']:
        q_b = blk['qkv_b'][:, :D]
        v_b = blk['qkv_b'][:, 2 * D:]
        proj_b_folded = blk['proj_b'] + v_b @ blk['proj_w']   # exact v-bias fold
        rows.extend([blk['ln1_w'], blk['ln1_b'], q_b, proj_b_folded,
                     blk['ln2_w'], blk['ln2_b'], blk['fc2_b']])
        qkv_w.append(blk['qkv_w'])
        proj_w.append(blk['proj_w'])
        fc1_w.append(blk['fc1_w'])
        fc1_b.append(blk['fc1_b'])
        fc2_w.append(blk['fc2_w'])
    head_b_pad = jnp.pad(params['head_b'], ((0, 0), (0, D - NUM_CLASSES)))
    rows.extend([params['norm_w'], params['norm_b'], head_b_pad])
    vec64 = jnp.concatenate(rows, axis=0).astype(f32)
    assert vec64.shape == (_NUM_VEC_ROWS, D)

    return {
        # kept f32 for the (hoisted) hypernet in the wrapper
        'conv1_emb': params['conv1_emb'],
        'hyper_w1': params['hyper']['w1'], 'hyper_b1': params['hyper']['b1'],
        'hyper_w2': params['hyper']['w2'], 'hyper_b2': params['hyper']['b2'],
        'conv1x1_w_t': params['conv1x1_w_t'],
        # packed kernel operands
        'vec64': vec64,                                      # (34, 64) f32
        'qkv_w': jnp.stack(qkv_w).astype(bf16),              # (L, D, 3D)
        'proj_w': jnp.stack(proj_w).astype(bf16),            # (L, D, D)
        'fc1_w': jnp.stack(fc1_w).astype(bf16),              # (L, D, MLP)
        'fc1_b': jnp.stack(fc1_b).astype(f32),               # (L, 1, MLP)
        'fc2_w': jnp.stack(fc2_w).astype(bf16),              # (L, MLP, D)
        'head_w': params['head_w'].astype(bf16),             # (D, NC)
    }


# ------------------------------------ model forward --------------------------
def hyper_vit_adapt_forward(x, chunk_name, mapper, kp):
    """Eval-mode HyperViTAdapt forward (training_chunks=None). Returns (B, NC)."""
    cur_channels = mapper[chunk_name]
    B, nc, H, W = x.shape
    p = PATCH_SIZE
    Hp, Wp = H // p, W // p
    P = Hp * Wp
    S = P + 1
    CK = nc * P2
    D, L, MLP, NC = EMBED_DIM, DEPTH, MLP_DIM, NUM_CLASSES
    assert nc == len(cur_channels) and S == SEQ_LEN

    # ---- hypernet hoisted out of the kernel (weights + static chunk only) ----
    z_emb = kp['conv1_emb'][jnp.asarray(cur_channels)]                    # (nc, Z)
    kern_flat = (z_emb @ kp['hyper_w1'] + kp['hyper_b1']) @ kp['hyper_w2'] + kp['hyper_b2']
    w_patch = (kern_flat.reshape(nc, DIM_OUT, p, p)
               .transpose(0, 2, 3, 1).reshape(nc * P2, DIM_OUT))
    w_comb = (w_patch @ kp['conv1x1_w_t']).astype(jnp.bfloat16)           # (CK, D)

    # ---- patch extraction (glue); zero cls row so one matmul builds the slab
    patches = (x.reshape(B, nc, Hp, p, Wp, p)
               .transpose(0, 2, 4, 1, 3, 5).reshape(B, P, CK))
    patches_pad = jnp.concatenate(
        [jnp.zeros((B, 1, CK), x.dtype), patches], axis=1)                # (B, S, CK)

    args = (patches_pad, w_comb, kp['vec64'], kp['qkv_w'], kp['proj_w'],
            kp['fc1_w'], kp['fc1_b'], kp['fc2_w'], kp['head_w'])

    mm = lambda m, k, n: 2 * m * k * n
    flops_layer = (mm(S, D, 3 * D)
                   + NUM_HEADS * (mm(S, HEAD_DIM, S) + mm(S, S, HEAD_DIM))
                   + mm(S, D, D) + mm(S, D, MLP) + mm(S, MLP, D))
    flops = B * (mm(S, CK, D) + L * flops_layer + mm(1, D, NC))
    transcendentals = B * L * (NUM_HEADS * S * S + S * MLP)
    bytes_accessed = int(sum(a.size * a.dtype.itemsize for a in args) + B * NC * 4)

    kern = functools.partial(fused_forward_kernel, depth=L,
                             num_heads=NUM_HEADS, head_dim=HEAD_DIM)

    out = pl.pallas_call(
        kern,
        out_shape=jax.ShapeDtypeStruct((B, 1, NC), jnp.float32),
        grid=(B,),
        in_specs=[
            pl.BlockSpec((None, S, CK), lambda b: (b, 0, 0)),      # per-batch patches
            pl.BlockSpec((CK, D), lambda b: (0, 0)),               # folded patch weight
            pl.BlockSpec((_NUM_VEC_ROWS, D), lambda b: (0, 0)),    # packed vector slab
            pl.BlockSpec((L, D, 3 * D), lambda b: (0, 0, 0)),      # qkv_w
            pl.BlockSpec((L, D, D), lambda b: (0, 0, 0)),          # proj_w
            pl.BlockSpec((L, D, MLP), lambda b: (0, 0, 0)),        # fc1_w
            pl.BlockSpec((L, 1, MLP), lambda b: (0, 0, 0)),        # fc1_b
            pl.BlockSpec((L, MLP, D), lambda b: (0, 0, 0)),        # fc2_w
            pl.BlockSpec((D, NC), lambda b: (0, 0)),               # head_w
        ],
        out_specs=pl.BlockSpec((None, 1, NC), lambda b: (b, 0, 0)),
        compiler_params=pltpu.CompilerParams(dimension_semantics=("parallel",)),
        cost_estimate=pl.CostEstimate(flops=flops, transcendentals=transcendentals,
                                      bytes_accessed=bytes_accessed),
    )(*args)
    return out[:, 0, :]


# ------------------------------------ pure-JAX reference ---------------------
def reference_forward(x, chunk_name, mapper, params):
    cur_channels = mapper[chunk_name]
    B, nc, H, W = x.shape
    p = PATCH_SIZE
    z_emb = params['conv1_emb'][jnp.asarray(cur_channels)]
    hp = params['hyper']
    kern_flat = (z_emb @ hp['w1'] + hp['b1']) @ hp['w2'] + hp['b2']
    w_patch = kern_flat.reshape(nc, DIM_OUT, p, p).transpose(0, 2, 3, 1)
    w_patch = w_patch.reshape(nc * p * p, DIM_OUT)
    Hp, Wp = H // p, W // p
    patches = x.reshape(B, nc, Hp, p, Wp, p).transpose(0, 2, 4, 1, 3, 5)
    patches = patches.reshape(B * Hp * Wp, nc * p * p)
    tok = (patches @ w_patch) @ params['conv1x1_w_t'] + params['conv1x1_b']
    tok = tok.reshape(B, Hp * Wp, EMBED_DIM)
    cls = jnp.broadcast_to(params['cls_token'], (B, 1, EMBED_DIM))
    seq = jnp.concatenate([cls, tok], axis=1) + params['pos_embed']
    hd = HEAD_DIM
    scale = hd ** -0.5
    for blk in params['blocks']:
        h = _layer_norm(seq, blk['ln1_w'], blk['ln1_b'])
        qkv = h @ blk['qkv_w'] + blk['qkv_b']
        q = qkv[..., :EMBED_DIM]
        k = qkv[..., EMBED_DIM:2 * EMBED_DIM]
        v = qkv[..., 2 * EMBED_DIM:]
        qh = q.reshape(B, -1, NUM_HEADS, hd).transpose(0, 2, 1, 3)
        kh = k.reshape(B, -1, NUM_HEADS, hd).transpose(0, 2, 1, 3)
        vh = v.reshape(B, -1, NUM_HEADS, hd).transpose(0, 2, 1, 3)
        s = jnp.einsum('bhqd,bhkd->bhqk', qh, kh) * scale
        a = jax.nn.softmax(s, axis=-1)
        o = jnp.einsum('bhqk,bhkd->bhqd', a, vh).transpose(0, 2, 1, 3)
        o = o.reshape(B, -1, EMBED_DIM)
        seq = seq + (o @ blk['proj_w'] + blk['proj_b'])
        h2 = _layer_norm(seq, blk['ln2_w'], blk['ln2_b'])
        h2 = jax.nn.gelu(h2 @ blk['fc1_w'] + blk['fc1_b'], approximate=False)
        seq = seq + (h2 @ blk['fc2_w'] + blk['fc2_b'])
    cls_out = _layer_norm(seq[:, 0, :], params['norm_w'], params['norm_b'])
    return cls_out @ params['head_w'] + params['head_b']


# ----------------------------------------- main ------------------------------
if __name__ == "__main__":
    key = jax.random.PRNGKey(0)
    kp_key, kx = jax.random.split(key)
    params = init_params(kp_key)
    kparams = prepare_kernel_params(params)          # one-time weight folding/packing
    mapper = {"chunk_a": [0, 1, 2, 3]}               # chunk -> channel indices
    x = jax.random.normal(kx, (2, IN_CHANS, IMG_SIZE, IMG_SIZE), jnp.float32)

    fwd = jax.jit(lambda xx, kpp: hyper_vit_adapt_forward(xx, "chunk_a", mapper, kpp))
    out = jax.block_until_ready(fwd(x, kparams))
    assert out.shape == (2, NUM_CLASSES)

    ref = reference_forward(x, "chunk_a", mapper, params)
    # Tolerance reflects bf16 MXU matmul inputs + tanh-GELU + approx reciprocal
    # (elementwise math stays f32); the f32 reference uses exact erf-GELU.
    np.testing.assert_allclose(np.asarray(out), np.asarray(ref),
                               rtol=2e-2, atol=1e-2)
    print("KERNEL_OK")
</pallas_src>

<mosaic_0001>
module attributes {stable_mosaic.version = 11 : i64} {
  func.func @fused_forward_kernel(%arg0: i32, %arg1: memref<1x17x64xf32, #tpu.memory_space<vmem>>, %arg2: memref<64x64xbf16, #tpu.memory_space<vmem>>, %arg3: memref<34x64xf32, #tpu.memory_space<vmem>>, %arg4: memref<2x64x192xbf16, #tpu.memory_space<vmem>>, %arg5: memref<2x64x64xbf16, #tpu.memory_space<vmem>>, %arg6: memref<2x64x256xbf16, #tpu.memory_space<vmem>>, %arg7: memref<2x1x256xf32, #tpu.memory_space<vmem>>, %arg8: memref<2x256x64xbf16, #tpu.memory_space<vmem>>, %arg9: memref<64x8xbf16, #tpu.memory_space<vmem>>, %arg10: memref<1x1x8xf32, #tpu.memory_space<vmem>>) attributes {dimension_semantics = [#tpu.dimension_semantics<parallel>], iteration_bounds = array<i64: 2>, scalar_prefetch = 0 : i64, scratch_operands = 0 : i64, tpu.core_type = #tpu.core_type<tc>, window_params = [{transform_indices = @transform_0, window_bounds = array<i64: 1, 17, 64>}, {pipeline_mode = #tpu.pipeline_mode<synchronous>, transform_indices = @transform_1, window_bounds = array<i64: 64, 64>}, {pipeline_mode = #tpu.pipeline_mode<synchronous>, transform_indices = @transform_2, window_bounds = array<i64: 34, 64>}, {pipeline_mode = #tpu.pipeline_mode<synchronous>, transform_indices = @transform_3, window_bounds = array<i64: 2, 64, 192>}, {pipeline_mode = #tpu.pipeline_mode<synchronous>, transform_indices = @transform_4, window_bounds = array<i64: 2, 64, 64>}, {pipeline_mode = #tpu.pipeline_mode<synchronous>, transform_indices = @transform_5, window_bounds = array<i64: 2, 64, 256>}, {pipeline_mode = #tpu.pipeline_mode<synchronous>, transform_indices = @transform_6, window_bounds = array<i64: 2, 1, 256>}, {pipeline_mode = #tpu.pipeline_mode<synchronous>, transform_indices = @transform_7, window_bounds = array<i64: 2, 256, 64>}, {pipeline_mode = #tpu.pipeline_mode<synchronous>, transform_indices = @transform_8, window_bounds = array<i64: 64, 8>}, {transform_indices = @transform_9, window_bounds = array<i64: 1, 1, 8>}]} {
    %c0 = arith.constant 0 : index
    %c0_0 = arith.constant 0 : index
    %0 = vector.load %arg3[%c0, %c0_0] : memref<34x64xf32, #tpu.memory_space<vmem>>, vector<17x64xf32>
    %c0_1 = arith.constant 0 : index
    %c0_2 = arith.constant 0 : index
    %c0_3 = arith.constant 0 : index
    %1 = vector.load %arg1[%c0_1, %c0_2, %c0_3] : memref<1x17x64xf32, #tpu.memory_space<vmem>>, vector<1x17x64xf32>
    %2 = vector.shape_cast %1 : vector<1x17x64xf32> to vector<17x64xf32>
    %3 = arith.truncf %2 : vector<17x64xf32> to vector<17x64xbf16>
    %c0_4 = arith.constant 0 : index
    %c0_5 = arith.constant 0 : index
    %4 = vector.load %arg2[%c0_4, %c0_5] : memref<64x64xbf16, #tpu.memory_space<vmem>>, vector<64x64xbf16>
    %cst = arith.constant dense<0.000000e+00> : vector<17x64xf32>
    %5 = tpu.matmul %3, %4, %cst {dimension_numbers = #tpu.dot_dimension_numbers<[1], [0], [0], [1], [0, 0, 1, 1], [], []>} : vector<17x64xbf16>, vector<64x64xbf16>, vector<17x64xf32> -> vector<17x64xf32>
    %6 = arith.addf %5, %0 : vector<17x64xf32>
    %c17 = arith.constant 17 : index
    %c0_6 = arith.constant 0 : index
    %7 = vector.load %arg3[%c17, %c0_6] : memref<34x64xf32, #tpu.memory_space<vmem>>, vector<1x64xf32>
    %c18 = arith.constant 18 : index
    %c0_7 = arith.constant 0 : index
    %8 = vector.load %arg3[%c18, %c0_7] : memref<34x64xf32, #tpu.memory_space<vmem>>, vector<1x64xf32>
    %cst_8 = arith.constant dense<0.000000e+00> : vector<17xf32>
    %9 = vector.multi_reduction <add>, %6, %cst_8 [1] : vector<17x64xf32> to vector<17xf32>
    %10 = vector.shape_cast %9 : vector<17xf32> to vector<17x1xf32>
    %cst_9 = arith.constant 6.400000e+01 : f32
    %11 = vector.broadcast %cst_9 : f32 to vector<17x1xf32>
    %12 = arith.divf %10, %11 : vector<17x1xf32>
    %13 = vector.broadcast %12 : vector<17x1xf32> to vector<17x64xf32>
    %14 = arith.subf %6, %13 : vector<17x64xf32>
    %15 = arith.mulf %14, %14 : vector<17x64xf32>
    %cst_10 = arith.constant dense<0.000000e+00> : vector<17xf32>
    %16 = vector.multi_reduction <add>, %15, %cst_10 [1] : vector<17x64xf32> to vector<17xf32>
    %17 = vector.shape_cast %16 : vector<17xf32> to vector<17x1xf32>
    %cst_11 = arith.constant 6.400000e+01 : f32
    %18 = vector.broadcast %cst_11 : f32 to vector<17x1xf32>
    %19 = arith.divf %17, %18 : vector<17x1xf32>
    %20 = vector.broadcast %12 : vector<17x1xf32> to vector<17x64xf32>
    %21 = arith.subf %6, %20 : vector<17x64xf32>
    %cst_12 = arith.constant 9.99999997E-7 : f32
    %22 = vector.broadcast %cst_12 : f32 to vector<17x1xf32>
    %23 = arith.addf %19, %22 : vector<17x1xf32>
    %24 = math.rsqrt %23 : vector<17x1xf32>
    %25 = vector.broadcast %24 : vector<17x1xf32> to vector<17x64xf32>
    %26 = arith.mulf %21, %25 : vector<17x64xf32>
    %27 = vector.broadcast %7 : vector<1x64xf32> to vector<17x64xf32>
    %28 = arith.mulf %26, %27 : vector<17x64xf32>
    %29 = vector.broadcast %8 : vector<1x64xf32> to vector<17x64xf32>
    %30 = arith.addf %28, %29 : vector<17x64xf32>
    %31 = arith.truncf %30 : vector<17x64xf32> to vector<17x64xbf16>
    %c0_13 = arith.constant 0 : index
    %c0_14 = arith.constant 0 : index
    %c0_15 = arith.constant 0 : index
    %32 = vector.load %arg4[%c0_13, %c0_14, %c0_15] : memref<2x64x192xbf16, #tpu.memory_space<vmem>>, vector<1x64x192xbf16>
    %33 = vector.shape_cast %32 : vector<1x64x192xbf16> to vector<64x192xbf16>
    %cst_16 = arith.constant dense<0.000000e+00> : vector<17x192xf32>
    %34 = tpu.matmul %31, %33, %cst_16 {dimension_numbers = #tpu.dot_dimension_numbers<[1], [0], [0], [1], [0, 0, 1, 1], [], []>} : vector<17x64xbf16>, vector<64x192xbf16>, vector<17x192xf32> -> vector<17x192xf32>
    %35 = vector.extract_strided_slice %34 {offsets = [0, 0], sizes = [17, 64], strides = [1, 1]} : vector<17x192xf32> to vector<17x64xf32>
    %c19 = arith.constant 19 : index
    %c0_17 = arith.constant 0 : index
    %36 = vector.load %arg3[%c19, %c0_17] : memref<34x64xf32, #tpu.memory_space<vmem>>, vector<1x64xf32>
    %37 = vector.broadcast %36 : vector<1x64xf32> to vector<17x64xf32>
    %38 = arith.addf %35, %37 : vector<17x64xf32>
    %39 = arith.truncf %38 : vector<17x64xf32> to vector<17x64xbf16>
    %40 = vector.extract_strided_slice %34 {offsets = [0, 64], sizes = [17, 64], strides = [1, 1]} : vector<17x192xf32> to vector<17x64xf32>
    %41 = arith.truncf %40 : vector<17x64xf32> to vector<17x64xbf16>
    %42 = vector.extract_strided_slice %34 {offsets = [0, 128], sizes = [17, 64], strides = [1, 1]} : vector<17x192xf32> to vector<17x64xf32>
    %43 = arith.truncf %42 : vector<17x64xf32> to vector<17x64xbf16>
    %44 = vector.extract_strided_slice %39 {offsets = [0, 0], sizes = [17, 16], strides = [1, 1]} : vector<17x64xbf16> to vector<17x16xbf16>
    %45 = vector.extract_strided_slice %41 {offsets = [0, 0], sizes = [17, 16], strides = [1, 1]} : vector<17x64xbf16> to vector<17x16xbf16>
    %cst_18 = arith.constant dense<0.000000e+00> : vector<17x17xf32>
    %46 = tpu.matmul %44, %45, %cst_18 {dimension_numbers = #tpu.dot_dimension_numbers<[1], [1], [0], [0], [0, 0, 1, 0], [], []>} : vector<17x16xbf16>, vector<17x16xbf16>, vector<17x17xf32> -> vector<17x17xf32>
    %cst_19 = arith.constant 2.500000e-01 : f32
    %47 = vector.broadcast %cst_19 : f32 to vector<17x17xf32>
    %48 = arith.mulf %46, %47 : vector<17x17xf32>
    %cst_20 = arith.constant dense<0xFF800000> : vector<17xf32>
    %49 = vector.multi_reduction <maximumf>, %48, %cst_20 [1] : vector<17x17xf32> to vector<17xf32>
    %50 = vector.shape_cast %49 : vector<17xf32> to vector<17x1xf32>
    %51 = vector.broadcast %50 : vector<17x1xf32> to vector<17x17xf32>
    %52 = arith.subf %48, %51 : vector<17x17xf32>
    %53 = math.exp %52 : vector<17x17xf32>
    %cst_21 = arith.constant dense<0.000000e+00> : vector<17xf32>
    %54 = vector.multi_reduction <add>, %53, %cst_21 [1] : vector<17x17xf32> to vector<17xf32>
    %55 = vector.shape_cast %54 : vector<17xf32> to vector<17x1xf32>
    %56 = tpu.reciprocal %55 {approx = true} : vector<17x1xf32> -> vector<17x1xf32>
    %57 = vector.broadcast %56 : vector<17x1xf32> to vector<17x17xf32>
    %58 = arith.mulf %53, %57 : vector<17x17xf32>
    %59 = arith.truncf %58 : vector<17x17xf32> to vector<17x17xbf16>
    %60 = vector.extract_strided_slice %43 {offsets = [0, 0], sizes = [17, 16], strides = [1, 1]} : vector<17x64xbf16> to vector<17x16xbf16>
    %cst_22 = arith.constant dense<0.000000e+00> : vector<17x16xf32>
    %61 = tpu.matmul %59, %60, %cst_22 {dimension_numbers = #tpu.dot_dimension_numbers<[1], [0], [0], [1], [0, 0, 1, 1], [], []>} : vector<17x17xbf16>, vector<17x16xbf16>, vector<17x16xf32> -> vector<17x16xf32>
    %62 = vector.extract_strided_slice %39 {offsets = [0, 16], sizes = [17, 16], strides = [1, 1]} : vector<17x64xbf16> to vector<17x16xbf16>
    %63 = vector.extract_strided_slice %41 {offsets = [0, 16], sizes = [17, 16], strides = [1, 1]} : vector<17x64xbf16> to vector<17x16xbf16>
    %cst_23 = arith.constant dense<0.000000e+00> : vector<17x17xf32>
    %64 = tpu.matmul %62, %63, %cst_23 {dimension_numbers = #tpu.dot_dimension_numbers<[1], [1], [0], [0], [0, 0, 1, 0], [], []>} : vector<17x16xbf16>, vector<17x16xbf16>, vector<17x17xf32> -> vector<17x17xf32>
    %cst_24 = arith.constant 2.500000e-01 : f32
    %65 = vector.broadcast %cst_24 : f32 to vector<17x17xf32>
    %66 = arith.mulf %64, %65 : vector<17x17xf32>
    %cst_25 = arith.constant dense<0xFF800000> : vector<17xf32>
    %67 = vector.multi_reduction <maximumf>, %66, %cst_25 [1] : vector<17x17xf32> to vector<17xf32>
    %68 = vector.shape_cast %67 : vector<17xf32> to vector<17x1xf32>
    %69 = vector.broadcast %68 : vector<17x1xf32> to vector<17x17xf32>
    %70 = arith.subf %66, %69 : vector<17x17xf32>
    %71 = math.exp %70 : vector<17x17xf32>
    %cst_26 = arith.constant dense<0.000000e+00> : vector<17xf32>
    %72 = vector.multi_reduction <add>, %71, %cst_26 [1] : vector<17x17xf32> to vector<17xf32>
    %73 = vector.shape_cast %72 : vector<17xf32> to vector<17x1xf32>
    %74 = tpu.reciprocal %73 {approx = true} : vector<17x1xf32> -> vector<17x1xf32>
    %75 = vector.broadcast %74 : vector<17x1xf32> to vector<17x17xf32>
    %76 = arith.mulf %71, %75 : vector<17x17xf32>
    %77 = arith.truncf %76 : vector<17x17xf32> to vector<17x17xbf16>
    %78 = vector.extract_strided_slice %43 {offsets = [0, 16], sizes = [17, 16], strides = [1, 1]} : vector<17x64xbf16> to vector<17x16xbf16>
    %cst_27 = arith.constant dense<0.000000e+00> : vector<17x16xf32>
    %79 = tpu.matmul %77, %78, %cst_27 {dimension_numbers = #tpu.dot_dimension_numbers<[1], [0], [0], [1], [0, 0, 1, 1], [], []>} : vector<17x17xbf16>, vector<17x16xbf16>, vector<17x16xf32> -> vector<17x16xf32>
    %80 = vector.extract_strided_slice %39 {offsets = [0, 32], sizes = [17, 16], strides = [1, 1]} : vector<17x64xbf16> to vector<17x16xbf16>
    %81 = vector.extract_strided_slice %41 {offsets = [0, 32], sizes = [17, 16], strides = [1, 1]} : vector<17x64xbf16> to vector<17x16xbf16>
    %cst_28 = arith.constant dense<0.000000e+00> : vector<17x17xf32>
    %82 = tpu.matmul %80, %81, %cst_28 {dimension_numbers = #tpu.dot_dimension_numbers<[1], [1], [0], [0], [0, 0, 1, 0], [], []>} : vector<17x16xbf16>, vector<17x16xbf16>, vector<17x17xf32> -> vector<17x17xf32>
    %cst_29 = arith.constant 2.500000e-01 : f32
    %83 = vector.broadcast %cst_29 : f32 to vector<17x17xf32>
    %84 = arith.mulf %82, %83 : vector<17x17xf32>
    %cst_30 = arith.constant dense<0xFF800000> : vector<17xf32>
    %85 = vector.multi_reduction <maximumf>, %84, %cst_30 [1] : vector<17x17xf32> to vector<17xf32>
    %86 = vector.shape_cast %85 : vector<17xf32> to vector<17x1xf32>
    %87 = vector.broadcast %86 : vector<17x1xf32> to vector<17x17xf32>
    %88 = arith.subf %84, %87 : vector<17x17xf32>
    %89 = math.exp %88 : vector<17x17xf32>
    %cst_31 = arith.constant dense<0.000000e+00> : vector<17xf32>
    %90 = vector.multi_reduction <add>, %89, %cst_31 [1] : vector<17x17xf32> to vector<17xf32>
    %91 = vector.shape_cast %90 : vector<17xf32> to vector<17x1xf32>
    %92 = tpu.reciprocal %91 {approx = true} : vector<17x1xf32> -> vector<17x1xf32>
    %93 = vector.broadcast %92 : vector<17x1xf32> to vector<17x17xf32>
    %94 = arith.mulf %89, %93 : vector<17x17xf32>
    %95 = arith.truncf %94 : vector<17x17xf32> to vector<17x17xbf16>
    %96 = vector.extract_strided_slice %43 {offsets = [0, 32], sizes = [17, 16], strides = [1, 1]} : vector<17x64xbf16> to vector<17x16xbf16>
    %cst_32 = arith.constant dense<0.000000e+00> : vector<17x16xf32>
    %97 = tpu.matmul %95, %96, %cst_32 {dimension_numbers = #tpu.dot_dimension_numbers<[1], [0], [0], [1], [0, 0, 1, 1], [], []>} : vector<17x17xbf16>, vector<17x16xbf16>, vector<17x16xf32> -> vector<17x16xf32>
    %98 = vector.extract_strided_slice %39 {offsets = [0, 48], sizes = [17, 16], strides = [1, 1]} : vector<17x64xbf16> to vector<17x16xbf16>
    %99 = vector.extract_strided_slice %41 {offsets = [0, 48], sizes = [17, 16], strides = [1, 1]} : vector<17x64xbf16> to vector<17x16xbf16>
    %cst_33 = arith.constant dense<0.000000e+00> : vector<17x17xf32>
    %100 = tpu.matmul %98, %99, %cst_33 {dimension_numbers = #tpu.dot_dimension_numbers<[1], [1], [0], [0], [0, 0, 1, 0], [], []>} : vector<17x16xbf16>, vector<17x16xbf16>, vector<17x17xf32> -> vector<17x17xf32>
    %cst_34 = arith.constant 2.500000e-01 : f32
    %101 = vector.broadcast %cst_34 : f32 to vector<17x17xf32>
    %102 = arith.mulf %100, %101 : vector<17x17xf32>
    %cst_35 = arith.constant dense<0xFF800000> : vector<17xf32>
    %103 = vector.multi_reduction <maximumf>, %102, %cst_35 [1] : vector<17x17xf32> to vector<17xf32>
    %104 = vector.shape_cast %103 : vector<17xf32> to vector<17x1xf32>
    %105 = vector.broadcast %104 : vector<17x1xf32> to vector<17x17xf32>
    %106 = arith.subf %102, %105 : vector<17x17xf32>
    %107 = math.exp %106 : vector<17x17xf32>
    %cst_36 = arith.constant dense<0.000000e+00> : vector<17xf32>
    %108 = vector.multi_reduction <add>, %107, %cst_36 [1] : vector<17x17xf32> to vector<17xf32>
    %109 = vector.shape_cast %108 : vector<17xf32> to vector<17x1xf32>
    %110 = tpu.reciprocal %109 {approx = true} : vector<17x1xf32> -> vector<17x1xf32>
    %111 = vector.broadcast %110 : vector<17x1xf32> to vector<17x17xf32>
    %112 = arith.mulf %107, %111 : vector<17x17xf32>
    %113 = arith.truncf %112 : vector<17x17xf32> to vector<17x17xbf16>
    %114 = vector.extract_strided_slice %43 {offsets = [0, 48], sizes = [17, 16], strides = [1, 1]} : vector<17x64xbf16> to vector<17x16xbf16>
    %cst_37 = arith.constant dense<0.000000e+00> : vector<17x16xf32>
    %115 = tpu.matmul %113, %114, %cst_37 {dimension_numbers = #tpu.dot_dimension_numbers<[1], [0], [0], [1], [0, 0, 1, 1], [], []>} : vector<17x17xbf16>, vector<17x16xbf16>, vector<17x16xf32> -> vector<17x16xf32>
    %116 = tpu.concatenate %61, %79, %97, %115 in 1 : vector<17x16xf32>, vector<17x16xf32>, vector<17x16xf32>, vector<17x16xf32> -> vector<17x64xf32>
    %117 = arith.truncf %116 : vector<17x64xf32> to vector<17x64xbf16>
    %c0_38 = arith.constant 0 : index
    %c0_39 = arith.constant 0 : index
    %c0_40 = arith.constant 0 : index
    %118 = vector.load %arg5[%c0_38, %c0_39, %c0_40] : memref<2x64x64xbf16, #tpu.memory_space<vmem>>, vector<1x64x64xbf16>
    %119 = vector.shape_cast %118 : vector<1x64x64xbf16> to vector<64x64xbf16>
    %cst_41 = arith.constant dense<0.000000e+00> : vector<17x64xf32>
    %120 = tpu.matmul %117, %119, %cst_41 {dimension_numbers = #tpu.dot_dimension_numbers<[1], [0], [0], [1], [0, 0, 1, 1], [], []>} : vector<17x64xbf16>, vector<64x64xbf16>, vector<17x64xf32> -> vector<17x64xf32>
    %121 = arith.addf %6, %120 : vector<17x64xf32>
    %c20 = arith.constant 20 : index
    %c0_42 = arith.constant 0 : index
    %122 = vector.load %arg3[%c20, %c0_42] : memref<34x64xf32, #tpu.memory_space<vmem>>, vector<1x64xf32>
    %123 = vector.broadcast %122 : vector<1x64xf32> to vector<17x64xf32>
    %124 = arith.addf %121, %123 : vector<17x64xf32>
    %c21 = arith.constant 21 : index
    %c0_43 = arith.constant 0 : index
    %125 = vector.load %arg3[%c21, %c0_43] : memref<34x64xf32, #tpu.memory_space<vmem>>, vector<1x64xf32>
    %c22 = arith.constant 22 : index
    %c0_44 = arith.constant 0 : index
    %126 = vector.load %arg3[%c22, %c0_44] : memref<34x64xf32, #tpu.memory_space<vmem>>, vector<1x64xf32>
    %cst_45 = arith.constant dense<0.000000e+00> : vector<17xf32>
    %127 = vector.multi_reduction <add>, %124, %cst_45 [1] : vector<17x64xf32> to vector<17xf32>
    %128 = vector.shape_cast %127 : vector<17xf32> to vector<17x1xf32>
    %cst_46 = arith.constant 6.400000e+01 : f32
    %129 = vector.broadcast %cst_46 : f32 to vector<17x1xf32>
    %130 = arith.divf %128, %129 : vector<17x1xf32>
    %131 = vector.broadcast %130 : vector<17x1xf32> to vector<17x64xf32>
    %132 = arith.subf %124, %131 : vector<17x64xf32>
    %133 = arith.mulf %132, %132 : vector<17x64xf32>
    %cst_47 = arith.constant dense<0.000000e+00> : vector<17xf32>
    %134 = vector.multi_reduction <add>, %133, %cst_47 [1] : vector<17x64xf32> to vector<17xf32>
    %135 = vector.shape_cast %134 : vector<17xf32> to vector<17x1xf32>
    %cst_48 = arith.constant 6.400000e+01 : f32
    %136 = vector.broadcast %cst_48 : f32 to vector<17x1xf32>
    %137 = arith.divf %135, %136 : vector<17x1xf32>
    %138 = vector.broadcast %130 : vector<17x1xf32> to vector<17x64xf32>
    %139 = arith.subf %124, %138 : vector<17x64xf32>
    %cst_49 = arith.constant 9.99999997E-7 : f32
    %140 = vector.broadcast %cst_49 : f32 to vector<17x1xf32>
    %141 = arith.addf %137, %140 : vector<17x1xf32>
    %142 = math.rsqrt %141 : vector<17x1xf32>
    %143 = vector.broadcast %142 : vector<17x1xf32> to vector<17x64xf32>
    %144 = arith.mulf %139, %143 : vector<17x64xf32>
    %145 = vector.broadcast %125 : vector<1x64xf32> to vector<17x64xf32>
    %146 = arith.mulf %144, %145 : vector<17x64xf32>
    %147 = vector.broadcast %126 : vector<1x64xf32> to vector<17x64xf32>
    %148 = arith.addf %146, %147 : vector<17x64xf32>
    %149 = arith.truncf %148 : vector<17x64xf32> to vector<17x64xbf16>
    %c0_50 = arith.constant 0 : index
    %c0_51 = arith.constant 0 : index
    %c0_52 = arith.constant 0 : index
    %150 = vector.load %arg6[%c0_50, %c0_51, %c0_52] : memref<2x64x256xbf16, #tpu.memory_space<vmem>>, vector<1x64x256xbf16>
    %151 = vector.shape_cast %150 : vector<1x64x256xbf16> to vector<64x256xbf16>
    %cst_53 = arith.constant dense<0.000000e+00> : vector<17x256xf32>
    %152 = tpu.matmul %149, %151, %cst_53 {dimension_numbers = #tpu.dot_dimension_numbers<[1], [0], [0], [1], [0, 0, 1, 1], [], []>} : vector<17x64xbf16>, vector<64x256xbf16>, vector<17x256xf32> -> vector<17x256xf32>
    %c0_54 = arith.constant 0 : index
    %c0_55 = arith.constant 0 : index
    %c0_56 = arith.constant 0 : index
    %153 = vector.load %arg7[%c0_54, %c0_55, %c0_56] : memref<2x1x256xf32, #tpu.memory_space<vmem>>, vector<1x1x256xf32>
    %154 = vector.shape_cast %153 : vector<1x1x256xf32> to vector<1x256xf32>
    %155 = vector.broadcast %154 : vector<1x256xf32> to vector<17x256xf32>
    %156 = arith.addf %152, %155 : vector<17x256xf32>
    %cst_57 = arith.constant 5.000000e-01 : f32
    %157 = vector.broadcast %cst_57 : f32 to vector<17x256xf32>
    %158 = arith.mulf %157, %156 : vector<17x256xf32>
    %cst_58 = arith.constant 4.471500e-02 : f32
    %159 = vector.broadcast %cst_58 : f32 to vector<17x256xf32>
    %160 = arith.mulf %159, %156 : vector<17x256xf32>
    %161 = arith.mulf %160, %156 : vector<17x256xf32>
    %162 = arith.mulf %161, %156 : vector<17x256xf32>
    %163 = arith.addf %156, %162 : vector<17x256xf32>
    %cst_59 = arith.constant 0.797884583 : f32
    %164 = vector.broadcast %cst_59 : f32 to vector<17x256xf32>
    %165 = arith.mulf %164, %163 : vector<17x256xf32>
    %166 = math.tanh %165 : vector<17x256xf32>
    %cst_60 = arith.constant 1.000000e+00 : f32
    %167 = vector.broadcast %cst_60 : f32 to vector<17x256xf32>
    %168 = arith.addf %167, %166 : vector<17x256xf32>
    %169 = arith.mulf %158, %168 : vector<17x256xf32>
    %170 = arith.truncf %169 : vector<17x256xf32> to vector<17x256xbf16>
    %c0_61 = arith.constant 0 : index
    %c0_62 = arith.constant 0 : index
    %c0_63 = arith.constant 0 : index
    %171 = vector.load %arg8[%c0_61, %c0_62, %c0_63] : memref<2x256x64xbf16, #tpu.memory_space<vmem>>, vector<1x256x64xbf16>
    %172 = vector.shape_cast %171 : vector<1x256x64xbf16> to vector<256x64xbf16>
    %cst_64 = arith.constant dense<0.000000e+00> : vector<17x64xf32>
    %173 = tpu.matmul %170, %172, %cst_64 {dimension_numbers = #tpu.dot_dimension_numbers<[1], [0], [0], [1], [0, 0, 1, 1], [], []>} : vector<17x256xbf16>, vector<256x64xbf16>, vector<17x64xf32> -> vector<17x64xf32>
    %174 = arith.addf %124, %173 : vector<17x64xf32>
    %c23 = arith.constant 23 : index
    %c0_65 = arith.constant 0 : index
    %175 = vector.load %arg3[%c23, %c0_65] : memref<34x64xf32, #tpu.memory_space<vmem>>, vector<1x64xf32>
    %176 = vector.broadcast %175 : vector<1x64xf32> to vector<17x64xf32>
    %177 = arith.addf %174, %176 : vector<17x64xf32>
    %c24 = arith.constant 24 : index
    %c0_66 = arith.constant 0 : index
    %178 = vector.load %arg3[%c24, %c0_66] : memref<34x64xf32, #tpu.memory_space<vmem>>, vector<1x64xf32>
    %c25 = arith.constant 25 : index
    %c0_67 = arith.constant 0 : index
    %179 = vector.load %arg3[%c25, %c0_67] : memref<34x64xf32, #tpu.memory_space<vmem>>, vector<1x64xf32>
    %cst_68 = arith.constant dense<0.000000e+00> : vector<17xf32>
    %180 = vector.multi_reduction <add>, %177, %cst_68 [1] : vector<17x64xf32> to vector<17xf32>
    %181 = vector.shape_cast %180 : vector<17xf32> to vector<17x1xf32>
    %cst_69 = arith.constant 6.400000e+01 : f32
    %182 = vector.broadcast %cst_69 : f32 to vector<17x1xf32>
    %183 = arith.divf %181, %182 : vector<17x1xf32>
    %184 = vector.broadcast %183 : vector<17x1xf32> to vector<17x64xf32>
    %185 = arith.subf %177, %184 : vector<17x64xf32>
    %186 = arith.mulf %185, %185 : vector<17x64xf32>
    %cst_70 = arith.constant dense<0.000000e+00> : vector<17xf32>
    %187 = vector.multi_reduction <add>, %186, %cst_70 [1] : vector<17x64xf32> to vector<17xf32>
    %188 = vector.shape_cast %187 : vector<17xf32> to vector<17x1xf32>
    %cst_71 = arith.constant 6.400000e+01 : f32
    %189 = vector.broadcast %cst_71 : f32 to vector<17x1xf32>
    %190 = arith.divf %188, %189 : vector<17x1xf32>
    %191 = vector.broadcast %183 : vector<17x1xf32> to vector<17x64xf32>
    %192 = arith.subf %177, %191 : vector<17x64xf32>
    %cst_72 = arith.constant 9.99999997E-7 : f32
    %193 = vector.broadcast %cst_72 : f32 to vector<17x1xf32>
    %194 = arith.addf %190, %193 : vector<17x1xf32>
    %195 = math.rsqrt %194 : vector<17x1xf32>
    %196 = vector.broadcast %195 : vector<17x1xf32> to vector<17x64xf32>
    %197 = arith.mulf %192, %196 : vector<17x64xf32>
    %198 = vector.broadcast %178 : vector<1x64xf32> to vector<17x64xf32>
    %199 = arith.mulf %197, %198 : vector<17x64xf32>
    %200 = vector.broadcast %179 : vector<1x64xf32> to vector<17x64xf32>
    %201 = arith.addf %199, %200 : vector<17x64xf32>
    %202 = arith.truncf %201 : vector<17x64xf32> to vector<17x64xbf16>
    %c1 = arith.constant 1 : index
    %c0_73 = arith.constant 0 : index
    %c0_74 = arith.constant 0 : index
    %203 = vector.load %arg4[%c1, %c0_73, %c0_74] : memref<2x64x192xbf16, #tpu.memory_space<vmem>>, vector<1x64x192xbf16>
    %204 = vector.shape_cast %203 : vector<1x64x192xbf16> to vector<64x192xbf16>
    %cst_75 = arith.constant dense<0.000000e+00> : vector<17x192xf32>
    %205 = tpu.matmul %202, %204, %cst_75 {dimension_numbers = #tpu.dot_dimension_numbers<[1], [0], [0], [1], [0, 0, 1, 1], [], []>} : vector<17x64xbf16>, vector<64x192xbf16>, vector<17x192xf32> -> vector<17x192xf32>
    %206 = vector.extract_strided_slice %205 {offsets = [0, 0], sizes = [17, 64], strides = [1, 1]} : vector<17x192xf32> to vector<17x64xf32>
    %c26 = arith.constant 26 : index
    %c0_76 = arith.constant 0 : index
    %207 = vector.load %arg3[%c26, %c0_76] : memref<34x64xf32, #tpu.memory_space<vmem>>, vector<1x64xf32>
    %208 = vector.broadcast %207 : vector<1x64xf32> to vector<17x64xf32>
    %209 = arith.addf %206, %208 : vector<17x64xf32>
    %210 = arith.truncf %209 : vector<17x64xf32> to vector<17x64xbf16>
    %211 = vector.extract_strided_slice %205 {offsets = [0, 64], sizes = [17, 64], strides = [1, 1]} : vector<17x192xf32> to vector<17x64xf32>
    %212 = arith.truncf %211 : vector<17x64xf32> to vector<17x64xbf16>
    %213 = vector.extract_strided_slice %205 {offsets = [0, 128], sizes = [17, 64], strides = [1, 1]} : vector<17x192xf32> to vector<17x64xf32>
    %214 = arith.truncf %213 : vector<17x64xf32> to vector<17x64xbf16>
    %215 = vector.extract_strided_slice %210 {offsets = [0, 0], sizes = [17, 16], strides = [1, 1]} : vector<17x64xbf16> to vector<17x16xbf16>
    %216 = vector.extract_strided_slice %212 {offsets = [0, 0], sizes = [17, 16], strides = [1, 1]} : vector<17x64xbf16> to vector<17x16xbf16>
    %cst_77 = arith.constant dense<0.000000e+00> : vector<17x17xf32>
    %217 = tpu.matmul %215, %216, %cst_77 {dimension_numbers = #tpu.dot_dimension_numbers<[1], [1], [0], [0], [0, 0, 1, 0], [], []>} : vector<17x16xbf16>, vector<17x16xbf16>, vector<17x17xf32> -> vector<17x17xf32>
    %cst_78 = arith.constant 2.500000e-01 : f32
    %218 = vector.broadcast %cst_78 : f32 to vector<17x17xf32>
    %219 = arith.mulf %217, %218 : vector<17x17xf32>
    %cst_79 = arith.constant dense<0xFF800000> : vector<17xf32>
    %220 = vector.multi_reduction <maximumf>, %219, %cst_79 [1] : vector<17x17xf32> to vector<17xf32>
    %221 = vector.shape_cast %220 : vector<17xf32> to vector<17x1xf32>
    %222 = vector.broadcast %221 : vector<17x1xf32> to vector<17x17xf32>
    %223 = arith.subf %219, %222 : vector<17x17xf32>
    %224 = math.exp %223 : vector<17x17xf32>
    %cst_80 = arith.constant dense<0.000000e+00> : vector<17xf32>
    %225 = vector.multi_reduction <add>, %224, %cst_80 [1] : vector<17x17xf32> to vector<17xf32>
    %226 = vector.shape_cast %225 : vector<17xf32> to vector<17x1xf32>
    %227 = tpu.reciprocal %226 {approx = true} : vector<17x1xf32> -> vector<17x1xf32>
    %228 = vector.broadcast %227 : vector<17x1xf32> to vector<17x17xf32>
    %229 = arith.mulf %224, %228 : vector<17x17xf32>
    %230 = arith.truncf %229 : vector<17x17xf32> to vector<17x17xbf16>
    %231 = vector.extract_strided_slice %214 {offsets = [0, 0], sizes = [17, 16], strides = [1, 1]} : vector<17x64xbf16> to vector<17x16xbf16>
    %cst_81 = arith.constant dense<0.000000e+00> : vector<17x16xf32>
    %232 = tpu.matmul %230, %231, %cst_81 {dimension_numbers = #tpu.dot_dimension_numbers<[1], [0], [0], [1], [0, 0, 1, 1], [], []>} : vector<17x17xbf16>, vector<17x16xbf16>, vector<17x16xf32> -> vector<17x16xf32>
    %233 = vector.extract_strided_slice %210 {offsets = [0, 16], sizes = [17, 16], strides = [1, 1]} : vector<17x64xbf16> to vector<17x16xbf16>
    %234 = vector.extract_strided_slice %212 {offsets = [0, 16], sizes = [17, 16], strides = [1, 1]} : vector<17x64xbf16> to vector<17x16xbf16>
    %cst_82 = arith.constant dense<0.000000e+00> : vector<17x17xf32>
    %235 = tpu.matmul %233, %234, %cst_82 {dimension_numbers = #tpu.dot_dimension_numbers<[1], [1], [0], [0], [0, 0, 1, 0], [], []>} : vector<17x16xbf16>, vector<17x16xbf16>, vector<17x17xf32> -> vector<17x17xf32>
    %cst_83 = arith.constant 2.500000e-01 : f32
    %236 = vector.broadcast %cst_83 : f32 to vector<17x17xf32>
    %237 = arith.mulf %235, %236 : vector<17x17xf32>
    %cst_84 = arith.constant dense<0xFF800000> : vector<17xf32>
    %238 = vector.multi_reduction <maximumf>, %237, %cst_84 [1] : vector<17x17xf32> to vector<17xf32>
    %239 = vector.shape_cast %238 : vector<17xf32> to vector<17x1xf32>
    %240 = vector.broadcast %239 : vector<17x1xf32> to vector<17x17xf32>
    %241 = arith.subf %237, %240 : vector<17x17xf32>
    %242 = math.exp %241 : vector<17x17xf32>
    %cst_85 = arith.constant dense<0.000000e+00> : vector<17xf32>
    %243 = vector.multi_reduction <add>, %242, %cst_85 [1] : vector<17x17xf32> to vector<17xf32>
    %244 = vector.shape_cast %243 : vector<17xf32> to vector<17x1xf32>
    %245 = tpu.reciprocal %244 {approx = true} : vector<17x1xf32> -> vector<17x1xf32>
    %246 = vector.broadcast %245 : vector<17x1xf32> to vector<17x17xf32>
    %247 = arith.mulf %242, %246 : vector<17x17xf32>
    %248 = arith.truncf %247 : vector<17x17xf32> to vector<17x17xbf16>
    %249 = vector.extract_strided_slice %214 {offsets = [0, 16], sizes = [17, 16], strides = [1, 1]} : vector<17x64xbf16> to vector<17x16xbf16>
    %cst_86 = arith.constant dense<0.000000e+00> : vector<17x16xf32>
    %250 = tpu.matmul %248, %249, %cst_86 {dimension_numbers = #tpu.dot_dimension_numbers<[1], [0], [0], [1], [0, 0, 1, 1], [], []>} : vector<17x17xbf16>, vector<17x16xbf16>, vector<17x16xf32> -> vector<17x16xf32>
    %251 = vector.extract_strided_slice %210 {offsets = [0, 32], sizes = [17, 16], strides = [1, 1]} : vector<17x64xbf16> to vector<17x16xbf16>
    %252 = vector.extract_strided_slice %212 {offsets = [0, 32], sizes = [17, 16], strides = [1, 1]} : vector<17x64xbf16> to vector<17x16xbf16>
    %cst_87 = arith.constant dense<0.000000e+00> : vector<17x17xf32>
    %253 = tpu.matmul %251, %252, %cst_87 {dimension_numbers = #tpu.dot_dimension_numbers<[1], [1], [0], [0], [0, 0, 1, 0], [], []>} : vector<17x16xbf16>, vector<17x16xbf16>, vector<17x17xf32> -> vector<17x17xf32>
    %cst_88 = arith.constant 2.500000e-01 : f32
    %254 = vector.broadcast %cst_88 : f32 to vector<17x17xf32>
    %255 = arith.mulf %253, %254 : vector<17x17xf32>
    %cst_89 = arith.constant dense<0xFF800000> : vector<17xf32>
    %256 = vector.multi_reduction <maximumf>, %255, %cst_89 [1] : vector<17x17xf32> to vector<17xf32>
    %257 = vector.shape_cast %256 : vector<17xf32> to vector<17x1xf32>
    %258 = vector.broadcast %257 : vector<17x1xf32> to vector<17x17xf32>
    %259 = arith.subf %255, %258 : vector<17x17xf32>
    %260 = math.exp %259 : vector<17x17xf32>
    %cst_90 = arith.constant dense<0.000000e+00> : vector<17xf32>
    %261 = vector.multi_reduction <add>, %260, %cst_90 [1] : vector<17x17xf32> to vector<17xf32>
    %262 = vector.shape_cast %261 : vector<17xf32> to vector<17x1xf32>
    %263 = tpu.reciprocal %262 {approx = true} : vector<17x1xf32> -> vector<17x1xf32>
    %264 = vector.broadcast %263 : vector<17x1xf32> to vector<17x17xf32>
    %265 = arith.mulf %260, %264 : vector<17x17xf32>
    %266 = arith.truncf %265 : vector<17x17xf32> to vector<17x17xbf16>
    %267 = vector.extract_strided_slice %214 {offsets = [0, 32], sizes = [17, 16], strides = [1, 1]} : vector<17x64xbf16> to vector<17x16xbf16>
    %cst_91 = arith.constant dense<0.000000e+00> : vector<17x16xf32>
    %268 = tpu.matmul %266, %267, %cst_91 {dimension_numbers = #tpu.dot_dimension_numbers<[1], [0], [0], [1], [0, 0, 1, 1], [], []>} : vector<17x17xbf16>, vector<17x16xbf16>, vector<17x16xf32> -> vector<17x16xf32>
    %269 = vector.extract_strided_slice %210 {offsets = [0, 48], sizes = [17, 16], strides = [1, 1]} : vector<17x64xbf16> to vector<17x16xbf16>
    %270 = vector.extract_strided_slice %212 {offsets = [0, 48], sizes = [17, 16], strides = [1, 1]} : vector<17x64xbf16> to vector<17x16xbf16>
    %cst_92 = arith.constant dense<0.000000e+00> : vector<17x17xf32>
    %271 = tpu.matmul %269, %270, %cst_92 {dimension_numbers = #tpu.dot_dimension_numbers<[1], [1], [0], [0], [0, 0, 1, 0], [], []>} : vector<17x16xbf16>, vector<17x16xbf16>, vector<17x17xf32> -> vector<17x17xf32>
    %cst_93 = arith.constant 2.500000e-01 : f32
    %272 = vector.broadcast %cst_93 : f32 to vector<17x17xf32>
    %273 = arith.mulf %271, %272 : vector<17x17xf32>
    %cst_94 = arith.constant dense<0xFF800000> : vector<17xf32>
    %274 = vector.multi_reduction <maximumf>, %273, %cst_94 [1] : vector<17x17xf32> to vector<17xf32>
    %275 = vector.shape_cast %274 : vector<17xf32> to vector<17x1xf32>
    %276 = vector.broadcast %275 : vector<17x1xf32> to vector<17x17xf32>
    %277 = arith.subf %273, %276 : vector<17x17xf32>
    %278 = math.exp %277 : vector<17x17xf32>
    %cst_95 = arith.constant dense<0.000000e+00> : vector<17xf32>
    %279 = vector.multi_reduction <add>, %278, %cst_95 [1] : vector<17x17xf32> to vector<17xf32>
    %280 = vector.shape_cast %279 : vector<17xf32> to vector<17x1xf32>
    %281 = tpu.reciprocal %280 {approx = true} : vector<17x1xf32> -> vector<17x1xf32>
    %282 = vector.broadcast %281 : vector<17x1xf32> to vector<17x17xf32>
    %283 = arith.mulf %278, %282 : vector<17x17xf32>
    %284 = arith.truncf %283 : vector<17x17xf32> to vector<17x17xbf16>
    %285 = vector.extract_strided_slice %214 {offsets = [0, 48], sizes = [17, 16], strides = [1, 1]} : vector<17x64xbf16> to vector<17x16xbf16>
    %cst_96 = arith.constant dense<0.000000e+00> : vector<17x16xf32>
    %286 = tpu.matmul %284, %285, %cst_96 {dimension_numbers = #tpu.dot_dimension_numbers<[1], [0], [0], [1], [0, 0, 1, 1], [], []>} : vector<17x17xbf16>, vector<17x16xbf16>, vector<17x16xf32> -> vector<17x16xf32>
    %287 = tpu.concatenate %232, %250, %268, %286 in 1 : vector<17x16xf32>, vector<17x16xf32>, vector<17x16xf32>, vector<17x16xf32> -> vector<17x64xf32>
    %288 = arith.truncf %287 : vector<17x64xf32> to vector<17x64xbf16>
    %c1_97 = arith.constant 1 : index
    %c0_98 = arith.constant 0 : index
    %c0_99 = arith.constant 0 : index
    %289 = vector.load %arg5[%c1_97, %c0_98, %c0_99] : memref<2x64x64xbf16, #tpu.memory_space<vmem>>, vector<1x64x64xbf16>
    %290 = vector.shape_cast %289 : vector<1x64x64xbf16> to vector<64x64xbf16>
    %cst_100 = arith.constant dense<0.000000e+00> : vector<17x64xf32>
    %291 = tpu.matmul %288, %290, %cst_100 {dimension_numbers = #tpu.dot_dimension_numbers<[1], [0], [0], [1], [0, 0, 1, 1], [], []>} : vector<17x64xbf16>, vector<64x64xbf16>, vector<17x64xf32> -> vector<17x64xf32>
    %292 = arith.addf %177, %291 : vector<17x64xf32>
    %c27 = arith.constant 27 : index
    %c0_101 = arith.constant 0 : index
    %293 = vector.load %arg3[%c27, %c0_101] : memref<34x64xf32, #tpu.memory_space<vmem>>, vector<1x64xf32>
    %294 = vector.broadcast %293 : vector<1x64xf32> to vector<17x64xf32>
    %295 = arith.addf %292, %294 : vector<17x64xf32>
    %c28 = arith.constant 28 : index
    %c0_102 = arith.constant 0 : index
    %296 = vector.load %arg3[%c28, %c0_102] : memref<34x64xf32, #tpu.memory_space<vmem>>, vector<1x64xf32>
    %c29 = arith.constant 29 : index
    %c0_103 = arith.constant 0 : index
    %297 = vector.load %arg3[%c29, %c0_103] : memref<34x64xf32, #tpu.memory_space<vmem>>, vector<1x64xf32>
    %cst_104 = arith.constant dense<0.000000e+00> : vector<17xf32>
    %298 = vector.multi_reduction <add>, %295, %cst_104 [1] : vector<17x64xf32> to vector<17xf32>
    %299 = vector.shape_cast %298 : vector<17xf32> to vector<17x1xf32>
    %cst_105 = arith.constant 6.400000e+01 : f32
    %300 = vector.broadcast %cst_105 : f32 to vector<17x1xf32>
    %301 = arith.divf %299, %300 : vector<17x1xf32>
    %302 = vector.broadcast %301 : vector<17x1xf32> to vector<17x64xf32>
    %303 = arith.subf %295, %302 : vector<17x64xf32>
    %304 = arith.mulf %303, %303 : vector<17x64xf32>
    %cst_106 = arith.constant dense<0.000000e+00> : vector<17xf32>
    %305 = vector.multi_reduction <add>, %304, %cst_106 [1] : vector<17x64xf32> to vector<17xf32>
    %306 = vector.shape_cast %305 : vector<17xf32> to vector<17x1xf32>
    %cst_107 = arith.constant 6.400000e+01 : f32
    %307 = vector.broadcast %cst_107 : f32 to vector<17x1xf32>
    %308 = arith.divf %306, %307 : vector<17x1xf32>
    %309 = vector.broadcast %301 : vector<17x1xf32> to vector<17x64xf32>
    %310 = arith.subf %295, %309 : vector<17x64xf32>
    %cst_108 = arith.constant 9.99999997E-7 : f32
    %311 = vector.broadcast %cst_108 : f32 to vector<17x1xf32>
    %312 = arith.addf %308, %311 : vector<17x1xf32>
    %313 = math.rsqrt %312 : vector<17x1xf32>
    %314 = vector.broadcast %313 : vector<17x1xf32> to vector<17x64xf32>
    %315 = arith.mulf %310, %314 : vector<17x64xf32>
    %316 = vector.broadcast %296 : vector<1x64xf32> to vector<17x64xf32>
    %317 = arith.mulf %315, %316 : vector<17x64xf32>
    %318 = vector.broadcast %297 : vector<1x64xf32> to vector<17x64xf32>
    %319 = arith.addf %317, %318 : vector<17x64xf32>
    %320 = arith.truncf %319 : vector<17x64xf32> to vector<17x64xbf16>
    %c1_109 = arith.constant 1 : index
    %c0_110 = arith.constant 0 : index
    %c0_111 = arith.constant 0 : index
    %321 = vector.load %arg6[%c1_109, %c0_110, %c0_111] : memref<2x64x256xbf16, #tpu.memory_space<vmem>>, vector<1x64x256xbf16>
    %322 = vector.shape_cast %321 : vector<1x64x256xbf16> to vector<64x256xbf16>
    %cst_112 = arith.constant dense<0.000000e+00> : vector<17x256xf32>
    %323 = tpu.matmul %320, %322, %cst_112 {dimension_numbers = #tpu.dot_dimension_numbers<[1], [0], [0], [1], [0, 0, 1, 1], [], []>} : vector<17x64xbf16>, vector<64x256xbf16>, vector<17x256xf32> -> vector<17x256xf32>
    %c1_113 = arith.constant 1 : index
    %c0_114 = arith.constant 0 : index
    %c0_115 = arith.constant 0 : index
    %324 = vector.load %arg7[%c1_113, %c0_114, %c0_115] : memref<2x1x256xf32, #tpu.memory_space<vmem>>, vector<1x1x256xf32>
    %325 = vector.shape_cast %324 : vector<1x1x256xf32> to vector<1x256xf32>
    %326 = vector.broadcast %325 : vector<1x256xf32> to vector<17x256xf32>
    %327 = arith.addf %323, %326 : vector<17x256xf32>
    %cst_116 = arith.constant 5.000000e-01 : f32
    %328 = vector.broadcast %cst_116 : f32 to vector<17x256xf32>
    %329 = arith.mulf %328, %327 : vector<17x256xf32>
    %cst_117 = arith.constant 4.471500e-02 : f32
    %330 = vector.broadcast %cst_117 : f32 to vector<17x256xf32>
    %331 = arith.mulf %330, %327 : vector<17x256xf32>
    %332 = arith.mulf %331, %327 : vector<17x256xf32>
    %333 = arith.mulf %332, %327 : vector<17x256xf32>
    %334 = arith.addf %327, %333 : vector<17x256xf32>
    %cst_118 = arith.constant 0.797884583 : f32
    %335 = vector.broadcast %cst_118 : f32 to vector<17x256xf32>
    %336 = arith.mulf %335, %334 : vector<17x256xf32>
    %337 = math.tanh %336 : vector<17x256xf32>
    %cst_119 = arith.constant 1.000000e+00 : f32
    %338 = vector.broadcast %cst_119 : f32 to vector<17x256xf32>
    %339 = arith.addf %338, %337 : vector<17x256xf32>
    %340 = arith.mulf %329, %339 : vector<17x256xf32>
    %341 = arith.truncf %340 : vector<17x256xf32> to vector<17x256xbf16>
    %c1_120 = arith.constant 1 : index
    %c0_121 = arith.constant 0 : index
    %c0_122 = arith.constant 0 : index
    %342 = vector.load %arg8[%c1_120, %c0_121, %c0_122] : memref<2x256x64xbf16, #tpu.memory_space<vmem>>, vector<1x256x64xbf16>
    %343 = vector.shape_cast %342 : vector<1x256x64xbf16> to vector<256x64xbf16>
    %cst_123 = arith.constant dense<0.000000e+00> : vector<17x64xf32>
    %344 = tpu.matmul %341, %343, %cst_123 {dimension_numbers = #tpu.dot_dimension_numbers<[1], [0], [0], [1], [0, 0, 1, 1], [], []>} : vector<17x256xbf16>, vector<256x64xbf16>, vector<17x64xf32> -> vector<17x64xf32>
    %345 = arith.addf %295, %344 : vector<17x64xf32>
    %c30 = arith.constant 30 : index
    %c0_124 = arith.constant 0 : index
    %346 = vector.load %arg3[%c30, %c0_124] : memref<34x64xf32, #tpu.memory_space<vmem>>, vector<1x64xf32>
    %347 = vector.broadcast %346 : vector<1x64xf32> to vector<17x64xf32>
    %348 = arith.addf %345, %347 : vector<17x64xf32>
    %349 = vector.extract_strided_slice %348 {offsets = [0, 0], sizes = [1, 64], strides = [1, 1]} : vector<17x64xf32> to vector<1x64xf32>
    %c31 = arith.constant 31 : index
    %c0_125 = arith.constant 0 : index
    %350 = vector.load %arg3[%c31, %c0_125] : memref<34x64xf32, #tpu.memory_space<vmem>>, vector<1x64xf32>
    %c32 = arith.constant 32 : index
    %c0_126 = arith.constant 0 : index
    %351 = vector.load %arg3[%c32, %c0_126] : memref<34x64xf32, #tpu.memory_space<vmem>>, vector<1x64xf32>
    %cst_127 = arith.constant dense<0.000000e+00> : vector<1xf32>
    %352 = vector.multi_reduction <add>, %349, %cst_127 [1] : vector<1x64xf32> to vector<1xf32>
    %353 = vector.shape_cast %352 : vector<1xf32> to vector<1x1xf32>
    %cst_128 = arith.constant 6.400000e+01 : f32
    %354 = vector.broadcast %cst_128 : f32 to vector<1x1xf32>
    %355 = arith.divf %353, %354 : vector<1x1xf32>
    %356 = vector.broadcast %355 : vector<1x1xf32> to vector<1x64xf32>
    %357 = arith.subf %349, %356 : vector<1x64xf32>
    %358 = arith.mulf %357, %357 : vector<1x64xf32>
    %cst_129 = arith.constant dense<0.000000e+00> : vector<1xf32>
    %359 = vector.multi_reduction <add>, %358, %cst_129 [1] : vector<1x64xf32> to vector<1xf32>
    %360 = vector.shape_cast %359 : vector<1xf32> to vector<1x1xf32>
    %cst_130 = arith.constant 6.400000e+01 : f32
    %361 = vector.broadcast %cst_130 : f32 to vector<1x1xf32>
    %362 = arith.divf %360, %361 : vector<1x1xf32>
    %363 = vector.broadcast %355 : vector<1x1xf32> to vector<1x64xf32>
    %364 = arith.subf %349, %363 : vector<1x64xf32>
    %cst_131 = arith.constant 9.99999997E-7 : f32
    %365 = vector.broadcast %cst_131 : f32 to vector<1x1xf32>
    %366 = arith.addf %362, %365 : vector<1x1xf32>
    %367 = math.rsqrt %366 : vector<1x1xf32>
    %368 = vector.broadcast %367 : vector<1x1xf32> to vector<1x64xf32>
    %369 = arith.mulf %364, %368 : vector<1x64xf32>
    %370 = arith.mulf %369, %350 : vector<1x64xf32>
    %371 = arith.addf %370, %351 : vector<1x64xf32>
    %372 = arith.truncf %371 : vector<1x64xf32> to vector<1x64xbf16>
    %c0_132 = arith.constant 0 : index
    %c0_133 = arith.constant 0 : index
    %373 = vector.load %arg9[%c0_132, %c0_133] : memref<64x8xbf16, #tpu.memory_space<vmem>>, vector<64x8xbf16>
    %cst_134 = arith.constant dense<0.000000e+00> : vector<1x8xf32>
    %374 = tpu.matmul %372, %373, %cst_134 {dimension_numbers = #tpu.dot_dimension_numbers<[1], [0], [0], [1], [0, 0, 1, 1], [], []>} : vector<1x64xbf16>, vector<64x8xbf16>, vector<1x8xf32> -> vector<1x8xf32>
    %c33 = arith.constant 33 : index
    %c0_135 = arith.constant 0 : index
    %375 = vector.load %arg3[%c33, %c0_135] : memref<34x64xf32, #tpu.memory_space<vmem>>, vector<1x8xf32>
    %376 = arith.addf %374, %375 : vector<1x8xf32>
    %c0_136 = arith.constant 0 : index
    %c0_137 = arith.constant 0 : index
    %c0_138 = arith.constant 0 : index
    %377 = vector.load %arg10[%c0_136, %c0_137, %c0_138] : memref<1x1x8xf32, #tpu.memory_space<vmem>>, vector<1x1x8xf32>
    %378 = vector.shape_cast %377 : vector<1x1x8xf32> to vector<1x8xf32>
    %379 = vector.shape_cast %376 : vector<1x8xf32> to vector<1x1x8xf32>
    tpu.vector_store %arg10[%c0_136, %c0_137, %c0_138], %379 {strides = array<i32>} : memref<1x1x8xf32, #tpu.memory_space<vmem>>, vector<1x1x8xf32>,
    return
  }
  func.func @transform_0(%arg0: i32) -> (i32, i32, i32) {
    %c0_i32 = arith.constant 0 : i32
    %c0_i32_0 = arith.constant 0 : i32
    %c0_i32_1 = arith.constant 0 : i32
    return %arg0, %c0_i32, %c0_i32_0 : i32, i32, i32
  }
  func.func @transform_1(%arg0: i32) -> (i32, i32) {
    %c0_i32 = arith.constant 0 : i32
    %c0_i32_0 = arith.constant 0 : i32
    %c0_i32_1 = arith.constant 0 : i32
    return %c0_i32, %c0_i32_0 : i32, i32
  }
  func.func @transform_2(%arg0: i32) -> (i32, i32) {
    %c0_i32 = arith.constant 0 : i32
    %c0_i32_0 = arith.constant 0 : i32
    %c0_i32_1 = arith.constant 0 : i32
    return %c0_i32, %c0_i32_0 : i32, i32
  }
  func.func @transform_3(%arg0: i32) -> (i32, i32, i32) {
    %c0_i32 = arith.constant 0 : i32
    %c0_i32_0 = arith.constant 0 : i32
    %c0_i32_1 = arith.constant 0 : i32
    %c0_i32_2 = arith.constant 0 : i32
    return %c0_i32, %c0_i32_0, %c0_i32_1 : i32, i32, i32
  }
  func.func @transform_4(%arg0: i32) -> (i32, i32, i32) {
    %c0_i32 = arith.constant 0 : i32
    %c0_i32_0 = arith.constant 0 : i32
    %c0_i32_1 = arith.constant 0 : i32
    %c0_i32_2 = arith.constant 0 : i32
    return %c0_i32, %c0_i32_0, %c0_i32_1 : i32, i32, i32
  }
  func.func @transform_5(%arg0: i32) -> (i32, i32, i32) {
    %c0_i32 = arith.constant 0 : i32
    %c0_i32_0 = arith.constant 0 : i32
    %c0_i32_1 = arith.constant 0 : i32
    %c0_i32_2 = arith.constant 0 : i32
    return %c0_i32, %c0_i32_0, %c0_i32_1 : i32, i32, i32
  }
  func.func @transform_6(%arg0: i32) -> (i32, i32, i32) {
    %c0_i32 = arith.constant 0 : i32
    %c0_i32_0 = arith.constant 0 : i32
    %c0_i32_1 = arith.constant 0 : i32
    %c0_i32_2 = arith.constant 0 : i32
    return %c0_i32, %c0_i32_0, %c0_i32_1 : i32, i32, i32
  }
  func.func @transform_7(%arg0: i32) -> (i32, i32, i32) {
    %c0_i32 = arith.constant 0 : i32
    %c0_i32_0 = arith.constant 0 : i32
    %c0_i32_1 = arith.constant 0 : i32
    %c0_i32_2 = arith.constant 0 : i32
    return %c0_i32, %c0_i32_0, %c0_i32_1 : i32, i32, i32
  }
  func.func @transform_8(%arg0: i32) -> (i32, i32) {
    %c0_i32 = arith.constant 0 : i32
    %c0_i32_0 = arith.constant 0 : i32
    %c0_i32_1 = arith.constant 0 : i32
    return %c0_i32, %c0_i32_0 : i32, i32
  }
  func.func @transform_9(%arg0: i32) -> (i32, i32, i32) {
    %c0_i32 = arith.constant 0 : i32
    %c0_i32_0 = arith.constant 0 : i32
    %c0_i32_1 = arith.constant 0 : i32
    return %arg0, %c0_i32, %c0_i32_0 : i32, i32, i32
  }
}

</mosaic_0001>

<bundles_post_ra>
// kernel: _lambda_.1
= control target key start
LH: loop header
LB: loop body
LE: loop exit
PB: predicated region body
PF: predicated region fallthrough
CT: control target
= control target key end

     0   :  { %14 = vsyncpa [#allocation3], 0  ;;  %s5245_s0 = inlined_call_operand.vmem [shape: f32[2,17,64], index: 0, kind: input, shape index: {}]   ;;  %s5246_s1 = inlined_call_operand.vmem [shape: bf16[64,64], index: 1, kind: input, shape index: {}]   ;;  %s5247_s2 = inlined_call_operand.vmem [shape: f32[34,64], index: 2, kind: input, shape index: {}]   ;;  %s5248_s3 = inlined_call_operand.vmem [shape: bf16[2,64,192], index: 3, kind: input, shape index: {}]   ;;  %s5249_s4 = inlined_call_operand.vmem [shape: bf16[2,64,64], index: 4, kind: input, shape index: {}]   ;;  %s5250_s5 = inlined_call_operand.vmem [shape: bf16[2,64,256], index: 5, kind: input, shape index: {}]   ;;  %s5251_s6 = inlined_call_operand.vmem [shape: f32[2,1,256], index: 6, kind: input, shape index: {}]   ;;  %s5252_s7 = inlined_call_operand.vmem [shape: bf16[2,256,64], index: 7, kind: input, shape index: {}]   ;;  %s5253_s8 = inlined_call_operand.vmem [shape: bf16[64,8], index: 8, kind: input, shape index: {}]   ;;  %s5254_s9 = inlined_call_operand.hbm [shape: f32[2,1,8], index: 9, kind: output, shape index: {}]  }
   0x1   :  { %16 = vsyncpa [#allocation3 + $0x1], 0  ;;  %s4403_s30 = smov 0   ;;  %s4405_s10 = smov 0  }
   0x2   :  { %s4407_s11 = smov 0   ;;  %s4409_s12 = smov 0  }
   0x3 LB: > { %s4424_s13 = sadd.s32 4294967295, %s4340_s12   ;;  %s3415_s14 = sadd.s32 4294967294, %s4340_s12   ;;  %s4340_s12 = sphi %s4409_s12, %s5275_s12   ;;  %s4336_s11 = sphi %s4407_s11, %s5274_s11   ;;  %s4332_s10 = sphi %s4405_s10, %s5273_s10   ;;  %s4328_s30 = sphi %s4403_s30, %s5272_s30  }
   0x4   : > { %s4428_s15 = sadd.s32 1, %s4340_s12   ;;  %s223_s16 = sadd.s32 1, %s4336_s11 }
   0x5   : > { %s220_s17 = ssub.s32 %s4340_s12, %s4428_s15  ;;  %p233_p0 = scmp.ne.s32.totalorder %s4336_s11, %s4332_s10 }
   0x6   : > { %p221_p1 = scmp.eq.s32.totalorder %s220_s17, 0  ;;  %p234_p2 = scmp.eq.s32.totalorder %s4424_s13, 1 }
   0x7   : > { %p239_p3 = scmp.ne.s32.totalorder %s4332_s10, %s4328_s30  ;;  %p240_p4 = scmp.eq.s32.totalorder %s3415_s14, 1 }
   0x8   : > { %s4439_s18 = scalar_select %p221_p1, %s4336_s11, %s223_s16  }
   0x9   : > { %p4441_p5 = por %p234_p2, %p233_p0  ;;  %p4445_p6 = por %p240_p4, %p239_p3 }
   0xa   : > { %p3418_p7 = scmp.ge.s32.totalorder %s4340_s12, 1  ;;  %p290_p8 = scmp.lt.s32.totalorder %s4340_s12, 3 }
   0xc   : > { %p291_p9 = pnand %p3418_p7, %p290_p8 }
   0xd   : > { %v4036_v0 = vld [vmem:[%s5246_s1] sm:$0xff] (!%p291_p9)   ;;  %p325_p10 = scmp.lt.s32.totalorder (!%p291_p9), %s4424_s13, 1  ;;  %v4037_v1 = vld [vmem:[%s5246_s1 + $0x8] sm:$0xff] (!%p291_p9)   ;;  %v4038_v2 = vld [vmem:[%s5246_s1 + $0x10] sm:$0xff] (!%p291_p9)   ;;  %vm371_vm0 = vcmask (!%p291_p9), 523264   ;;  %vm434_vm1 = vcmask (!%p291_p9), 516096  }
   0xe   : > { %294 = sbr.rel (%p291_p9) target bundleno = 8152 (0x1fd8), region = 56  ;;  %3764 = vmatprep.subr.bf16.mxu0 (!%p291_p9), %v4036_v0  ;;  %v4039_v3 = vld [vmem:[%s5246_s1 + $0x18] sm:$0xff] (!%p291_p9)   ;;  %v333_v9 = vld [vmem:[%s5247_s2 + $0x10] sm:$0x1] (!%p291_p9)  ;;  %v331_v10 = vld [vmem:[%s5247_s2] sm:$0xff] (!%p291_p9)  ;;  %v4342_v41 = vmov (!%p291_p9), 0  }
   0xf   : > { %3765 = vmatpush3.bf16.msra.mxu0 (!%p291_p9), %v4036_v0  ;;  %v332_v14 = vld [vmem:[%s5247_s2 + $0x8] sm:$0xff] (!%p291_p9)  ;;  %v4043_v39 = vld [vmem:[%s5248_s3 + $0x14] ss:$8 sps:$4 sm:$0xff] (!%p291_p9)   ;;  %v4045_v40 = vld [vmem:[%s5248_s3 + $0x10] ss:$8 sps:$4 sm:$0xff] (!%p291_p9)   ;;  %571 = vmatprep.mubr.bf16.mxu1 (!%p291_p9), %v4342_v41  ;;  %vm610_vm2 = vcmask (!%p291_p9), 130048  }
  0x10   : > { %3766 = vmatprep.subr.bf16.mxu0 (!%p291_p9), %v4037_v1  ;;  %v4040_v37 = vld [vmem:[%s5248_s3 + $0x4] ss:$8 sps:$4 sm:$0xff] (!%p291_p9)   ;;  %v4042_v38 = vld [vmem:[%s5248_s3] ss:$8 sps:$4 sm:$0xff] (!%p291_p9)   ;;  %v4049_v44 = vld [vmem:[%s5248_s3 + $0x34] ss:$8 sps:$4 sm:$0xff] (!%p291_p9)  }
  0x11   : > { %539 = vmatprep.subr.bf16.mxu1 (!%p291_p9), %v4040_v37  ;;  %v4046_v42 = vld [vmem:[%s5248_s3 + $0x24] ss:$8 sps:$4 sm:$0xff] (!%p291_p9)   ;;  %v4048_v43 = vld [vmem:[%s5248_s3 + $0x20] ss:$8 sps:$4 sm:$0xff] (!%p291_p9)   ;;  %v4051_v45 = vld [vmem:[%s5248_s3 + $0x30] ss:$8 sps:$4 sm:$0xff] (!%p291_p9)  }
  0x12   : > { %540 = vmatpush1.bf16.msra.mxu1 (!%p291_p9), %v4042_v38  ;;  %v3426_v57 = vld [vmem:[%s5247_s2 + $0x11] ss:$0 sm:$0xff] (!%p291_p9)  ;;  %v3427_v62 = vld [vmem:[%s5247_s2 + $0x12] ss:$0 sm:$0xff] (!%p291_p9)  ;;  %s4343_s26 = smov (!%p291_p9), 64   ;;  %vm717_vm3 = vcmask (!%p291_p9), 1040384  }
  0x13   : > { %3767 = vmatpush3.bf16.msra.mxu0 (!%p291_p9), %v4037_v1  ;;  %541 = vmatprep.subr.bf16.mxu1 (!%p291_p9), %v4043_v39  ;;  %vm674_vm4 = vcmask (!%p291_p9), 138240   ;;  %vm681_vm5 = vcmask (!%p291_p9), 131072   ;;  %s4344_s27 = smov (!%p291_p9), 48   ;;  %s5259_s29 = smov (!%p291_p9), 32   ;;  %vm1318_vm6 = vcmask (!%p291_p9), 261120   ;;  %vm1322_vm7 = vcmask (!%p291_p9), 392192  }
  0x14   : > { %3768 = vmatprep.subr.bf16.mxu0 (!%p291_p9), %v4038_v2  ;;  %s5261_s14 = smov (!%p291_p9), 96   ;;  %s5255_s17 = smov (!%p291_p9), 80   ;;  %vm4351_vm8 = vmmov (!%p291_p9), 0   ;;  %vm3345_vm9 = vcmask (!%p291_p9), 57344  }
  0x15   : > { %s326_s25 = scalar_select %p325_p10, %s4424_s13, 1 }
  0x16   : > { %542 = vmatpush1.bf16.msra.mxu1 %v4045_v40  ;;  %s5271_s21 = smov 80  }
  0x17   : > { %s3956_s28 = smul.u32 24, %s326_s25  ;;  %3769 = vmatpush3.bf16.msra.mxu0 %v4038_v2  ;;  %543 = vmatprep.subr.bf16.mxu1 %v4046_v42 }
  0x18   : > { %3770 = vmatprep.subr.bf16.mxu0 %v4039_v3 }
  0x19   : > { %s329_s16 = scalar_lea.vmem %s5245_s0, %s3956_s28  ;;  %s5263_s28 = smov 112  }
  0x1a   : > { %v334_v4 = vld [vmem:[%s329_s16] sm:$0xff]  ;;  %v335_v5 = vld [vmem:[%s329_s16 + $0x8] sm:$0xff]  ;;  %v336_v7 = vld [vmem:[%s329_s16 + $0x10] sm:$0x1]  ;;  %544 = vmatpush1.bf16.msra.mxu1 %v4048_v43  ;;  %s5257_s16 = smov 16  }
  0x1b   : > { %v337_v6 = vpack.c.bf16 %v335_v5, %v334_v4  ;;  %v338_v8 = vpack.c.bf16 %v336_v7, %v336_v7  ;;  %3771 = vmatpush3.bf16.msra.mxu0 %v4039_v3  ;;  %545 = vmatprep.subr.bf16.mxu1 %v4049_v44 }
  0x1d   : > { %3772 = vmatprep.mubr.msk.bf16.mxu0 %vm371_vm0, %v337_v6 }
  0x1e   : > { %3773 = vmatmul.mubr.msk.bf16.vlgmr.msra.gmra.mrb[0].mxu0 %vm371_vm0, %v338_v8  ;;  %546 = vmatpush1.bf16.msra.mxu1 %v4051_v45  ;;  %v3438_v8 = vld [vmem:[%s5247_s2 + $0x13] ss:$0 sm:$0xff] }
  0xf1   : > { %v3774_v11 = vpop.f32.mrb[0].mxu0 }
  0xf2   : > { %v4476_v12 = vadd.f32 %v3774_v11, %v333_v9  ;;  %v412_v13 = vpop.f32.mrb[1].mxu0 }
  0xf3   : > { %v4481_v15 = vadd.f32 %v412_v13, %v331_v10  ;;  %v3775_v16 = vpop.f32.mrb[2].mxu0 }
  0xf4   : > { %v415_v17 = vpop.f32.mrb[3].mxu0  ;;  %v435_v18 = vsel %vm434_vm1, %v4476_v12, 0.0 }
  0xf5   : > { %v4485_v19 = vadd.f32 %v415_v17, %v332_v14  ;;  %436 = vadd.xlane.f32.xlu1 %v435_v18  ;;  %v428_v20 = vsel %vm371_vm0, %v4481_v15, 0.0 }
  0xf6   : > { %429 = vadd.xlane.f32.xlu0 %v428_v20 }
  0xf7   : > { %v431_v21 = vsel %vm371_vm0, %v4485_v19, 0.0 }
  0xfa   : > { %432 = vadd.xlane.f32.xlu0 %v431_v21 }
 0x182   : > { %v437_v22 = vpop.xlane.xlu1 %436 }
 0x183   : > { %v441_v23 = vmul.f32 0.015625, %v437_v22  ;;  %v430_v24 = vpop.xlane.xlu0 %429 }
 0x184   : > { %v439_v25 = vmul.f32 0.015625, %v430_v24 }
 0x185   : > { %v444_v26 = vsub.f32 %v4476_v12, %v441_v23 }
 0x186   : > { %v442_v27 = vsub.f32 %v4481_v15, %v439_v25 }
 0x187   : > { %v433_v28 = vpop.xlane.xlu0 %432  ;;  %v447_v33 = vmul.f32 %v444_v26, %v444_v26 }
 0x188   : > { %v440_v29 = vmul.f32 0.015625, %v433_v28  ;;  %v445_v30 = vmul.f32 %v442_v27, %v442_v27 }
 0x189   : > { %v454_v35 = vsel %vm434_vm1, %v447_v33, 0.0 }
 0x18a   : > { %v443_v31 = vsub.f32 %v4485_v19, %v440_v29  ;;  %v448_v32 = vsel %vm371_vm0, %v445_v30, 0.0 }
 0x18b   : > { %449 = vadd.xlane.f32.xlu1 %v448_v32 }
 0x18c   : > { %v446_v34 = vmul.f32 %v443_v31, %v443_v31 }
 0x18e   : > { %v451_v36 = vsel %vm371_vm0, %v446_v34, 0.0 }
 0x18f   : > { %455 = vadd.xlane.f32.xlu1 %v454_v35  ;;  %452 = vadd.xlane.f32.xlu0 %v451_v36 }
 0x218   : > { %v450_v46 = vpop.xlane.xlu1 %449 }
 0x219   : > { %v457_v47 = vmul.f32 0.015625, %v450_v46 }
 0x21b   : > { %v460_v48 = vadd.f32 1e-06, %v457_v47 }
 0x21c   : > { %v456_v49 = vpop.xlane.xlu1 %455  ;;  %v453_v50 = vpop.xlane.xlu0 %452 }
 0x21d   : > { %4132 = vrsqrt.f32 %v460_v48  ;;  %v459_v51 = vmul.f32 0.015625, %v456_v49  ;;  %v458_v52 = vmul.f32 0.015625, %v453_v50 }
 0x21f   : > { %v462_v53 = vadd.f32 1e-06, %v459_v51  ;;  %v461_v54 = vadd.f32 1e-06, %v458_v52 }
 0x221   : > { %4134 = vrsqrt.f32 %v462_v53 }
 0x222   : > { %4136 = vrsqrt.f32 %v461_v54 }
 0x227   : > { %v4133_v55 = vpop.eup %4132 }
 0x228   : > { %v466_v56 = vmul.f32 %v4133_v55, %v442_v27 }
 0x22a   : > { %v473_v61 = vmul.f32 %v3426_v57, %v466_v56 }
 0x22b   : > { %v4135_v58 = vpop.eup %4134 }
 0x22c   : > { %v4137_v59 = vpop.eup %4136  ;;  %v468_v0 = vmul.f32 %v4135_v58, %v444_v26  ;;  %v480_v1 = vadd.f32 %v3427_v62, %v473_v61 }
 0x22d   : > { %v467_v60 = vmul.f32 %v4137_v59, %v443_v31  ;;  %v4556_v31 = vsel %vm717_vm3, 65535, %v4342_v41 }
 0x22e   : > { %v475_v4 = vmul.f32 %v3426_v57, %v468_v0 }
 0x22f   : > { %v474_v63 = vmul.f32 %v3426_v57, %v467_v60 }
 0x230   : > { %v482_v5 = vadd.f32 %v3427_v62, %v475_v4 }
 0x231   : > { %v481_v2 = vadd.f32 %v3427_v62, %v474_v63 }
 0x232   : > { %v484_v6 = vpack.c.bf16 %v482_v5, %v482_v5 }
 0x233   : > { %v483_v3 = vpack.c.bf16 %v481_v2, %v480_v1 }
 0x235   : > { %3436 = vmatmul.mubr.msk.bf16.vlgmr.msra.gmra.mrb[0].mxu1 %vm371_vm0, %v483_v3 }
 0x236   : > { %581 = vmatprep.mubr.bf16.mxu1 %v4342_v41 }
 0x23d   : > { %3437 = vmatmul.mubr.msk.bf16.gmra.mrb[4].mxu1 %vm371_vm0, %v484_v6 }
 0x308   : > { %v573_v7 = vpop.f32.mrb[0].mxu1 }
 0x309   : > { %v575_v9 = vpop.f32.mrb[1].mxu1  ;;  %v595_v11 = vadd.f32 %v3438_v8, %v573_v7 }
 0x30a   : > { %v577_v10 = vpop.f32.mrb[2].mxu1 }
 0x30b   : > { %v596_v13 = vadd.f32 %v3438_v8, %v577_v10  ;;  %v4534_v14 = vpack.c.bf16 %v577_v10, %v573_v7  ;;  %v579_v16 = vpop.f32.mrb[3].mxu1 }
 0x30c   : > { %v4536_v17 = vpack.c.bf16 %v579_v16, %v575_v9 }
 0x30d   : > { %v4538_v18 = vpack.c.bf16 %v596_v13, %v595_v11  ;;  %606 = vrot.lane.b32.xlu0 %v4534_v14, %s4343_s26 }
 0x30f   : > { %3780 = vmatprep.mubr.msk.bf16.mxu0 %vm610_vm2, %v4538_v18 }
 0x310   : > { %v583_v20 = vpop.f32.mrb[4].mxu1 }
 0x311   : > { %v597_v21 = vadd.f32 %v3438_v8, %v583_v20  ;;  %v4544_v22 = vpack.c.bf16 %v583_v20, %v583_v20  ;;  %v585_v23 = vpop.f32.mrb[5].mxu1 }
 0x312   : > { %v587_v24 = vpop.f32.mrb[6].mxu1  ;;  %v4553_v30 = vpack.c.bf16 %v585_v23, %v585_v23 }
 0x313   : > { %608 = vrot.lane.b32.xlu1 %v4544_v22, %s4343_s26  ;;  %v588_v25 = vpop.f32.mrb[7].mxu1  ;;  %v4558_v32 = vpack.c.bf16 %v597_v21, %v597_v21 }
 0x314   : > { %v721_v33 = vand.u32 %v4556_v31, %v4553_v30 }
 0x37f   : > { %v607_v26 = vpop.permute.xlu0 %606 }
 0x380   : > { %3940 = vmatprep.subr.msk.bf16.mxu0 %vm610_vm2, %v607_v26  ;;  %v618_v27 = vsel %vm610_vm2, %v607_v26, 0 }
 0x381   : > { %3777 = vmatpush3.bf16.xpose.msra.mxu0 %v618_v27 }
 0x385   : > { %v609_v28 = vpop.permute.xlu1 %608 }
 0x386   : > { %3941 = vmatprep.subr.msk.bf16.mxu0 %vm610_vm2, %v609_v28  ;;  %v621_v29 = vsel %vm610_vm2, %v609_v28, 0 }
 0x389   : > { %3779 = vmatpush3.bf16.xpose.msra.mxu0 %v621_v29 }
 0x38a   : > { %3784 = vmatprep.subr.bf16.mxu0 %v4536_v17 }
 0x390   : > { %3781 = vmatmul.mubr.msk.bf16.vlgmr.msra.gmra.mrb[4].mxu0 %vm610_vm2, %v4558_v32 }
 0x391   : > { %3785 = vmatpush3.bf16.msra.mxu0 %v4536_v17 }
 0x392   : > { %3786 = vmatprep.subr.bf16.mxu0 %v721_v33 }
 0x395   : > { %3787 = vmatpush3.bf16.msra.mxu0 %v721_v33 }
 0x463   : > { %v3782_v34 = vpop.f32.mrb[4].mxu0 }
 0x464   : > { %v657_v35 = vpop.f32.mrb[5].mxu0  ;;  %v673_v42 = vmul.f32 0.25, %v3782_v34 }
 0x465   : > { %v671_v36 = vmul.f32 0.25, %v657_v35  ;;  %v3783_v37 = vpop.f32.mrb[6].mxu0 }
 0x466   : > { %v660_v38 = vpop.f32.mrb[7].mxu0  ;;  %v682_v44 = vsel %vm681_vm5, %v673_v42, -inf }
 0x467   : > { %v672_v39 = vmul.f32 0.25, %v660_v38  ;;  %v675_v40 = vsel %vm674_vm4, %v671_v36, -inf }
 0x468   : > { %676 = vmax.xlane.f32.xlu1 %v675_v40 }
 0x469   : > { %v678_v43 = vsel %vm674_vm4, %v672_v39, -inf }
 0x46a   : > { %679 = vmax.xlane.f32.xlu0 %v678_v43 }
 0x46e   : > { %683 = vmax.xlane.f32.xlu0 %v682_v44 }
 0x4f5   : > { %v677_v45 = vpop.xlane.xlu1 %676 }
 0x4f6   : > { %v685_v46 = vsub.f32 %v671_v36, %v677_v45 }
 0x4f7   : > { %v680_v47 = vpop.xlane.xlu0 %679 }
 0x4f8   : > { %v688_v48 = vmul.f32 1.442695, %v685_v46  ;;  %v686_v49 = vsub.f32 %v672_v39, %v680_v47 }
 0x4fa   : > { %4138 = vpow2.f32 %v688_v48  ;;  %v690_v50 = vmul.f32 1.442695, %v686_v49 }
 0x4fb   : > { %v684_v51 = vpop.xlane.xlu0 %683 }
 0x4fc   : > { %4140 = vpow2.f32 %v690_v50  ;;  %v687_v52 = vsub.f32 %v673_v42, %v684_v51 }
 0x4fe   : > { %v692_v53 = vmul.f32 1.442695, %v687_v52 }
 0x500   : > { %4142 = vpow2.f32 %v692_v53 }
 0x504   : > { %v4139_v54 = vpop.eup %4138 }
 0x505   : > { %v694_v55 = vsel %vm674_vm4, %v4139_v54, 0.0 }
 0x506   : > { %v4141_v56 = vpop.eup %4140  ;;  %695 = vadd.xlane.f32.xlu1 %v694_v55 }
 0x507   : > { %v697_v57 = vsel %vm674_vm4, %v4141_v56, 0.0 }
 0x508   : > { %698 = vadd.xlane.f32.xlu0 %v697_v57 }
 0x50a   : > { %v4143_v58 = vpop.eup %4142 }
 0x50b   : > { %v700_v59 = vsel %vm681_vm5, %v4143_v58, 0.0 }
 0x50c   : > { %701 = vadd.xlane.f32.xlu1 %v700_v59 }
 0x51d   : > { %779 = vrot.lane.b32.xlu1 %v4544_v22, %s4344_s27 }
 0x51e   : > { %777 = vrot.lane.b32.xlu0 %v4534_v14, %s4344_s27 }
 0x521   : > { %773 = vrot.lane.b32.xlu1 %v4538_v18, %s5263_s28 }
 0x525   : > { %775 = vrot.lane.b32.xlu1 %v4558_v32, %s5263_s28 }
 0x593   : > { %v696_v60 = vpop.xlane.xlu1 %695 }
 0x594   : > { %4144 = vrcp.f32 %v696_v60 }
 0x595   : > { %v699_v61 = vpop.xlane.xlu0 %698 }
 0x596   : > { %4146 = vrcp.f32 %v699_v61 }
 0x599   : > { %v702_v62 = vpop.xlane.xlu1 %701  ;;  %v778_v63 = vpop.permute.xlu0 %777 }
 0x59a   : > { %4148 = vrcp.f32 %v702_v62  ;;  %3942 = vmatprep.subr.msk.bf16.mxu0 %vm610_vm2, %v778_v63  ;;  %v788_v10 = vsel %vm610_vm2, %v778_v63, 0 }
 0x59d   : > { %v780_v4 = vpop.permute.xlu1 %779 }
 0x59e   : > { %v4145_v0 = vpop.eup %4144  ;;  %v791_v11 = vsel %vm610_vm2, %v780_v4, 0 }
 0x59f   : > { %v706_v2 = vmul.f32 %v4145_v0, %v4139_v54 }
 0x5a0   : > { %v4147_v1 = vpop.eup %4146 }
 0x5a1   : > { %v707_v3 = vmul.f32 %v4147_v1, %v4141_v56  ;;  %v774_v9 = vpop.permute.xlu1 %773 }
 0x5a3   : > { %v709_v5 = vpack.c.bf16 %v707_v3, %v706_v2 }
 0x5a4   : > { %v4149_v6 = vpop.eup %4148 }
 0x5a5   : > { %3788 = vmatprep.mubr.msk.bf16.mxu0 %vm674_vm4, %v709_v5  ;;  %v708_v7 = vmul.f32 %v4149_v6, %v4143_v58  ;;  %v776_v13 = vpop.permute.xlu1 %775 }
 0x5a7   : > { %v710_v8 = vpack.c.bf16 %v708_v7, %v708_v7 }
 0x5a9   : > { %3789 = vmatmul.mubr.msk.bf16.vlgmr.msra.gmra.mrb[8].mxu0 %vm674_vm4, %v710_v8 }
 0x5aa   : > { %3793 = vmatpush3.bf16.xpose.msra.mxu0 %v788_v10  ;;  %3796 = vmatprep.mubr.msk.bf16.mxu0 %vm610_vm2, %v774_v9 }
 0x5ab   : > { %3943 = vmatprep.subr.msk.bf16.mxu0 %vm610_vm2, %v780_v4 }
 0x5b2   : > { %3795 = vmatpush3.bf16.xpose.msra.mxu0 %v791_v11 }
 0x5b9   : > { %3797 = vmatmul.mubr.msk.bf16.vlgmr.msra.gmra.mrb[12].mxu0 %vm610_vm2, %v776_v13 }
 0x67c   : > { %v4587_v16 = vpop.f32.mrb[8].mxu0 }
 0x67d   : > { %v4589_v20 = vpop.f32.mrb[9].mxu0 }
 0x67e   : > { %v3791_v21 = vpop.f32.mrb[10].mxu0 }
 0x67f   : > { %v4591_v23 = vpop.f32.mrb[11].mxu0 }
 0x68c   : > { %v3798_v24 = vpop.f32.mrb[12].mxu0 }
 0x68d   : > { %v827_v25 = vpop.f32.mrb[13].mxu0  ;;  %v843_v29 = vmul.f32 0.25, %v3798_v24 }
 0x68e   : > { %v841_v26 = vmul.f32 0.25, %v827_v25  ;;  %v3799_v27 = vpop.f32.mrb[14].mxu0 }
 0x68f   : > { %v830_v28 = vpop.f32.mrb[15].mxu0  ;;  %v850_v36 = vsel %vm681_vm5, %v843_v29, -inf }
 0x690   : > { %v842_v33 = vmul.f32 0.25, %v830_v28  ;;  %v844_v34 = vsel %vm674_vm4, %v841_v26, -inf }
 0x691   : > { %845 = vmax.xlane.f32.xlu0 %v844_v34 }
 0x692   : > { %v847_v35 = vsel %vm674_vm4, %v842_v33, -inf }
 0x693   : > { %848 = vmax.xlane.f32.xlu1 %v847_v35 }
 0x695   : > { %851 = vmax.xlane.f32.xlu0 %v850_v36 }
 0x71e   : > { %v846_v37 = vpop.xlane.xlu0 %845 }
 0x71f   : > { %v853_v38 = vsub.f32 %v841_v26, %v846_v37 }
 0x720   : > { %v849_v39 = vpop.xlane.xlu1 %848 }
 0x721   : > { %v856_v40 = vmul.f32 1.442695, %v853_v38  ;;  %v854_v42 = vsub.f32 %v842_v33, %v849_v39 }
 0x722   : > { %v852_v43 = vpop.xlane.xlu0 %851 }
 0x723   : > { %4150 = vpow2.f32 %v856_v40  ;;  %v858_v44 = vmul.f32 1.442695, %v854_v42  ;;  %v855_v45 = vsub.f32 %v843_v29, %v852_v43 }
 0x725   : > { %4152 = vpow2.f32 %v858_v44  ;;  %v860_v46 = vmul.f32 1.442695, %v855_v45 }
 0x727   : > { %4154 = vpow2.f32 %v860_v46 }
 0x72d   : > { %v4151_v47 = vpop.eup %4150 }
 0x72e   : > { %v862_v48 = vsel %vm674_vm4, %v4151_v47, 0.0 }
 0x72f   : > { %v4153_v49 = vpop.eup %4152  ;;  %863 = vadd.xlane.f32.xlu0 %v862_v48 }
 0x730   : > { %v865_v52 = vsel %vm674_vm4, %v4153_v49, 0.0 }
 0x731   : > { %v4155_v50 = vpop.eup %4154 }
 0x732   : > { %v868_v51 = vsel %vm681_vm5, %v4155_v50, 0.0 }
 0x733   : > { %869 = vadd.xlane.f32.xlu1 %v868_v51  ;;  %866 = vadd.xlane.f32.xlu0 %v865_v52 }
 0x744   : > { %883 = vrot.lane.b32.xlu1 %v4553_v30, %s5263_s28 }
 0x748   : > { %947 = vrot.lane.b32.xlu1 %v4534_v14, %s5259_s29 }
 0x749   : > { %881 = vrot.lane.b32.xlu0 %v4536_v17, %s5263_s28  ;;  %s4352_s28 = smov [#allocation2]  }
 0x74c   : > { %949 = vrot.lane.b32.xlu1 %v4544_v22, %s5259_s29 }
 0x74d   : > { %943 = vrot.lane.b32.xlu0 %v4538_v18, %s5261_s14 }
 0x750   : > { %945 = vrot.lane.b32.xlu1 %v4558_v32, %s5261_s14 }
 0x7bc   : > { %v864_v53 = vpop.xlane.xlu0 %863 }
 0x7bd   : > { %4156 = vrcp.f32 %v864_v53 }
 0x7c0   : > { %v867_v54 = vpop.xlane.xlu0 %866  ;;  %v870_v55 = vpop.xlane.xlu1 %869 }
 0x7c1   : > { %4158 = vrcp.f32 %v867_v54 }
 0x7c2   : > { %4160 = vrcp.f32 %v870_v55 }
 0x7c4   : > { %v882_v56 = vpop.permute.xlu0 %881  ;;  %v884_v57 = vpop.permute.xlu1 %883 }
 0x7c5   : > { %v893_v58 = vand.u32 %v884_v57, %v4556_v31  ;;  %3800 = vmatprep.subr.bf16.mxu1 %v882_v56 }
 0x7c6   : > { %3801 = vmatpush3.bf16.msra.mxu1 %v882_v56 }
 0x7c7   : > { %3802 = vmatprep.subr.bf16.mxu1 %v893_v58  ;;  %v4157_v59 = vpop.eup %4156 }
 0x7c8   : > { %v948_v60 = vpop.permute.xlu1 %947  ;;  %v874_v63 = vmul.f32 %v4157_v59, %v4151_v47  ;;  %v944_v4 = vpop.permute.xlu0 %943 }
 0x7c9   : > { %v958_v5 = vsel %vm610_vm2, %v948_v60, 0 }
 0x7ca   : > { %3803 = vmatpush3.bf16.msra.mxu1 %v893_v58 }
 0x7cb   : > { %v4159_v61 = vpop.eup %4158  ;;  %3944 = vmatprep.subr.msk.bf16.mxu1 %vm610_vm2, %v948_v60 }
 0x7cc   : > { %v4161_v62 = vpop.eup %4160  ;;  %v875_v0 = vmul.f32 %v4159_v61, %v4153_v49  ;;  %v950_v6 = vpop.permute.xlu1 %949 }
 0x7cd   : > { %v876_v1 = vmul.f32 %v4161_v62, %v4155_v50  ;;  %v961_v7 = vsel %vm610_vm2, %v950_v6, 0 }
 0x7ce   : > { %v877_v2 = vpack.c.bf16 %v875_v0, %v874_v63 }
 0x7cf   : > { %v878_v3 = vpack.c.bf16 %v876_v1, %v876_v1 }
 0x7d0   : > { %3804 = vmatprep.mubr.msk.bf16.mxu1 %vm674_vm4, %v877_v2  ;;  %v946_v8 = vpop.permute.xlu1 %945 }
 0x7d1   : > { %3805 = vmatmul.mubr.msk.bf16.vlgmr.msra.gmra.mrb[8].mxu1 %vm674_vm4, %v878_v3 }
 0x7d2   : > { %3812 = vmatprep.mubr.msk.bf16.mxu1 %vm610_vm2, %v944_v4 }
 0x7d3   : > { %3809 = vmatpush3.bf16.xpose.msra.mxu1 %v958_v5 }
 0x7d4   : > { %3945 = vmatprep.subr.msk.bf16.mxu1 %vm610_vm2, %v950_v6 }
 0x7db   : > { %3811 = vmatpush3.bf16.xpose.msra.mxu1 %v961_v7 }
 0x7e2   : > { %3813 = vmatmul.mubr.msk.bf16.vlgmr.msra.gmra.mrb[12].mxu1 %vm610_vm2, %v946_v8 }
 0x8a4   : > { %v4620_v9 = vpop.f32.mrb[8].mxu1 }
 0x8a5   : > { %v4622_v10 = vpop.f32.mrb[9].mxu1 }
 0x8a6   : > { %v3807_v11 = vpop.f32.mrb[10].mxu1 }
 0x8a7   : > { %v4624_v13 = vpop.f32.mrb[11].mxu1 }
 0x8a8   : > { %v4006_v21 = vpack.i.bf16 %v4624_v13, %v4622_v10 }
 0x8b5   : > { %v3814_v24 = vpop.f32.mrb[12].mxu1 }
 0x8b6   : > { %v997_v25 = vpop.f32.mrb[13].mxu1  ;;  %v1013_v29 = vmul.f32 0.25, %v3814_v24 }
 0x8b7   : > { %v1011_v26 = vmul.f32 0.25, %v997_v25  ;;  %v3815_v27 = vpop.f32.mrb[14].mxu1 }
 0x8b8   : > { %v1000_v28 = vpop.f32.mrb[15].mxu1  ;;  %v1020_v36 = vsel %vm681_vm5, %v1013_v29, -inf }
 0x8b9   : > { %v1012_v33 = vmul.f32 0.25, %v1000_v28  ;;  %v1014_v34 = vsel %vm674_vm4, %v1011_v26, -inf }
 0x8ba   : > { %1015 = vmax.xlane.f32.xlu0 %v1014_v34 }
 0x8bb   : > { %v1017_v35 = vsel %vm674_vm4, %v1012_v33, -inf }
 0x8bc   : > { %1018 = vmax.xlane.f32.xlu1 %v1017_v35 }
 0x8be   : > { %1021 = vmax.xlane.f32.xlu0 %v1020_v36 }
 0x947   : > { %v1016_v37 = vpop.xlane.xlu0 %1015 }
 0x948   : > { %v1023_v38 = vsub.f32 %v1011_v26, %v1016_v37 }
 0x949   : > { %v1019_v39 = vpop.xlane.xlu1 %1018 }
 0x94a   : > { %v1026_v40 = vmul.f32 1.442695, %v1023_v38  ;;  %v1024_v42 = vsub.f32 %v1012_v33, %v1019_v39 }
 0x94b   : > { %v1022_v43 = vpop.xlane.xlu0 %1021 }
 0x94c   : > { %4162 = vpow2.f32 %v1026_v40  ;;  %v1028_v44 = vmul.f32 1.442695, %v1024_v42  ;;  %v1025_v45 = vsub.f32 %v1013_v29, %v1022_v43 }
 0x94e   : > { %4164 = vpow2.f32 %v1028_v44  ;;  %v1030_v46 = vmul.f32 1.442695, %v1025_v45 }
 0x950   : > { %4166 = vpow2.f32 %v1030_v46 }
 0x956   : > { %v4163_v47 = vpop.eup %4162 }
 0x957   : > { %v1032_v48 = vsel %vm674_vm4, %v4163_v47, 0.0 }
 0x958   : > { %v4165_v49 = vpop.eup %4164  ;;  %1033 = vadd.xlane.f32.xlu0 %v1032_v48 }
 0x959   : > { %v1035_v52 = vsel %vm674_vm4, %v4165_v49, 0.0 }
 0x95a   : > { %v4167_v50 = vpop.eup %4166 }
 0x95b   : > { %v1038_v51 = vsel %vm681_vm5, %v4167_v50, 0.0 }
 0x95c   : > { %1039 = vadd.xlane.f32.xlu1 %v1038_v51  ;;  %1036 = vadd.xlane.f32.xlu0 %v1035_v52 }
 0x96d   : > { %1051 = vrot.lane.b32.xlu1 %v4553_v30, %s5261_s14 }
 0x971   : > { %1115 = vrot.lane.b32.xlu1 %v4534_v14, %s5257_s16 }
 0x972   : > { %1049 = vrot.lane.b32.xlu0 %v4536_v17, %s5261_s14  ;;  %s4282_s14 = sshll.u32 %s4352_s28, 4  ;;  %s4283_s14 = int_to_ptr.vmem [resolvable:$false] %s4282_s14 }
 0x975   : > { %1117 = vrot.lane.b32.xlu1 %v4544_v22, %s5257_s16 }
 0x976   : > { %1111 = vrot.lane.b32.xlu0 %v4538_v18, %s5255_s17 }
 0x979   : > { %1113 = vrot.lane.b32.xlu1 %v4558_v32, %s5255_s17 }
 0x9e5   : > { %v1034_v53 = vpop.xlane.xlu0 %1033 }
 0x9e6   : > { %4168 = vrcp.f32 %v1034_v53 }
 0x9e9   : > { %v1037_v54 = vpop.xlane.xlu0 %1036  ;;  %v1040_v55 = vpop.xlane.xlu1 %1039 }
 0x9ea   : > { %4170 = vrcp.f32 %v1037_v54 }
 0x9eb   : > { %4172 = vrcp.f32 %v1040_v55 }
 0x9ed   : > { %v1050_v14 = vpop.permute.xlu0 %1049  ;;  %v1052_v56 = vpop.permute.xlu1 %1051 }
 0x9ee   : > { %v1061_v57 = vand.u32 %v1052_v56, %v4556_v31  ;;  %3816 = vmatprep.subr.bf16.mxu0 %v1050_v14 }
 0x9ef   : > { %3817 = vmatpush3.bf16.msra.mxu0 %v1050_v14 }
 0x9f0   : > { %3818 = vmatprep.subr.bf16.mxu0 %v1061_v57  ;;  %v4169_v22 = vpop.eup %4168 }
 0x9f1   : > { %v1116_v58 = vpop.permute.xlu1 %1115  ;;  %v1044_v59 = vmul.f32 %v4169_v22, %v4163_v47  ;;  %v1112_v0 = vpop.permute.xlu0 %1111 }
 0x9f2   : > { %v1126_v1 = vsel %vm610_vm2, %v1116_v58, 0 }
 0x9f3   : > { %3819 = vmatpush3.bf16.msra.mxu0 %v1061_v57 }
 0x9f4   : > { %v4171_v18 = vpop.eup %4170  ;;  %3946 = vmatprep.subr.msk.bf16.mxu0 %vm610_vm2, %v1116_v58 }
 0x9f5   : > { %v4173_v32 = vpop.eup %4172  ;;  %v1045_v60 = vmul.f32 %v4171_v18, %v4165_v49  ;;  %v1118_v2 = vpop.permute.xlu1 %1117  ;;  %v4052_v18 = vld [vmem:[%s5249_s4] sm:$0xff]  }
 0x9f6   : > { %v1046_v61 = vmul.f32 %v4173_v32, %v4167_v50  ;;  %v1129_v3 = vsel %vm610_vm2, %v1118_v2, 0  ;;  %v4053_v32 = vld [vmem:[%s5249_s4 + $0x8] sm:$0xff]  }
 0x9f7   : > { %v1047_v62 = vpack.c.bf16 %v1045_v60, %v1044_v59  ;;  %v4054_v59 = vld [vmem:[%s5249_s4 + $0x10] sm:$0xff]   ;;  %v4055_v60 = vld [vmem:[%s5249_s4 + $0x18] sm:$0xff]  }
 0x9f8   : > { %v1048_v63 = vpack.c.bf16 %v1046_v61, %v1046_v61 }
 0x9f9   : > { %3820 = vmatprep.mubr.msk.bf16.mxu0 %vm674_vm4, %v1047_v62  ;;  %v1114_v4 = vpop.permute.xlu1 %1113 }
 0x9fa   : > { %3821 = vmatmul.mubr.msk.bf16.vlgmr.msra.gmra.mrb[16].mxu0 %vm674_vm4, %v1048_v63 }
 0x9fb   : > { %3828 = vmatprep.mubr.msk.bf16.mxu0 %vm610_vm2, %v1112_v0 }
 0x9fc   : > { %3825 = vmatpush3.bf16.xpose.msra.mxu0 %v1126_v1 }
 0x9fd   : > { %3947 = vmatprep.subr.msk.bf16.mxu0 %vm610_vm2, %v1118_v2 }
 0xa04   : > { %3827 = vmatpush3.bf16.xpose.msra.mxu0 %v1129_v3 }
 0xa0b   : > { %3829 = vmatmul.mubr.msk.bf16.vlgmr.msra.gmra.mrb[20].mxu0 %vm610_vm2, %v1114_v4 }
 0xa0c   : > { %1580 = vmatprep.mubr.bf16.mxu0 %v4342_v41 }
 0xacd   : > { %v3822_v5 = vpop.f32.mrb[16].mxu0 }
 0xace   : > { %v1097_v6 = vpop.f32.mrb[17].mxu0 }
 0xacf   : > { %v3823_v7 = vpop.f32.mrb[18].mxu0 }
 0xad0   : > { %v1100_v8 = vpop.f32.mrb[19].mxu0 }
 0xad1   : > { %v4011_v11 = vpack.i.bf16 %v1100_v8, %v1097_v6 }
 0xade   : > { %v3830_v24 = vpop.f32.mrb[20].mxu0 }
 0xadf   : > { %v1165_v25 = vpop.f32.mrb[21].mxu0  ;;  %v1181_v29 = vmul.f32 0.25, %v3830_v24 }
 0xae0   : > { %v1179_v26 = vmul.f32 0.25, %v1165_v25  ;;  %v3831_v27 = vpop.f32.mrb[22].mxu0 }
 0xae1   : > { %v1168_v28 = vpop.f32.mrb[23].mxu0  ;;  %v1188_v36 = vsel %vm681_vm5, %v1181_v29, -inf }
 0xae2   : > { %v1180_v33 = vmul.f32 0.25, %v1168_v28  ;;  %v1182_v34 = vsel %vm674_vm4, %v1179_v26, -inf }
 0xae3   : > { %1183 = vmax.xlane.f32.xlu0 %v1182_v34 }
 0xae4   : > { %v1185_v35 = vsel %vm674_vm4, %v1180_v33, -inf }
 0xae5   : > { %1186 = vmax.xlane.f32.xlu1 %v1185_v35 }
 0xae7   : > { %1189 = vmax.xlane.f32.xlu0 %v1188_v36 }
 0xb70   : > { %v1184_v37 = vpop.xlane.xlu0 %1183 }
 0xb71   : > { %v1191_v38 = vsub.f32 %v1179_v26, %v1184_v37 }
 0xb72   : > { %v1187_v39 = vpop.xlane.xlu1 %1186 }
 0xb73   : > { %v1194_v40 = vmul.f32 1.442695, %v1191_v38  ;;  %v1192_v42 = vsub.f32 %v1180_v33, %v1187_v39 }
 0xb74   : > { %v1190_v43 = vpop.xlane.xlu0 %1189 }
 0xb75   : > { %4174 = vpow2.f32 %v1194_v40  ;;  %v1196_v44 = vmul.f32 1.442695, %v1192_v42  ;;  %v1193_v45 = vsub.f32 %v1181_v29, %v1190_v43  ;;  %v3461_v40 = vld [vmem:[%s5247_s2 + $0x14] ss:$0 sm:$0xff] }
 0xb77   : > { %4176 = vpow2.f32 %v1196_v44  ;;  %v1198_v46 = vmul.f32 1.442695, %v1193_v45 }
 0xb79   : > { %4178 = vpow2.f32 %v1198_v46 }
 0xb7f   : > { %v4175_v47 = vpop.eup %4174 }
 0xb80   : > { %v1200_v48 = vsel %vm674_vm4, %v4175_v47, 0.0 }
 0xb81   : > { %v4177_v49 = vpop.eup %4176  ;;  %1201 = vadd.xlane.f32.xlu0 %v1200_v48 }
 0xb82   : > { %v1203_v52 = vsel %vm674_vm4, %v4177_v49, 0.0 }
 0xb83   : > { %v4179_v50 = vpop.eup %4178 }
 0xb84   : > { %v1206_v51 = vsel %vm681_vm5, %v4179_v50, 0.0 }
 0xb85   : > { %1207 = vadd.xlane.f32.xlu1 %v1206_v51  ;;  %1204 = vadd.xlane.f32.xlu0 %v1203_v52 }
 0xb96   : > { %1219 = vrot.lane.b32.xlu1 %v4553_v30, %s5255_s17 }
 0xb9a   : > { %4007 = vrot.lane.b32.xlu1 %v4006_v21, %s5257_s16 }
 0xb9b   : > { %1217 = vrot.lane.b32.xlu0 %v4536_v17, %s5255_s17  ;;  %s5269_s17 = smov 32  }
 0xb9e   : > { %1286 = vrot.lane.b32.xlu1 %v4620_v9, %s5257_s16  ;;  %s5268_s16 = smov 96  }
 0xb9f   : > { %4012 = vrot.lane.b32.xlu0 %v4011_v11, %s5259_s29 }
 0xba2   : > { %1298 = vrot.lane.b32.xlu1 %v3822_v5, %s5259_s29  ;;  %s5267_s29 = smov 112  }
 0xc0e   : > { %v1202_v53 = vpop.xlane.xlu0 %1201 }
 0xc0f   : > { %4180 = vrcp.f32 %v1202_v53 }
 0xc12   : > { %v1205_v54 = vpop.xlane.xlu0 %1204  ;;  %v1208_v55 = vpop.xlane.xlu1 %1207 }
 0xc13   : > { %4182 = vrcp.f32 %v1205_v54 }
 0xc14   : > { %4184 = vrcp.f32 %v1208_v55 }
 0xc16   : > { %v1218_v30 = vpop.permute.xlu0 %1217  ;;  %v1220_v14 = vpop.permute.xlu1 %1219 }
 0xc17   : > { %v1229_v10 = vand.u32 %v1220_v14, %v4556_v31  ;;  %3832 = vmatprep.subr.bf16.mxu1 %v1218_v30 }
 0xc18   : > { %3833 = vmatpush3.bf16.msra.mxu1 %v1218_v30 }
 0xc19   : > { %3834 = vmatprep.subr.bf16.mxu1 %v1229_v10  ;;  %v4181_v17 = vpop.eup %4180 }
 0xc1a   : > { %v1212_v21 = vmul.f32 %v4181_v17, %v4175_v47  ;;  %v4008_v2 = vpop.permute.xlu1 %4007  ;;  %v4013_v4 = vpop.permute.xlu0 %4012 }
 0xc1b   : > { %v4010_v5 = vunpack.i.h.bf16 %v4008_v2  ;;  %v4009_v6 = vunpack.i.l.bf16 %v4008_v2  ;;  %v4015_v8 = vunpack.i.h.bf16 %v4013_v4  ;;  %v4014_v11 = vunpack.i.l.bf16 %v4013_v4 }
 0xc1c   : > { %3835 = vmatpush3.bf16.msra.mxu1 %v1229_v10 }
 0xc1d   : > { %v4183_v9 = vpop.eup %4182  ;;  %3840 = vmatprep.subr.bf16.mxu1 %v4052_v18  ;;  %v1316_v24 = vsel %vm610_vm2, %v4591_v23, %v4010_v5  ;;  %v1315_v25 = vsel %vm610_vm2, %v4589_v20, %v4009_v6 }
 0xc1e   : > { %v4185_v13 = vpop.eup %4184  ;;  %v1213_v56 = vmul.f32 %v4183_v9, %v4177_v49  ;;  %v1287_v3 = vpop.permute.xlu1 %1286  ;;  %v1319_v36 = vsel %vm1318_vm6, %v1315_v25, %v4014_v11  ;;  %v1320_v23 = vsel %vm1318_vm6, %v1316_v24, %v4015_v8  ;;  %v3462_v25 = vld [vmem:[%s5247_s2 + $0x15] ss:$0 sm:$0xff] }
 0xc1f   : > { %v1214_v57 = vmul.f32 %v4185_v13, %v4179_v50  ;;  %v1317_v27 = vsel %vm610_vm2, %v4587_v16, %v1287_v3 }
 0xc20   : > { %v1215_v22 = vpack.c.bf16 %v1213_v56, %v1212_v21 }
 0xc21   : > { %v1216_v58 = vpack.c.bf16 %v1214_v57, %v1214_v57 }
 0xc22   : > { %3836 = vmatprep.mubr.msk.bf16.mxu1 %vm674_vm4, %v1215_v22  ;;  %v1299_v7 = vpop.permute.xlu1 %1298 }
 0xc23   : > { %3837 = vmatmul.mubr.msk.bf16.vlgmr.msra.gmra.mrb[16].mxu1 %vm674_vm4, %v1216_v58  ;;  %v1321_v29 = vsel %vm1318_vm6, %v1317_v27, %v1299_v7  ;;  %v4058_v58 = vld [vmem:[%s5250_s5 + $0x4] ss:$8 sps:$4 sm:$0xff]  }
 0xc24   : > { %3841 = vmatpush3.bf16.msra.mxu1 %v4052_v18  ;;  %v4056_v18 = vld [vmem:[%s5250_s5] ss:$8 sps:$4 sm:$0xff]   ;;  %1548 = vmatprep.subr.bf16.mxu0 %v4058_v58 }
 0xc25   : > { %3842 = vmatprep.subr.bf16.mxu1 %v4053_v32  ;;  %1549 = vmatpush1.bf16.msra.mxu0 %v4056_v18 }
 0xc28   : > { %3843 = vmatpush3.bf16.msra.mxu1 %v4053_v32  ;;  %v4061_v32 = vld [vmem:[%s5250_s5 + $0x14] ss:$8 sps:$4 sm:$0xff]  }
 0xc29   : > { %3844 = vmatprep.subr.bf16.mxu1 %v4054_v59  ;;  %1550 = vmatprep.subr.bf16.mxu0 %v4061_v32 }
 0xc2c   : > { %3845 = vmatpush3.bf16.msra.mxu1 %v4054_v59  ;;  %v4059_v59 = vld [vmem:[%s5250_s5 + $0x10] ss:$8 sps:$4 sm:$0xff]  }
 0xc2d   : > { %3846 = vmatprep.subr.bf16.mxu1 %v4055_v60  ;;  %1551 = vmatpush1.bf16.msra.mxu0 %v4059_v59 }
 0xc30   : > { %3847 = vmatpush3.bf16.msra.mxu1 %v4055_v60  ;;  %v4064_v60 = vld [vmem:[%s5250_s5 + $0x24] ss:$8 sps:$4 sm:$0xff]  }
 0xc31   : > { %1552 = vmatprep.subr.bf16.mxu0 %v4064_v60 }
 0xcf6   : > { %v3838_v61 = vpop.f32.mrb[16].mxu1 }
 0xcf7   : > { %1310 = vrot.lane.b32.xlu1 %v3838_v61, %s4344_s27  ;;  %v1265_v62 = vpop.f32.mrb[17].mxu1  ;;  %v4062_v61 = vld [vmem:[%s5250_s5 + $0x20] ss:$8 sps:$4 sm:$0xff]  }
 0xcf8   : > { %v3839_v63 = vpop.f32.mrb[18].mxu1  ;;  %1553 = vmatpush1.bf16.msra.mxu0 %v4062_v61 }
 0xcf9   : > { %v1268_v0 = vpop.f32.mrb[19].mxu1  ;;  %v4067_v63 = vld [vmem:[%s5250_s5 + $0x34] ss:$8 sps:$4 sm:$0xff]  }
 0xcfa   : > { %v4016_v1 = vpack.i.bf16 %v1268_v0, %v1265_v62  ;;  %v4065_v62 = vld [vmem:[%s5250_s5 + $0x30] ss:$8 sps:$4 sm:$0xff]   ;;  %1554 = vmatprep.subr.bf16.mxu0 %v4067_v63 }
 0xcfc   : > { %4017 = vrot.lane.b32.xlu0 %v4016_v1, %s4344_s27  ;;  %1555 = vmatpush1.bf16.msra.mxu0 %v4065_v62 }
 0xd69   : > { %v1311_v26 = vpop.permute.xlu1 %1310 }
 0xd6a   : > { %v1325_v35 = vsel %vm1322_vm7, %v1321_v29, %v1311_v26 }
 0xd6b   : > { %v1327_v39 = vpack.c.bf16 %v1325_v35, %v1325_v35 }
 0xd6e   : > { %v4018_v28 = vpop.permute.xlu0 %4017 }
 0xd6f   : > { %v4020_v33 = vunpack.i.h.bf16 %v4018_v28  ;;  %v4019_v34 = vunpack.i.l.bf16 %v4018_v28 }
 0xd71   : > { %v1323_v37 = vsel %vm1322_vm7, %v1319_v36, %v4019_v34  ;;  %v1324_v20 = vsel %vm1322_vm7, %v1320_v23, %v4020_v33  ;;  %v3463_v33 = vld [vmem:[%s5247_s2 + $0x16] ss:$0 sm:$0xff] }
 0xd72   : > { %v1326_v38 = vpack.c.bf16 %v1324_v20, %v1323_v37 }
 0xd74   : > { %3848 = vmatprep.mubr.msk.bf16.mxu1 %vm371_vm0, %v1326_v38 }
 0xd75   : > { %3849 = vmatmul.mubr.msk.bf16.vlgmr.msra.gmra.mrb[20].mxu1 %vm371_vm0, %v1327_v39 }
 0xe48   : > { %v3850_v16 = vpop.f32.mrb[20].mxu1 }
 0xe49   : > { %v1400_v42 = vpop.f32.mrb[21].mxu1  ;;  %v1416_v43 = vadd.f32 %v3850_v16, %v4476_v12  ;;  %v4068_v16 = vld [vmem:[%s5252_s7 + $0x40] sm:$0xff]  }
 0xe4a   : > { %v1414_v44 = vadd.f32 %v1400_v42, %v4481_v15  ;;  %v3851_v45 = vpop.f32.mrb[22].mxu1  ;;  %3665 = vmatprep.subr.bf16.mxu1 %v4068_v16  ;;  %v4070_v42 = vld [vmem:[%s5252_s7 + $0x48] sm:$0xff]  }
 0xe4b   : > { %v1403_v46 = vpop.f32.mrb[23].mxu1  ;;  %v4713_v49 = vadd.f32 %v3461_v40, %v1416_v43  ;;  %v4071_v43 = vld [vmem:[%s5252_s7 + $0x8] sm:$0xff]   ;;  %v4073_v45 = vld [vmem:[%s5252_s7 + $0x10] sm:$0xff]  }
 0xe4c   : > { %v4710_v47 = vadd.f32 %v3461_v40, %v1414_v44  ;;  %v1415_v48 = vadd.f32 %v1403_v46, %v4485_v19  ;;  %v4072_v44 = vld [vmem:[%s5252_s7 + $0x50] sm:$0xff]   ;;  %v4074_v46 = vld [vmem:[%s5252_s7 + $0x58] sm:$0xff]  }
 0xe4d   : > { %v1433_v12 = vsel %vm434_vm1, %v4713_v49, 0.0 }
 0xe4e   : > { %v4715_v50 = vadd.f32 %v3461_v40, %v1415_v48  ;;  %v1427_v51 = vsel %vm371_vm0, %v4710_v47, 0.0  ;;  %v4069_v40 = vld [vmem:[%s5252_s7] sm:$0xff]   ;;  %v4075_v48 = vld [vmem:[%s5252_s7 + $0x18] sm:$0xff]  }
 0xe4f   : > { %1428 = vadd.xlane.f32.xlu0 %v1427_v51  ;;  %3666 = vmatpush3.bf16.msra.mxu1 %v4069_v40  ;;  %v4076_v51 = vld [vmem:[%s5252_s7 + $0x60] sm:$0xff]  }
 0xe50   : > { %v1430_v52 = vsel %vm371_vm0, %v4715_v50, 0.0  ;;  %3667 = vmatprep.subr.bf16.mxu1 %v4070_v42 }
 0xe51   : > { %1431 = vadd.xlane.f32.xlu1 %v1430_v52  ;;  %v4077_v52 = vld [vmem:[%s5252_s7 + $0x20] sm:$0xff]  }
 0xe53   : > { %1434 = vadd.xlane.f32.xlu0 %v1433_v12  ;;  %3668 = vmatpush3.bf16.msra.mxu1 %v4071_v43  ;;  %v4078_v12 = vld [vmem:[%s5252_s7 + $0x68] sm:$0xff]  }
 0xe54   : > { %3669 = vmatprep.subr.bf16.mxu1 %v4072_v44 }
 0xe57   : > { %3670 = vmatpush3.bf16.msra.mxu1 %v4073_v45 }
 0xe58   : > { %3671 = vmatprep.subr.bf16.mxu1 %v4074_v46 }
 0xe5b   : > { %3672 = vmatpush3.bf16.msra.mxu1 %v4075_v48 }
 0xe5c   : > { %3673 = vmatprep.subr.bf16.mxu1 %v4076_v51 }
 0xe5f   : > { %3674 = vmatpush3.bf16.msra.mxu1 %v4077_v52 }
 0xe60   : > { %3675 = vmatprep.subr.bf16.mxu1 %v4078_v12 }
 0xedc   : > { %v1429_v15 = vpop.xlane.xlu0 %1428 }
 0xedd   : > { %v1436_v53 = vmul.f32 0.015625, %v1429_v15  ;;  %v4079_v15 = vld [vmem:[%s5252_s7 + $0x28] sm:$0xff]  }
 0xede   : > { %v1432_v54 = vpop.xlane.xlu1 %1431  ;;  %3676 = vmatpush3.bf16.msra.mxu1 %v4079_v15 }
 0xedf   : > { %v1439_v19 = vsub.f32 %v4710_v47, %v1436_v53  ;;  %v1437_v55 = vmul.f32 0.015625, %v1432_v54  ;;  %v4080_v53 = vld [vmem:[%s5252_s7 + $0x70] sm:$0xff]  }
 0xee0   : > { %v1435_v30 = vpop.xlane.xlu0 %1434  ;;  %v4081_v54 = vld [vmem:[%s5252_s7 + $0x30] sm:$0xff]   ;;  %3677 = vmatprep.subr.bf16.mxu1 %v4080_v53 }
 0xee1   : > { %v1440_v14 = vsub.f32 %v4715_v50, %v1437_v55  ;;  %v1438_v10 = vmul.f32 0.015625, %v1435_v30  ;;  %v1442_v17 = vmul.f32 %v1439_v19, %v1439_v19  ;;  %v4083_v55 = vld [vmem:[%s5252_s7 + $0x38] sm:$0xff]   ;;  %v1492_v30 = vlaneseq }
 0xee2   : > { %3678 = vmatpush3.bf16.msra.mxu1 %v4081_v54 }
 0xee3   : > { %v1441_v9 = vsub.f32 %v4713_v49, %v1438_v10  ;;  %v1445_v13 = vsel %vm371_vm0, %v1442_v17, 0.0  ;;  %v1443_v21 = vmul.f32 %v1440_v14, %v1440_v14  ;;  %v1490_v17 = vld [vmem:[%s5251_s6] sm:$0x3] }
 0xee4   : > { %1446 = vadd.xlane.f32.xlu0 %v1445_v13 }
 0xee5   : > { %v1444_v56 = vmul.f32 %v1441_v9, %v1441_v9  ;;  %v1448_v22 = vsel %vm371_vm0, %v1443_v21, 0.0 }
 0xee7   : > { %v1451_v57 = vsel %vm434_vm1, %v1444_v56, 0.0 }
 0xee8   : > { %1452 = vadd.xlane.f32.xlu1 %v1451_v57  ;;  %1449 = vadd.xlane.f32.xlu0 %v1448_v22 }
 0xf71   : > { %v1447_v0 = vpop.xlane.xlu0 %1446 }
 0xf72   : > { %v1454_v1 = vmul.f32 0.015625, %v1447_v0 }
 0xf74   : > { %v1457_v2 = vadd.f32 1e-06, %v1454_v1 }
 0xf75   : > { %v1450_v3 = vpop.xlane.xlu0 %1449  ;;  %v1453_v4 = vpop.xlane.xlu1 %1452 }
 0xf76   : > { %4186 = vrsqrt.f32 %v1457_v2  ;;  %v1455_v5 = vmul.f32 0.015625, %v1450_v3  ;;  %v1456_v6 = vmul.f32 0.015625, %v1453_v4 }
 0xf78   : > { %v1458_v7 = vadd.f32 1e-06, %v1455_v5  ;;  %v1459_v8 = vadd.f32 1e-06, %v1456_v6 }
 0xf7a   : > { %4188 = vrsqrt.f32 %v1458_v7 }
 0xf7b   : > { %4190 = vrsqrt.f32 %v1459_v8 }
 0xf80   : > { %v4187_v11 = vpop.eup %4186 }
 0xf81   : > { %v1463_v24 = vmul.f32 %v4187_v11, %v1439_v19  ;;  %v4082_v19 = vld [vmem:[%s5252_s7 + $0x78] sm:$0xff]  }
 0xf82   : > { %3679 = vmatprep.subr.bf16.mxu1 %v4082_v19 }
 0xf83   : > { %v1470_v28 = vmul.f32 %v3462_v25, %v1463_v24  ;;  %3680 = vmatpush3.bf16.msra.mxu1 %v4083_v55 }
 0xf84   : > { %v4189_v26 = vpop.eup %4188 }
 0xf85   : > { %v4191_v27 = vpop.eup %4190  ;;  %v1464_v29 = vmul.f32 %v4189_v26, %v1440_v14  ;;  %v1477_v36 = vadd.f32 %v3463_v33, %v1470_v28  ;;  %v4811_v14 = vshrl.u32 %v1492_v30, 7 }
 0xf86   : > { %v1465_v35 = vmul.f32 %v4191_v27, %v1441_v9 }
 0xf87   : > { %v1471_v34 = vmul.f32 %v3462_v25, %v1464_v29  ;;  %v1494_v10 = vsub.s32 0, %v4811_v14  ;;  %v1498_v9 = vsub.s32 1, %v4811_v14 }
 0xf88   : > { %v1472_v20 = vmul.f32 %v3462_v25, %v1465_v35 }
 0xf89   : > { %v1478_v23 = vadd.f32 %v3463_v33, %v1471_v34  ;;  %v1495_v13 = vrot.slane %v1490_v17, %v1494_v10  ;;  %v1499_v21 = vrot.slane %v1490_v17, %v1498_v9 }
 0xf8a   : > { %v1479_v38 = vadd.f32 %v3463_v33, %v1472_v20 }
 0xf8b   : > { %v1480_v37 = vpack.c.bf16 %v1478_v23, %v1477_v36 }
 0xf8c   : > { %v1481_v39 = vpack.c.bf16 %v1479_v38, %v1479_v38 }
 0xf8d   : > { %3472 = vmatmul.mubr.msk.bf16.vlgmr.msra.gmra.mrb[24].mxu0 %vm371_vm0, %v1480_v37 }
 0xf8e   : > { %1590 = vmatprep.mubr.bf16.mxu0 %v4342_v41 }
 0xf95   : > { %3473 = vmatmul.mubr.msk.bf16.gmra.mrb[28].mxu0 %vm371_vm0, %v1481_v39 }
 0xf96   : > { %1988 = vmatprep.mubr.bf16.mxu0 %v4342_v41 }
0x1060   : > { %v1582_v56 = vpop.f32.mrb[24].mxu0 }
0x1061   : > { %v1583_v57 = vadd.f32 %v1582_v56, %v1495_v13  ;;  %v1584_v22 = vpop.f32.mrb[25].mxu0 }
0x1062   : > { %v1585_v58 = vadd.f32 %v1584_v22, %v1499_v21  ;;  %v1586_v18 = vpop.f32.mrb[26].mxu0 }
0x1063   : > { %v1605_v32 = vmul.f32 0.044715, %v1583_v57  ;;  %v1587_v59 = vadd.f32 %v1586_v18, %v1495_v13  ;;  %v1588_v60 = vpop.f32.mrb[27].mxu0  ;;  %v1599_v19 = vmul.f32 0.5, %v1583_v57 }
0x1064   : > { %v1606_v61 = vmul.f32 0.044715, %v1585_v58  ;;  %v1589_v62 = vadd.f32 %v1588_v60, %v1499_v21  ;;  %v1600_v17 = vmul.f32 0.5, %v1585_v58 }
0x1065   : > { %v1611_v63 = vmul.f32 %v1605_v32, %v1583_v57  ;;  %v1607_v0 = vmul.f32 0.044715, %v1587_v59  ;;  %v1601_v55 = vmul.f32 0.5, %v1587_v59 }
0x1066   : > { %v1612_v1 = vmul.f32 %v1606_v61, %v1585_v58  ;;  %v1608_v2 = vmul.f32 0.044715, %v1589_v62 }
0x1067   : > { %v1617_v3 = vmul.f32 %v1611_v63, %v1583_v57  ;;  %v1613_v4 = vmul.f32 %v1607_v0, %v1587_v59 }
0x1068   : > { %v1618_v5 = vmul.f32 %v1612_v1, %v1585_v58  ;;  %v1614_v6 = vmul.f32 %v1608_v2, %v1589_v62  ;;  %v1592_v7 = vpop.f32.mrb[28].mxu0 }
0x1069   : > { %v1623_v8 = vadd.f32 %v1617_v3, %v1583_v57  ;;  %v1619_v11 = vmul.f32 %v1613_v4, %v1587_v59  ;;  %v1593_v24 = vadd.f32 %v1592_v7, %v1495_v13  ;;  %v1594_v25 = vpop.f32.mrb[29].mxu0  ;;  %v1602_v13 = vmul.f32 0.5, %v1589_v62 }
0x106a   : > { %v1620_v26 = vmul.f32 %v1614_v6, %v1589_v62  ;;  %v1595_v27 = vadd.f32 %v1594_v25, %v1499_v21  ;;  %v1596_v28 = vpop.f32.mrb[30].mxu0  ;;  %v1624_v29 = vadd.f32 %v1618_v5, %v1585_v58 }
0x106b   : > { %v1629_v33 = vmul.f32 0.7978846, %v1623_v8  ;;  %v1625_v34 = vadd.f32 %v1619_v11, %v1587_v59  ;;  %v1609_v35 = vmul.f32 0.044715, %v1593_v24  ;;  %v1597_v36 = vpop.f32.mrb[31].mxu0  ;;  %v1603_v4 = vmul.f32 0.5, %v1593_v24 }
0x106c   : > { %v1610_v23 = vmul.f32 0.044715, %v1595_v27  ;;  %v1626_v37 = vadd.f32 %v1620_v26, %v1589_v62  ;;  %v1630_v20 = vmul.f32 0.7978846, %v1624_v29  ;;  %v1604_v2 = vmul.f32 0.5, %v1595_v27 }
0x106d   : > { %4192 = vtanh.f32 %v1629_v33  ;;  %v1631_v38 = vmul.f32 0.7978846, %v1625_v34  ;;  %v1615_v39 = vmul.f32 %v1609_v35, %v1593_v24  ;;  %v3490_v11 = vld [vmem:[%s5247_s2 + $0x17] ss:$0 sm:$0xff] }
0x106e   : > { %v1616_v16 = vmul.f32 %v1610_v23, %v1595_v27  ;;  %v1632_v40 = vmul.f32 0.7978846, %v1626_v37  ;;  %4194 = vtanh.f32 %v1630_v20 }
0x106f   : > { %4196 = vtanh.f32 %v1631_v38  ;;  %v1621_v42 = vmul.f32 %v1615_v39, %v1593_v24 }
0x1070   : > { %4198 = vtanh.f32 %v1632_v40  ;;  %v1622_v43 = vmul.f32 %v1616_v16, %v1595_v27 }
0x1071   : > { %v1627_v44 = vadd.f32 %v1621_v42, %v1593_v24 }
0x1072   : > { %v1628_v45 = vadd.f32 %v1622_v43, %v1595_v27 }
0x1073   : > { %v1633_v46 = vmul.f32 0.7978846, %v1627_v44 }
0x1074   : > { %v1634_v48 = vmul.f32 0.7978846, %v1628_v45 }
0x1075   : > { %4200 = vtanh.f32 %v1633_v46 }
0x1076   : > { %4202 = vtanh.f32 %v1634_v48 }
0x1077   : > { %v4193_v51 = vpop.eup %4192 }
0x1078   : > { %v4195_v52 = vpop.eup %4194  ;;  %v1641_v12 = vadd.f32 1.0, %v4193_v51 }
0x1079   : > { %v4197_v15 = vpop.eup %4196  ;;  %v1642_v53 = vadd.f32 1.0, %v4195_v52 }
0x107a   : > { %v4199_v54 = vpop.eup %4198  ;;  %v1643_v30 = vadd.f32 1.0, %v4197_v15  ;;  %v1647_v56 = vmul.f32 %v1641_v12, %v1599_v19  ;;  %v4084_v19 = vld [vmem:[%s5248_s3 + $0x40] ss:$8 sps:$4 sm:$0xff]  }
0x107b   : > { %v1644_v21 = vadd.f32 1.0, %v4199_v54  ;;  %v1648_v18 = vmul.f32 %v1642_v53, %v1600_v17  ;;  %v4086_v54 = vld [vmem:[%s5248_s3 + $0x44] ss:$8 sps:$4 sm:$0xff]  }
0x107c   : > { %v1649_v22 = vmul.f32 %v1643_v30, %v1601_v55  ;;  %1956 = vmatprep.subr.bf16.mxu0 %v4086_v54  ;;  %v4089_v55 = vld [vmem:[%s5248_s3 + $0x54] ss:$8 sps:$4 sm:$0xff]   ;;  %v4087_v30 = vld [vmem:[%s5248_s3 + $0x50] ss:$8 sps:$4 sm:$0xff]   ;;  %v4092_v17 = vld [vmem:[%s5248_s3 + $0x64] ss:$8 sps:$4 sm:$0xff]  }
0x107d   : > { %v1650_v32 = vmul.f32 %v1644_v21, %v1602_v13  ;;  %1957 = vmatpush1.bf16.msra.mxu0 %v4084_v19  ;;  %v4090_v13 = vld [vmem:[%s5248_s3 + $0x60] ss:$8 sps:$4 sm:$0xff]   ;;  %v4095_v21 = vld [vmem:[%s5248_s3 + $0x74] ss:$8 sps:$4 sm:$0xff]  }
0x107e   : > { %v1653_v60 = vpack.c.bf16 %v1649_v22, %v1647_v56  ;;  %1958 = vmatprep.subr.bf16.mxu0 %v4089_v55  ;;  %v4093_v56 = vld [vmem:[%s5248_s3 + $0x70] ss:$8 sps:$4 sm:$0xff]  }
0x107f   : > { %v4201_v61 = vpop.eup %4200  ;;  %v1654_v63 = vpack.c.bf16 %v1650_v32, %v1648_v18 }
0x1080   : > { %v4203_v0 = vpop.eup %4202  ;;  %v1645_v1 = vadd.f32 1.0, %v4201_v61 }
0x1081   : > { %1817 = vmatprep.mubr.bf16.mxu1 %v1654_v63  ;;  %v1646_v3 = vadd.f32 1.0, %v4203_v0  ;;  %1959 = vmatpush1.bf16.msra.mxu0 %v4087_v30 }
0x1082   : > { %1818 = vmatmul.mubr.bf16.vlgmr.msra.gmra.mrb[24].mxu1 %v1653_v60  ;;  %v1651_v59 = vmul.f32 %v1645_v1, %v1603_v4  ;;  %1960 = vmatprep.subr.bf16.mxu0 %v4092_v17  ;;  %v3491_v4 = vld [vmem:[%s5247_s2 + $0x18] ss:$0 sm:$0xff] }
0x1083   : > { %v1652_v57 = vmul.f32 %v1646_v3, %v1604_v2 }
0x1084   : > { %v1655_v58 = vpack.c.bf16 %v1651_v59, %v1651_v59 }
0x1085   : > { %v1656_v5 = vpack.c.bf16 %v1652_v57, %v1652_v57  ;;  %1961 = vmatpush1.bf16.msra.mxu0 %v4090_v13 }
0x1086   : > { %1962 = vmatprep.subr.bf16.mxu0 %v4095_v21 }
0x1087   : > { %1825 = vmatprep.mubr.bf16.mxu1 %v1656_v5 }
0x1089   : > { %1963 = vmatpush1.bf16.msra.mxu0 %v4093_v56 }
0x108a   : > { %1826 = vmatmul.mubr.bf16.gmra.mrb[28].mxu1 %v1655_v58 }
0x1155   : > { %v3681_v62 = vpop.f32.mrb[24].mxu1 }
0x1156   : > { %v3682_v6 = vpop.f32.mrb[25].mxu1 }
0x1157   : > { %v3683_v7 = vadd.f32 %v3682_v6, %v3681_v62  ;;  %v3684_v8 = vpop.f32.mrb[26].mxu1  ;;  %v3492_v62 = vld [vmem:[%s5247_s2 + $0x19] ss:$0 sm:$0xff] }
0x1158   : > { %v3685_v25 = vpop.f32.mrb[27].mxu1 }
0x1159   : > { %v1833_v26 = vadd.f32 %v3683_v7, %v4710_v47  ;;  %v3686_v27 = vadd.f32 %v3685_v25, %v3684_v8 }
0x115b   : > { %v4826_v28 = vadd.f32 %v3490_v11, %v1833_v26  ;;  %v1834_v24 = vadd.f32 %v3686_v27, %v4715_v50 }
0x115d   : > { %v4829_v29 = vadd.f32 %v3490_v11, %v1834_v24  ;;  %v3687_v33 = vpop.f32.mrb[28].mxu1  ;;  %v1846_v34 = vsel %vm371_vm0, %v4826_v28, 0.0 }
0x115e   : > { %1847 = vadd.xlane.f32.xlu0 %v1846_v34  ;;  %v3688_v35 = vpop.f32.mrb[29].mxu1 }
0x115f   : > { %v3689_v36 = vadd.f32 %v3688_v35, %v3687_v33  ;;  %v3690_v23 = vpop.f32.mrb[30].mxu1  ;;  %v1849_v37 = vsel %vm371_vm0, %v4829_v29, 0.0  ;;  %v3511_v35 = vld [vmem:[%s5247_s2 + $0x1a] ss:$0 sm:$0xff] }
0x1160   : > { %1850 = vadd.xlane.f32.xlu1 %v1849_v37  ;;  %v3691_v47 = vpop.f32.mrb[31].mxu1 }
0x1161   : > { %v1835_v20 = vadd.f32 %v3689_v36, %v4713_v49 }
0x1163   : > { %v4836_v38 = vadd.f32 %v3490_v11, %v1835_v20 }
0x1165   : > { %v1852_v50 = vsel %vm434_vm1, %v4836_v38, 0.0 }
0x1166   : > { %1853 = vadd.xlane.f32.xlu0 %v1852_v50 }
0x11eb   : > { %v1848_v39 = vpop.xlane.xlu0 %1847 }
0x11ec   : > { %v1855_v16 = vmul.f32 0.015625, %v1848_v39 }
0x11ed   : > { %v1851_v40 = vpop.xlane.xlu1 %1850 }
0x11ee   : > { %v1858_v42 = vsub.f32 %v4826_v28, %v1855_v16  ;;  %v1856_v43 = vmul.f32 0.015625, %v1851_v40 }
0x11f0   : > { %v1859_v44 = vsub.f32 %v4829_v29, %v1856_v43  ;;  %v1861_v45 = vmul.f32 %v1858_v42, %v1858_v42 }
0x11f2   : > { %v1864_v46 = vsel %vm371_vm0, %v1861_v45, 0.0  ;;  %v1862_v48 = vmul.f32 %v1859_v44, %v1859_v44 }
0x11f3   : > { %1865 = vadd.xlane.f32.xlu1 %v1864_v46  ;;  %v1854_v49 = vpop.xlane.xlu0 %1853 }
0x11f4   : > { %v1857_v51 = vmul.f32 0.015625, %v1854_v49  ;;  %v1867_v52 = vsel %vm371_vm0, %v1862_v48, 0.0 }
0x11f5   : > { %1868 = vadd.xlane.f32.xlu0 %v1867_v52 }
0x11f6   : > { %v1860_v12 = vsub.f32 %v4836_v38, %v1857_v51 }
0x11f8   : > { %v1863_v15 = vmul.f32 %v1860_v12, %v1860_v12 }
0x11fa   : > { %v1870_v53 = vsel %vm434_vm1, %v1863_v15, 0.0 }
0x11fb   : > { %1871 = vadd.xlane.f32.xlu1 %v1870_v53 }
0x1280   : > { %v1866_v22 = vpop.xlane.xlu1 %1865 }
0x1281   : > { %v1873_v18 = vmul.f32 0.015625, %v1866_v22 }
0x1282   : > { %v1869_v32 = vpop.xlane.xlu0 %1868 }
0x1283   : > { %v1876_v60 = vadd.f32 1e-06, %v1873_v18  ;;  %v1874_v61 = vmul.f32 0.015625, %v1869_v32 }
0x1285   : > { %4204 = vrsqrt.f32 %v1876_v60  ;;  %v1877_v63 = vadd.f32 1e-06, %v1874_v61 }
0x1287   : > { %4206 = vrsqrt.f32 %v1877_v63 }
0x1288   : > { %v1872_v0 = vpop.xlane.xlu1 %1871 }
0x1289   : > { %v1875_v1 = vmul.f32 0.015625, %v1872_v0 }
0x128b   : > { %v1878_v2 = vadd.f32 1e-06, %v1875_v1 }
0x128d   : > { %4208 = vrsqrt.f32 %v1878_v2 }
0x128f   : > { %v4205_v3 = vpop.eup %4204 }
0x1290   : > { %v1882_v57 = vmul.f32 %v4205_v3, %v1858_v42 }
0x1291   : > { %v4207_v59 = vpop.eup %4206 }
0x1292   : > { %v1889_v5 = vmul.f32 %v3491_v4, %v1882_v57  ;;  %v1883_v58 = vmul.f32 %v4207_v59, %v1859_v44 }
0x1294   : > { %v1890_v6 = vmul.f32 %v3491_v4, %v1883_v58  ;;  %v1896_v7 = vadd.f32 %v3492_v62, %v1889_v5 }
0x1296   : > { %v1897_v8 = vadd.f32 %v3492_v62, %v1890_v6 }
0x1297   : > { %v4209_v11 = vpop.eup %4208 }
0x1298   : > { %v1899_v25 = vpack.c.bf16 %v1897_v8, %v1896_v7  ;;  %v1884_v26 = vmul.f32 %v4209_v11, %v1860_v12 }
0x129a   : > { %3509 = vmatmul.mubr.msk.bf16.vlgmr.msra.gmra.mrb[32].mxu0 %vm371_vm0, %v1899_v25  ;;  %v1891_v27 = vmul.f32 %v3491_v4, %v1884_v26 }
0x129b   : > { %1998 = vmatprep.mubr.bf16.mxu0 %v4342_v41 }
0x129c   : > { %v1898_v24 = vadd.f32 %v3492_v62, %v1891_v27 }
0x129e   : > { %v1900_v33 = vpack.c.bf16 %v1898_v24, %v1898_v24 }
0x12a2   : > { %3510 = vmatmul.mubr.msk.bf16.gmra.mrb[36].mxu0 %vm371_vm0, %v1900_v33 }
0x136d   : > { %v1990_v34 = vpop.f32.mrb[32].mxu0 }
0x136e   : > { %v1992_v36 = vpop.f32.mrb[33].mxu0  ;;  %v2012_v37 = vadd.f32 %v3511_v35, %v1990_v34 }
0x136f   : > { %v1994_v23 = vpop.f32.mrb[34].mxu0 }
0x1370   : > { %v2013_v47 = vadd.f32 %v3511_v35, %v1994_v23  ;;  %v4882_v20 = vpack.c.bf16 %v1994_v23, %v1990_v34  ;;  %v1996_v50 = vpop.f32.mrb[35].mxu0 }
0x1371   : > { %v4884_v39 = vpack.c.bf16 %v1996_v50, %v1992_v36 }
0x1372   : > { %v4886_v16 = vpack.c.bf16 %v2013_v47, %v2012_v37  ;;  %2188 = vrot.lane.b32.xlu1 %v4882_v20, %s4344_s27  ;;  %2023 = vrot.lane.b32.xlu0 %v4882_v20, %s4343_s26 }
0x1374   : > { %3856 = vmatprep.mubr.msk.bf16.mxu0 %vm610_vm2, %v4886_v16 }
0x1375   : > { %v2000_v40 = vpop.f32.mrb[36].mxu0 }
0x1376   : > { %v2014_v42 = vadd.f32 %v3511_v35, %v2000_v40  ;;  %v4894_v43 = vpack.c.bf16 %v2000_v40, %v2000_v40  ;;  %2184 = vrot.lane.b32.xlu0 %v4886_v16, %s5267_s29  ;;  %v2002_v44 = vpop.f32.mrb[37].mxu0 }
0x1377   : > { %v2004_v45 = vpop.f32.mrb[38].mxu0  ;;  %v4924_v30 = vpack.c.bf16 %v2002_v44, %v2002_v44 }
0x1378   : > { %v4898_v46 = vpack.c.bf16 %v2014_v42, %v2014_v42  ;;  %2025 = vrot.lane.b32.xlu1 %v4894_v43, %s4343_s26  ;;  %v2005_v48 = vpop.f32.mrb[39].mxu0  ;;  %s5270_s26 = smov 16  }
0x1379   : > { %v2132_v21 = vand.u32 %v4924_v30, %v4556_v31 }
0x137a   : > { %2186 = vrot.lane.b32.xlu0 %v4898_v46, %s5267_s29 }
0x137c   : > { %2190 = vrot.lane.b32.xlu1 %v4894_v43, %s4344_s27 }
0x137e   : > { %2354 = vrot.lane.b32.xlu0 %v4886_v16, %s5268_s16 }
0x1380   : > { %2358 = vrot.lane.b32.xlu1 %v4882_v20, %s5269_s17 }
0x1384   : > { %2360 = vrot.lane.b32.xlu1 %v4894_v43, %s5269_s17 }
0x1388   : > { %2356 = vrot.lane.b32.xlu1 %v4898_v46, %s5268_s16 }
0x13e4   : > { %v2024_v49 = vpop.permute.xlu0 %2023  ;;  %v2189_v51 = vpop.permute.xlu1 %2188 }
0x13e5   : > { %v2034_v52 = vsel %vm610_vm2, %v2024_v49, 0  ;;  %v2199_v12 = vsel %vm610_vm2, %v2189_v51, 0  ;;  %3948 = vmatprep.subr.msk.bf16.mxu0 %vm610_vm2, %v2024_v49  ;;  %3950 = vmatprep.subr.msk.bf16.mxu1 %vm610_vm2, %v2189_v51 }
0x13e6   : > { %3853 = vmatpush3.bf16.xpose.msra.mxu0 %v2034_v52  ;;  %3869 = vmatpush3.bf16.xpose.msra.mxu1 %v2199_v12 }
0x13e8   : > { %v2185_v15 = vpop.permute.xlu0 %2184 }
0x13e9   : > { %3872 = vmatprep.mubr.msk.bf16.mxu1 %vm610_vm2, %v2185_v15 }
0x13ea   : > { %v2026_v53 = vpop.permute.xlu1 %2025 }
0x13eb   : > { %3949 = vmatprep.subr.msk.bf16.mxu0 %vm610_vm2, %v2026_v53  ;;  %v2037_v54 = vsel %vm610_vm2, %v2026_v53, 0 }
0x13ec   : > { %v2187_v17 = vpop.permute.xlu0 %2186 }
0x13ee   : > { %3855 = vmatpush3.bf16.xpose.msra.mxu0 %v2037_v54  ;;  %v2191_v19 = vpop.permute.xlu1 %2190 }
0x13ef   : > { %v2202_v55 = vsel %vm610_vm2, %v2191_v19, 0  ;;  %3860 = vmatprep.subr.bf16.mxu0 %v4884_v39  ;;  %3951 = vmatprep.subr.msk.bf16.mxu1 %vm610_vm2, %v2191_v19 }
0x13f0   : > { %3871 = vmatpush3.bf16.xpose.msra.mxu1 %v2202_v55  ;;  %v2355_v56 = vpop.permute.xlu0 %2354 }
0x13f2   : > { %v2359_v13 = vpop.permute.xlu1 %2358 }
0x13f3   : > { %3952 = vmatprep.subr.msk.bf16.mxu1 %vm610_vm2, %v2359_v13  ;;  %v2369_v22 = vsel %vm610_vm2, %v2359_v13, 0 }
0x13f5   : > { %3857 = vmatmul.mubr.msk.bf16.vlgmr.msra.gmra.mrb[40].mxu0 %vm610_vm2, %v4898_v46 }
0x13f6   : > { %3861 = vmatpush3.bf16.msra.mxu0 %v4884_v39  ;;  %v2361_v18 = vpop.permute.xlu1 %2360 }
0x13f7   : > { %3862 = vmatprep.subr.bf16.mxu0 %v2132_v21  ;;  %3873 = vmatmul.mubr.msk.bf16.vlgmr.msra.gmra.mrb[32].mxu1 %vm610_vm2, %v2187_v17  ;;  %v2372_v32 = vsel %vm610_vm2, %v2361_v18, 0 }
0x13f8   : > { %3885 = vmatpush3.bf16.xpose.msra.mxu1 %v2369_v22  ;;  %3888 = vmatprep.mubr.msk.bf16.mxu1 %vm610_vm2, %v2355_v56 }
0x13f9   : > { %3953 = vmatprep.subr.msk.bf16.mxu1 %vm610_vm2, %v2361_v18 }
0x13fa   : > { %3863 = vmatpush3.bf16.msra.mxu0 %v2132_v21  ;;  %v2357_v60 = vpop.permute.xlu1 %2356 }
0x1400   : > { %3887 = vmatpush3.bf16.xpose.msra.mxu1 %v2372_v32 }
0x1407   : > { %3889 = vmatmul.mubr.msk.bf16.vlgmr.msra.gmra.mrb[36].mxu1 %vm610_vm2, %v2357_v60 }
0x14c8   : > { %v3858_v61 = vpop.f32.mrb[40].mxu0 }
0x14c9   : > { %v2073_v63 = vpop.f32.mrb[41].mxu0  ;;  %v2089_v57 = vmul.f32 0.25, %v3858_v61 }
0x14ca   : > { %v2087_v0 = vmul.f32 0.25, %v2073_v63  ;;  %v3859_v1 = vpop.f32.mrb[42].mxu0  ;;  %v3874_v2 = vpop.f32.mrb[32].mxu1 }
0x14cb   : > { %v2076_v3 = vpop.f32.mrb[43].mxu0  ;;  %v2238_v4 = vpop.f32.mrb[33].mxu1  ;;  %v2254_v6 = vmul.f32 0.25, %v3874_v2  ;;  %v2096_v11 = vsel %vm681_vm5, %v2089_v57, -inf }
0x14cc   : > { %v2088_v59 = vmul.f32 0.25, %v2076_v3  ;;  %v3875_v5 = vpop.f32.mrb[34].mxu1  ;;  %v2090_v58 = vsel %vm674_vm4, %v2087_v0, -inf  ;;  %v2252_v8 = vmul.f32 0.25, %v2238_v4 }
0x14cd   : > { %2091 = vmax.xlane.f32.xlu0 %v2090_v58  ;;  %v2241_v62 = vpop.f32.mrb[35].mxu1  ;;  %v2261_v25 = vsel %vm681_vm5, %v2254_v6, -inf }
0x14ce   : > { %v2093_v7 = vsel %vm674_vm4, %v2088_v59, -inf  ;;  %v2253_v26 = vmul.f32 0.25, %v2241_v62  ;;  %v2255_v27 = vsel %vm674_vm4, %v2252_v8, -inf }
0x14cf   : > { %2094 = vmax.xlane.f32.xlu1 %v2093_v7 }
0x14d0   : > { %v2258_v24 = vsel %vm674_vm4, %v2253_v26, -inf }
0x14d1   : > { %2097 = vmax.xlane.f32.xlu0 %v2096_v11 }
0x14d3   : > { %2262 = vmax.xlane.f32.xlu1 %v2261_v25 }
0x14d5   : > { %2256 = vmax.xlane.f32.xlu0 %v2255_v27 }
0x14d9   : > { %2259 = vmax.xlane.f32.xlu0 %v2258_v24 }
0x14da   : > { %v3890_v33 = vpop.f32.mrb[36].mxu1 }
0x14db   : > { %v2408_v34 = vpop.f32.mrb[37].mxu1  ;;  %v2424_v37 = vmul.f32 0.25, %v3890_v33 }
0x14dc   : > { %v2422_v35 = vmul.f32 0.25, %v2408_v34  ;;  %v3891_v36 = vpop.f32.mrb[38].mxu1 }
0x14dd   : > { %v2411_v23 = vpop.f32.mrb[39].mxu1  ;;  %v2431_v42 = vsel %vm681_vm5, %v2424_v37, -inf }
0x14de   : > { %v2423_v47 = vmul.f32 0.25, %v2411_v23  ;;  %v2425_v50 = vsel %vm674_vm4, %v2422_v35, -inf }
0x14df   : > { %2426 = vmax.xlane.f32.xlu0 %v2425_v50 }
0x14e0   : > { %v2428_v40 = vsel %vm674_vm4, %v2423_v47, -inf }
0x14e1   : > { %2429 = vmax.xlane.f32.xlu1 %v2428_v40 }
0x14e3   : > { %2432 = vmax.xlane.f32.xlu0 %v2431_v42 }
0x155a   : > { %v2092_v44 = vpop.xlane.xlu0 %2091 }
0x155b   : > { %v2099_v45 = vsub.f32 %v2087_v0, %v2092_v44 }
0x155c   : > { %v2095_v48 = vpop.xlane.xlu1 %2094 }
0x155d   : > { %v2102_v52 = vmul.f32 1.442695, %v2099_v45  ;;  %v2100_v19 = vsub.f32 %v2088_v59, %v2095_v48 }
0x155e   : > { %v2098_v49 = vpop.xlane.xlu0 %2097 }
0x155f   : > { %v2101_v51 = vsub.f32 %v2089_v57, %v2098_v49  ;;  %v2104_v21 = vmul.f32 1.442695, %v2100_v19 }
0x1560   : > { %v2263_v12 = vpop.xlane.xlu1 %2262 }
0x1561   : > { %v2106_v15 = vmul.f32 1.442695, %v2101_v51  ;;  %v2266_v53 = vsub.f32 %v2254_v6, %v2263_v12 }
0x1562   : > { %v2257_v54 = vpop.xlane.xlu0 %2256 }
0x1563   : > { %4210 = vpow2.f32 %v2106_v15  ;;  %v2271_v55 = vmul.f32 1.442695, %v2266_v53  ;;  %v2264_v17 = vsub.f32 %v2252_v8, %v2257_v54 }
0x1564   : > { %4212 = vpow2.f32 %v2102_v52 }
0x1565   : > { %4214 = vpow2.f32 %v2271_v55  ;;  %v2267_v13 = vmul.f32 1.442695, %v2264_v17 }
0x1566   : > { %v2260_v3 = vpop.xlane.xlu0 %2259 }
0x1567   : > { %4216 = vpow2.f32 %v2267_v13  ;;  %v2265_v59 = vsub.f32 %v2253_v26, %v2260_v3 }
0x1568   : > { %4218 = vpow2.f32 %v2104_v21 }
0x1569   : > { %v2269_v62 = vmul.f32 1.442695, %v2265_v59 }
0x156b   : > { %4220 = vpow2.f32 %v2269_v62 }
0x156c   : > { %v2427_v4 = vpop.xlane.xlu0 %2426 }
0x156d   : > { %v4947_v56 = vpop.eup %4210  ;;  %v2434_v8 = vsub.f32 %v2422_v35, %v2427_v4 }
0x156e   : > { %v4949_v22 = vpop.eup %4212  ;;  %v2114_v18 = vsel %vm681_vm5, %v4947_v56, 0.0  ;;  %v2430_v57 = vpop.xlane.xlu1 %2429 }
0x156f   : > { %v4953_v32 = vpop.eup %4214  ;;  %2115 = vadd.xlane.f32.xlu1 %v2114_v18  ;;  %v2108_v63 = vsel %vm674_vm4, %v4949_v22, 0.0  ;;  %v2435_v58 = vsub.f32 %v2423_v47, %v2430_v57  ;;  %v2437_v25 = vmul.f32 1.442695, %v2434_v8 }
0x1570   : > { %v2279_v60 = vsel %vm681_vm5, %v4953_v32, 0.0  ;;  %v2433_v5 = vpop.xlane.xlu0 %2432 }
0x1571   : > { %v4957_v61 = vpop.eup %4216  ;;  %2280 = vadd.xlane.f32.xlu0 %v2279_v60  ;;  %v2436_v6 = vsub.f32 %v2424_v37, %v2433_v5  ;;  %v2439_v7 = vmul.f32 1.442695, %v2435_v58 }
0x1572   : > { %v2273_v0 = vsel %vm674_vm4, %v4957_v61, 0.0  ;;  %v4219_v1 = vpop.eup %4218 }
0x1573   : > { %2109 = vadd.xlane.f32.xlu1 %v2108_v63  ;;  %v2111_v2 = vsel %vm674_vm4, %v4219_v1, 0.0  ;;  %v2441_v11 = vmul.f32 1.442695, %v2436_v6  ;;  %4222 = vpow2.f32 %v2439_v7 }
0x1575   : > { %2274 = vadd.xlane.f32.xlu0 %v2273_v0  ;;  %4224 = vpow2.f32 %v2441_v11  ;;  %v4221_v27 = vpop.eup %4220 }
0x1576   : > { %4226 = vpow2.f32 %v2437_v25  ;;  %v2276_v33 = vsel %vm674_vm4, %v4221_v27, 0.0 }
0x1579   : > { %2112 = vadd.xlane.f32.xlu0 %v2111_v2 }
0x157d   : > { %v4970_v24 = vpop.eup %4222 }
0x157e   : > { %v2446_v26 = vsel %vm674_vm4, %v4970_v24, 0.0 }
0x157f   : > { %v4973_v34 = vpop.eup %4224 }
0x1580   : > { %v2449_v35 = vsel %vm681_vm5, %v4973_v34, 0.0  ;;  %v4979_v36 = vpop.eup %4226 }
0x1581   : > { %v2443_v23 = vsel %vm674_vm4, %v4979_v36, 0.0 }
0x1584   : > { %2294 = vrot.lane.b32.xlu1 %v4924_v30, %s5267_s29 }
0x1588   : > { %2460 = vrot.lane.b32.xlu1 %v4884_v39, %s5268_s16 }
0x158f   : > { %2292 = vrot.lane.b32.xlu0 %v4884_v39, %s5267_s29  ;;  %s323_s29 = sand.u32 1, %s4332_s10  }
0x15ac   : > { %2277 = vadd.xlane.f32.xlu1 %v2276_v33 }
0x15ae   : > { %2447 = vadd.xlane.f32.xlu0 %v2446_v26 }
0x15b0   : > { %2450 = vadd.xlane.f32.xlu1 %v2449_v35 }
0x15b4   : > { %2444 = vadd.xlane.f32.xlu1 %v2443_v23 }
0x15c4   : > { %2526 = vrot.lane.b32.xlu0 %v4882_v20, %s5270_s26 }
0x15c5   : > { %2462 = vrot.lane.b32.xlu1 %v4924_v30, %s5268_s16  ;;  %s4284_s16 = scalar_lea.vmem %s4283_s14, 32 }
0x15c8   : > { %2522 = vrot.lane.b32.xlu0 %v4886_v16, %s5271_s21 }
0x15c9   : > { %2528 = vrot.lane.b32.xlu1 %v4894_v43, %s5270_s26 }
0x15cd   : > { %2524 = vrot.lane.b32.xlu1 %v4898_v46, %s5271_s21 }
0x15fc   : > { %v2116_v37 = vpop.xlane.xlu1 %2115 }
0x15fd   : > { %4228 = vrcp.f32 %v2116_v37 }
0x15fe   : > { %v2281_v47 = vpop.xlane.xlu0 %2280 }
0x1600   : > { %v2110_v50 = vpop.xlane.xlu1 %2109 }
0x1601   : > { %4230 = vrcp.f32 %v2110_v50 }
0x1602   : > { %v2275_v40 = vpop.xlane.xlu0 %2274 }
0x1604   : > { %v2295_v51 = vpop.permute.xlu1 %2294 }
0x1605   : > { %v2304_v12 = vand.u32 %v2295_v51, %v4556_v31 }
0x1606   : > { %v2113_v42 = vpop.xlane.xlu0 %2112 }
0x1607   : > { %4232 = vrcp.f32 %v2113_v42  ;;  %v4229_v44 = vpop.eup %4228 }
0x1608   : > { %v2122_v16 = vmul.f32 %v4229_v44, %v4947_v56  ;;  %v2461_v15 = vpop.permute.xlu1 %2460  ;;  %4234 = vrcp.f32 %v2281_v47 }
0x1609   : > { %4236 = vrcp.f32 %v2275_v40 }
0x160a   : > { %v2293_v20 = vpop.permute.xlu0 %2292  ;;  %v2124_v52 = vpack.c.bf16 %v2122_v16, %v2122_v16 }
0x160b   : > { %3876 = vmatprep.subr.bf16.mxu0 %v2293_v20  ;;  %v4231_v45 = vpop.eup %4230 }
0x160c   : > { %v2120_v43 = vmul.f32 %v4231_v45, %v4949_v22 }
0x1611   : > { %v4233_v48 = vpop.eup %4232 }
0x1612   : > { %v2121_v49 = vmul.f32 %v4233_v48, %v4219_v1  ;;  %v4235_v55 = vpop.eup %4234 }
0x1613   : > { %v4237_v13 = vpop.eup %4236  ;;  %v2287_v56 = vmul.f32 %v4235_v55, %v4953_v32 }
0x1614   : > { %v2123_v46 = vpack.c.bf16 %v2121_v49, %v2120_v43  ;;  %v2285_v22 = vmul.f32 %v4237_v13, %v4957_v61 }
0x1615   : > { %v2289_v0 = vpack.c.bf16 %v2287_v56, %v2287_v56 }
0x1616   : > { %3864 = vmatprep.mubr.msk.bf16.mxu0 %vm674_vm4, %v2123_v46 }
0x1617   : > { %3865 = vmatmul.mubr.msk.bf16.vlgmr.msra.gmra.mrb[44].mxu0 %vm674_vm4, %v2124_v52 }
0x1618   : > { %3877 = vmatpush3.bf16.msra.mxu0 %v2293_v20 }
0x1619   : > { %3878 = vmatprep.subr.bf16.mxu0 %v2304_v12 }
0x161c   : > { %3879 = vmatpush3.bf16.msra.mxu0 %v2304_v12 }
0x161d   : > { %3892 = vmatprep.subr.bf16.mxu0 %v2461_v15 }
0x1639   : > { %v2278_v53 = vpop.xlane.xlu1 %2277 }
0x163a   : > { %4238 = vrcp.f32 %v2278_v53 }
0x163b   : > { %v2448_v54 = vpop.xlane.xlu0 %2447 }
0x163d   : > { %v2451_v19 = vpop.xlane.xlu1 %2450 }
0x163e   : > { %4240 = vrcp.f32 %v2451_v19 }
0x163f   : > { %4242 = vrcp.f32 %v2448_v54  ;;  %v2527_v59 = vpop.permute.xlu0 %2526 }
0x1640   : > { %v2537_v6 = vsel %vm610_vm2, %v2527_v59, 0 }
0x1641   : > { %v2445_v17 = vpop.xlane.xlu1 %2444 }
0x1642   : > { %4244 = vrcp.f32 %v2445_v17 }
0x1643   : > { %v2523_v62 = vpop.permute.xlu0 %2522 }
0x1644   : > { %v4239_v21 = vpop.eup %4238 }
0x1645   : > { %v2286_v18 = vmul.f32 %v4239_v21, %v4221_v27  ;;  %v2463_v60 = vpop.permute.xlu1 %2462 }
0x1646   : > { %v2472_v3 = vand.u32 %v2463_v60, %v4556_v31 }
0x1647   : > { %v2288_v63 = vpack.c.bf16 %v2286_v18, %v2285_v22 }
0x1648   : > { %v4241_v1 = vpop.eup %4240 }
0x1649   : > { %3880 = vmatprep.mubr.msk.bf16.mxu0 %vm674_vm4, %v2288_v63  ;;  %v4243_v2 = vpop.eup %4242  ;;  %v2457_v57 = vmul.f32 %v4241_v1, %v4973_v34  ;;  %v2529_v7 = vpop.permute.xlu1 %2528 }
0x164a   : > { %3881 = vmatmul.mubr.msk.bf16.vlgmr.msra.gmra.mrb[48].mxu0 %vm674_vm4, %v2289_v0  ;;  %v2456_v61 = vmul.f32 %v4243_v2, %v4970_v24  ;;  %v2540_v8 = vsel %vm610_vm2, %v2529_v7, 0 }
0x164b   : > { %3893 = vmatpush3.bf16.msra.mxu0 %v2461_v15  ;;  %v2459_v58 = vpack.c.bf16 %v2457_v57, %v2457_v57 }
0x164c   : > { %v4245_v4 = vpop.eup %4244  ;;  %3894 = vmatprep.subr.bf16.mxu0 %v2472_v3 }
0x164d   : > { %v2455_v32 = vmul.f32 %v4245_v4, %v4979_v36  ;;  %v2525_v11 = vpop.permute.xlu1 %2524 }
0x164f   : > { %3895 = vmatpush3.bf16.msra.mxu0 %v2472_v3  ;;  %v2458_v5 = vpack.c.bf16 %v2456_v61, %v2455_v32 }
0x1650   : > { %3954 = vmatprep.subr.msk.bf16.mxu0 %vm610_vm2, %v2527_v59 }
0x1651   : > { %3896 = vmatprep.mubr.msk.bf16.mxu0 %vm674_vm4, %v2458_v5 }
0x1652   : > { %3897 = vmatmul.mubr.msk.bf16.vlgmr.msra.gmra.mrb[52].mxu0 %vm674_vm4, %v2459_v58 }
0x1653   : > { %3904 = vmatprep.mubr.msk.bf16.mxu0 %vm610_vm2, %v2523_v62 }
0x1658   : > { %3901 = vmatpush3.bf16.xpose.msra.mxu0 %v2537_v6 }
0x1659   : > { %3955 = vmatprep.subr.msk.bf16.mxu0 %vm610_vm2, %v2529_v7  ;;  %v4097_v7 = vld [vmem:[%s5249_s4 + $0x28] sm:$0xff]  }
0x1660   : > { %3903 = vmatpush3.bf16.xpose.msra.mxu0 %v2540_v8  ;;  %v4098_v8 = vld [vmem:[%s5249_s4 + $0x30] sm:$0xff]  }
0x1667   : > { %3905 = vmatmul.mubr.msk.bf16.vlgmr.msra.gmra.mrb[56].mxu0 %vm610_vm2, %v2525_v11  ;;  %v4099_v11 = vld [vmem:[%s5249_s4 + $0x38] sm:$0xff]  }
0x1668   : > { %2992 = vmatprep.mubr.bf16.mxu0 %v4342_v41 }
0x16ea   : > { %v5015_v25 = vpop.f32.mrb[44].mxu0 }
0x16eb   : > { %v5017_v27 = vpop.f32.mrb[45].mxu0 }
0x16ec   : > { %v3867_v24 = vpop.f32.mrb[46].mxu0 }
0x16ed   : > { %v5019_v33 = vpop.f32.mrb[47].mxu0 }
0x171d   : > { %v3882_v34 = vpop.f32.mrb[48].mxu0 }
0x171e   : > { %v2340_v26 = vpop.f32.mrb[49].mxu0 }
0x171f   : > { %v3883_v35 = vpop.f32.mrb[50].mxu0 }
0x1720   : > { %v2343_v36 = vpop.f32.mrb[51].mxu0 }
0x1721   : > { %v4021_v23 = vpack.i.bf16 %v2343_v36, %v2340_v26 }
0x1725   : > { %v3898_v37 = vpop.f32.mrb[52].mxu0 }
0x1726   : > { %v2508_v47 = vpop.f32.mrb[53].mxu0 }
0x1727   : > { %v3899_v50 = vpop.f32.mrb[54].mxu0 }
0x1728   : > { %v2511_v40 = vpop.f32.mrb[55].mxu0 }
0x1729   : > { %v4026_v42 = vpack.i.bf16 %v2511_v40, %v2508_v47 }
0x173a   : > { %v3906_v20 = vpop.f32.mrb[56].mxu0 }
0x173b   : > { %v2576_v44 = vpop.f32.mrb[57].mxu0  ;;  %v2592_v43 = vmul.f32 0.25, %v3906_v20 }
0x173c   : > { %v2590_v45 = vmul.f32 0.25, %v2576_v44  ;;  %v3907_v48 = vpop.f32.mrb[58].mxu0 }
0x173d   : > { %v2579_v16 = vpop.f32.mrb[59].mxu0  ;;  %v2599_v52 = vsel %vm681_vm5, %v2592_v43, -inf }
0x173e   : > { %v2591_v49 = vmul.f32 0.25, %v2579_v16  ;;  %v2593_v51 = vsel %vm674_vm4, %v2590_v45, -inf }
0x173f   : > { %2594 = vmax.xlane.f32.xlu0 %v2593_v51 }
0x1740   : > { %v2596_v46 = vsel %vm674_vm4, %v2591_v49, -inf }
0x1741   : > { %2597 = vmax.xlane.f32.xlu1 %v2596_v46 }
0x1743   : > { %2600 = vmax.xlane.f32.xlu0 %v2599_v52 }
0x17cc   : > { %v2595_v12 = vpop.xlane.xlu0 %2594 }
0x17cd   : > { %v2602_v15 = vsub.f32 %v2590_v45, %v2595_v12 }
0x17ce   : > { %v2598_v53 = vpop.xlane.xlu1 %2597 }
0x17cf   : > { %v2605_v54 = vmul.f32 1.442695, %v2602_v15  ;;  %v2603_v19 = vsub.f32 %v2591_v49, %v2598_v53 }
0x17d0   : > { %v2601_v55 = vpop.xlane.xlu0 %2600 }
0x17d1   : > { %4246 = vpow2.f32 %v2605_v54  ;;  %v2607_v17 = vmul.f32 1.442695, %v2603_v19  ;;  %v2604_v13 = vsub.f32 %v2592_v43, %v2601_v55  ;;  %v3542_v55 = vld [vmem:[%s5247_s2 + $0x1b] ss:$0 sm:$0xff] }
0x17d3   : > { %4248 = vpow2.f32 %v2607_v17  ;;  %v2609_v21 = vmul.f32 1.442695, %v2604_v13 }
0x17d5   : > { %4250 = vpow2.f32 %v2609_v21 }
0x17db   : > { %v4247_v56 = vpop.eup %4246 }
0x17dc   : > { %v2611_v22 = vsel %vm674_vm4, %v4247_v56, 0.0 }
0x17dd   : > { %v4249_v18 = vpop.eup %4248  ;;  %2612 = vadd.xlane.f32.xlu0 %v2611_v22 }
0x17de   : > { %v2614_v0 = vsel %vm674_vm4, %v4249_v18, 0.0 }
0x17df   : > { %v4251_v60 = vpop.eup %4250 }
0x17e0   : > { %v2617_v63 = vsel %vm681_vm5, %v4251_v60, 0.0 }
0x17e1   : > { %2618 = vadd.xlane.f32.xlu1 %v2617_v63  ;;  %2615 = vadd.xlane.f32.xlu0 %v2614_v0 }
0x17f2   : > { %2630 = vrot.lane.b32.xlu1 %v4924_v30, %s5271_s21 }
0x17f6   : > { %4022 = vrot.lane.b32.xlu1 %v4021_v23, %s5270_s26 }
0x17f7   : > { %2628 = vrot.lane.b32.xlu0 %v4884_v39, %s5271_s21 }
0x17fa   : > { %2697 = vrot.lane.b32.xlu1 %v3882_v34, %s5270_s26  ;;  %s324_s26 = scalar_lea.vmem [#allocation2], %s323_s29 }
0x17fb   : > { %4027 = vrot.lane.b32.xlu0 %v4026_v42, %s5269_s17  ;;  %s3360_s21 = sshll.u32 %s324_s26, 4  ;;  %s5205_s21 = int_to_ptr.vmem [resolvable:$true] %s3360_s21 }
0x17fc   : > { %s4278_s25 = scalar_lea.vmem %s5205_s21, 16  ;;  %p4285_p0 = scmp.lt.s32.totalorder %s5205_s21, %s4283_s14 }
0x17fd   : > { %p4279_p11 = scmp.ne.s32.totalorder %s5205_s21, %s4278_s25  ;;  %p4286_p1 = scmp.lt.s32.totalorder %s4284_s16, %s4278_s25 }
0x17fe   : > { %2709 = vrot.lane.b32.xlu1 %v3898_v37, %s5269_s17  ;;  %s3618_s17 = sshll.u32 %s4424_s13, 4  ;;  %s3348_s13 = scalar_lea.sflag [#allocation3], %s323_s29 }
0x17ff   : > { %s5203_s24 = scalar_lea.hbm %s5254_s9, %s3618_s17  ;;  %p4280_p12 = pnand %p4279_p11, %p4441_p5 }
0x1800   : > { %p4287_p2 = por %p4286_p1, %p4285_p0 }
0x1801   : > { %p4281_p13 = pneg %p4280_p12 }
0x1803   : > { %p4288_p3 = pnand %p4287_p2, %p4281_p13 }
0x186a   : > { %v2613_v1 = vpop.xlane.xlu0 %2612 }
0x186b   : > { %4252 = vrcp.f32 %v2613_v1 }
0x186e   : > { %v2616_v2 = vpop.xlane.xlu0 %2615  ;;  %v2619_v3 = vpop.xlane.xlu1 %2618 }
0x186f   : > { %4254 = vrcp.f32 %v2616_v2 }
0x1870   : > { %4256 = vrcp.f32 %v2619_v3 }
0x1872   : > { %v2629_v4 = vpop.permute.xlu0 %2628  ;;  %v2631_v57 = vpop.permute.xlu1 %2630 }
0x1873   : > { %v2640_v30 = vand.u32 %v2631_v57, %v4556_v31  ;;  %3908 = vmatprep.subr.bf16.mxu1 %v2629_v4  ;;  %v4096_v31 = vld [vmem:[%s5249_s4 + $0x20] sm:$0xff]  }
0x1874   : > { %3909 = vmatpush3.bf16.msra.mxu1 %v2629_v4 }
0x1875   : > { %3910 = vmatprep.subr.bf16.mxu1 %v2640_v30  ;;  %v4253_v39 = vpop.eup %4252 }
0x1876   : > { %v2623_v61 = vmul.f32 %v4253_v39, %v4247_v56  ;;  %v4023_v23 = vpop.permute.xlu1 %4022  ;;  %v4028_v47 = vpop.permute.xlu0 %4027 }
0x1877   : > { %v4025_v50 = vunpack.i.h.bf16 %v4023_v23  ;;  %v4024_v40 = vunpack.i.l.bf16 %v4023_v23  ;;  %v4030_v20 = vunpack.i.h.bf16 %v4028_v47  ;;  %v4029_v44 = vunpack.i.l.bf16 %v4028_v47 }
0x1878   : > { %3911 = vmatpush3.bf16.msra.mxu1 %v2640_v30 }
0x1879   : > { %v4255_v59 = vpop.eup %4254  ;;  %3916 = vmatprep.subr.bf16.mxu1 %v4096_v31  ;;  %v2727_v45 = vsel %vm610_vm2, %v5019_v33, %v4025_v50  ;;  %v2726_v48 = vsel %vm610_vm2, %v5017_v27, %v4024_v40 }
0x187a   : > { %v4257_v32 = vpop.eup %4256  ;;  %v2624_v5 = vmul.f32 %v4255_v59, %v4249_v18  ;;  %v2698_v37 = vpop.permute.xlu1 %2697  ;;  %v2729_v15 = vsel %vm1318_vm6, %v2726_v48, %v4029_v44  ;;  %v2730_v53 = vsel %vm1318_vm6, %v2727_v45, %v4030_v20  ;;  %v3543_v45 = vld [vmem:[%s5247_s2 + $0x1c] ss:$0 sm:$0xff] }
0x187b   : > { %v2625_v58 = vmul.f32 %v4257_v32, %v4251_v60  ;;  %v2728_v43 = vsel %vm610_vm2, %v5015_v25, %v2698_v37 }
0x187c   : > { %v2626_v62 = vpack.c.bf16 %v2624_v5, %v2623_v61  ;;  %v4102_v5 = vld [vmem:[%s5250_s5 + $0x44] ss:$8 sps:$4 sm:$0xff]  }
0x187d   : > { %v2627_v6 = vpack.c.bf16 %v2625_v58, %v2625_v58  ;;  %v4100_v58 = vld [vmem:[%s5250_s5 + $0x40] ss:$8 sps:$4 sm:$0xff]   ;;  %2960 = vmatprep.subr.bf16.mxu0 %v4102_v5 }
0x187e   : > { %3912 = vmatprep.mubr.msk.bf16.mxu1 %vm674_vm4, %v2626_v62  ;;  %v2710_v42 = vpop.permute.xlu1 %2709  ;;  %2961 = vmatpush1.bf16.msra.mxu0 %v4100_v58  ;;  %v4105_v62 = vld [vmem:[%s5250_s5 + $0x54] ss:$8 sps:$4 sm:$0xff]  }
0x187f   : > { %3913 = vmatmul.mubr.msk.bf16.vlgmr.msra.gmra.mrb[40].mxu1 %vm674_vm4, %v2627_v6  ;;  %v2731_v51 = vsel %vm1318_vm6, %v2728_v43, %v2710_v42  ;;  %v4103_v6 = vld [vmem:[%s5250_s5 + $0x50] ss:$8 sps:$4 sm:$0xff]   ;;  %2962 = vmatprep.subr.bf16.mxu0 %v4105_v62 }
0x1880   : > { %3917 = vmatpush3.bf16.msra.mxu1 %v4096_v31  ;;  %v4108_v31 = vld [vmem:[%s5250_s5 + $0x64] ss:$8 sps:$4 sm:$0xff]  }
0x1881   : > { %3918 = vmatprep.subr.bf16.mxu1 %v4097_v7 }
0x1882   : > { %2963 = vmatpush1.bf16.msra.mxu0 %v4103_v6 }
0x1883   : > { %2964 = vmatprep.subr.bf16.mxu0 %v4108_v31 }
0x1884   : > { %3919 = vmatpush3.bf16.msra.mxu1 %v4097_v7  ;;  %v4106_v7 = vld [vmem:[%s5250_s5 + $0x60] ss:$8 sps:$4 sm:$0xff]  }
0x1885   : > { %3920 = vmatprep.subr.bf16.mxu1 %v4098_v8 }
0x1886   : > { %2965 = vmatpush1.bf16.msra.mxu0 %v4106_v7 }
0x1888   : > { %3921 = vmatpush3.bf16.msra.mxu1 %v4098_v8  ;;  %v4109_v8 = vld [vmem:[%s5250_s5 + $0x70] ss:$8 sps:$4 sm:$0xff]  }
0x1889   : > { %3922 = vmatprep.subr.bf16.mxu1 %v4099_v11 }
0x188c   : > { %3923 = vmatpush3.bf16.msra.mxu1 %v4099_v11  ;;  %v4111_v11 = vld [vmem:[%s5250_s5 + $0x74] ss:$8 sps:$4 sm:$0xff]  }
0x188d   : > { %2966 = vmatprep.subr.bf16.mxu0 %v4111_v11 }
0x188e   : > { %2967 = vmatpush1.bf16.msra.mxu0 %v4109_v8 }
0x1952   : > { %v3914_v24 = vpop.f32.mrb[40].mxu1 }
0x1953   : > { %2721 = vrot.lane.b32.xlu1 %v3914_v24, %s4344_s27  ;;  %v2676_v34 = vpop.f32.mrb[41].mxu1 }
0x1954   : > { %v3915_v26 = vpop.f32.mrb[42].mxu1 }
0x1955   : > { %v2679_v35 = vpop.f32.mrb[43].mxu1 }
0x1956   : > { %v4031_v36 = vpack.i.bf16 %v2679_v35, %v2676_v34 }
0x1958   : > { %4032 = vrot.lane.b32.xlu0 %v4031_v36, %s4344_s27 }
0x19c5   : > { %v2722_v16 = vpop.permute.xlu1 %2721 }
0x19c6   : > { %v2734_v12 = vsel %vm1322_vm7, %v2731_v51, %v2722_v16 }
0x19c7   : > { %v2736_v19 = vpack.c.bf16 %v2734_v12, %v2734_v12 }
0x19ca   : > { %v4033_v49 = vpop.permute.xlu0 %4032 }
0x19cb   : > { %v4035_v46 = vunpack.i.h.bf16 %v4033_v49  ;;  %v4034_v52 = vunpack.i.l.bf16 %v4033_v49  ;;  %v3544_v49 = vld [vmem:[%s5247_s2 + $0x1d] ss:$0 sm:$0xff] }
0x19cd   : > { %v2732_v33 = vsel %vm1322_vm7, %v2729_v15, %v4034_v52  ;;  %v2733_v54 = vsel %vm1322_vm7, %v2730_v53, %v4035_v46  ;;  %v4112_v15 = vld [vmem:[%s5252_s7 + $0xc0] sm:$0xff]  }
0x19ce   : > { %v2735_v27 = vpack.c.bf16 %v2733_v54, %v2732_v33  ;;  %v4113_v53 = vld [vmem:[%s5252_s7 + $0x80] sm:$0xff]   ;;  %3731 = vmatprep.subr.bf16.mxu1 %v4112_v15  ;;  %v4114_v33 = vld [vmem:[%s5252_s7 + $0xc8] sm:$0xff]  }
0x19cf   : > { %v4115_v54 = vld [vmem:[%s5252_s7 + $0x88] sm:$0xff]  }
0x19d0   : > { %3924 = vmatprep.mubr.msk.bf16.mxu1 %vm371_vm0, %v2735_v27  ;;  %v4117_v27 = vld [vmem:[%s5252_s7 + $0x90] sm:$0xff]  }
0x19d1   : > { %3925 = vmatmul.mubr.msk.bf16.vlgmr.msra.gmra.mrb[44].mxu1 %vm371_vm0, %v2736_v19  ;;  %v4118_v19 = vld [vmem:[%s5252_s7 + $0xd8] sm:$0xff]  }
0x19d2   : > { %3732 = vmatpush3.bf16.msra.mxu1 %v4113_v53 }
0x19d3   : > { %3733 = vmatprep.subr.bf16.mxu1 %v4114_v33 }
0x19d6   : > { %3734 = vmatpush3.bf16.msra.mxu1 %v4115_v54 }
0x1aa4   : > { %v3926_v25 = vpop.f32.mrb[44].mxu1 }
0x1aa5   : > { %v2826_v17 = vadd.f32 %v3926_v25, %v4836_v38  ;;  %v2810_v13 = vpop.f32.mrb[45].mxu1  ;;  %v4119_v25 = vld [vmem:[%s5252_s7 + $0x98] sm:$0xff]  }
0x1aa6   : > { %v2824_v21 = vadd.f32 %v2810_v13, %v4826_v28  ;;  %v3927_v56 = vpop.f32.mrb[46].mxu1  ;;  %v4122_v13 = vld [vmem:[%s5252_s7 + $0xe8] sm:$0xff]  }
0x1aa7   : > { %v2834_v22 = vadd.f32 %v3542_v55, %v2826_v17  ;;  %v2813_v18 = vpop.f32.mrb[47].mxu1  ;;  %v4121_v17 = vld [vmem:[%s5252_s7 + $0xa0] sm:$0xff]   ;;  %v4124_v56 = vld [vmem:[%s5252_s7 + $0xf0] sm:$0xff]  }
0x1aa8   : > { %v5071_v60 = vadd.f32 %v3542_v55, %v2824_v21  ;;  %v2825_v63 = vadd.f32 %v2813_v18, %v4829_v29  ;;  %v4123_v21 = vld [vmem:[%s5252_s7 + $0xa8] sm:$0xff]   ;;  %v4126_v18 = vld [vmem:[%s5252_s7 + $0xf8] sm:$0xff]  }
0x1aa9   : > { %v2843_v61 = vsel %vm434_vm1, %v2834_v22, 0.0 }
0x1aaa   : > { %v2833_v0 = vadd.f32 %v3542_v55, %v2825_v63  ;;  %v2837_v1 = vsel %vm371_vm0, %v5071_v60, 0.0  ;;  %v4120_v55 = vld [vmem:[%s5252_s7 + $0xe0] sm:$0xff]   ;;  %v4127_v63 = vld [vmem:[%s5252_s7 + $0xb8] sm:$0xff]  }
0x1aab   : > { %2838 = vadd.xlane.f32.xlu0 %v2837_v1 }
0x1aac   : > { %v2840_v2 = vsel %vm371_vm0, %v2833_v0, 0.0 }
0x1aad   : > { %2841 = vadd.xlane.f32.xlu1 %v2840_v2 }
0x1b38   : > { %v2839_v3 = vpop.xlane.xlu0 %2838 }
0x1b39   : > { %v2846_v38 = vmul.f32 0.015625, %v2839_v3 }
0x1b3a   : > { %v2842_v4 = vpop.xlane.xlu1 %2841 }
0x1b3b   : > { %v2849_v28 = vsub.f32 %v5071_v60, %v2846_v38  ;;  %v2847_v57 = vmul.f32 0.015625, %v2842_v4 }
0x1b3d   : > { %v2850_v30 = vsub.f32 %v2833_v0, %v2847_v57  ;;  %v2852_v39 = vmul.f32 %v2849_v28, %v2849_v28 }
0x1b3f   : > { %v2855_v59 = vsel %vm371_vm0, %v2852_v39, 0.0  ;;  %v2853_v32 = vmul.f32 %v2850_v30, %v2850_v30 }
0x1b40   : > { %2856 = vadd.xlane.f32.xlu0 %v2855_v59 }
0x1b41   : > { %v2858_v29 = vsel %vm371_vm0, %v2853_v32, 0.0 }
0x1b44   : > { %2859 = vadd.xlane.f32.xlu0 %v2858_v29 }
0x1b48   : > { %2844 = vadd.xlane.f32.xlu0 %v2843_v61 }
0x1bcd   : > { %v2857_v24 = vpop.xlane.xlu0 %2856 }
0x1bce   : > { %v2864_v34 = vmul.f32 0.015625, %v2857_v24 }
0x1bd0   : > { %v2867_v26 = vadd.f32 1e-06, %v2864_v34 }
0x1bd1   : > { %v2860_v35 = vpop.xlane.xlu0 %2859 }
0x1bd2   : > { %4258 = vrsqrt.f32 %v2867_v26  ;;  %v2865_v36 = vmul.f32 0.015625, %v2860_v35 }
0x1bd4   : > { %v2868_v23 = vadd.f32 1e-06, %v2865_v36 }
0x1bd5   : > { %v2845_v37 = vpop.xlane.xlu0 %2844 }
0x1bd6   : > { %4260 = vrsqrt.f32 %v2868_v23  ;;  %v2848_v47 = vmul.f32 0.015625, %v2845_v37 }
0x1bd8   : > { %v2851_v50 = vsub.f32 %v2834_v22, %v2848_v47  ;;  %v4125_v22 = vld [vmem:[%s5252_s7 + $0xb0] sm:$0xff]  }
0x1bda   : > { %v2854_v40 = vmul.f32 %v2851_v50, %v2851_v50 }
0x1bdc   : > { %v4259_v42 = vpop.eup %4258  ;;  %v2861_v20 = vsel %vm434_vm1, %v2854_v40, 0.0 }
0x1bdd   : > { %v2873_v44 = vmul.f32 %v4259_v42, %v2849_v28  ;;  %2862 = vadd.xlane.f32.xlu1 %v2861_v20 }
0x1bdf   : > { %v2880_v16 = vmul.f32 %v3543_v45, %v2873_v44 }
0x1be0   : > { %v4261_v48 = vpop.eup %4260 }
0x1be1   : > { %v2874_v43 = vmul.f32 %v4261_v48, %v2850_v30  ;;  %v2887_v46 = vadd.f32 %v3544_v49, %v2880_v16  ;;  %v3553_v30 = vld [vmem:[%s5251_s6 + $0x2] sm:$0x3] }
0x1be2   : > { %v2907_v39 = vrot.slane %v3553_v30, %v1494_v10  ;;  %v2911_v59 = vrot.slane %v3553_v30, %v1498_v9 }
0x1be3   : > { %v2881_v51 = vmul.f32 %v3543_v45, %v2874_v43 }
0x1be5   : > { %v2888_v52 = vadd.f32 %v3544_v49, %v2881_v51 }
0x1be7   : > { %v2890_v12 = vpack.c.bf16 %v2888_v52, %v2887_v46 }
0x1be9   : > { %3562 = vmatmul.mubr.msk.bf16.vlgmr.msra.gmra.mrb[60].mxu0 %vm371_vm0, %v2890_v12 }
0x1bea   : > { %3002 = vmatprep.mubr.bf16.mxu0 %v4342_v41  ;;  %v4116_v41 = vld [vmem:[%s5252_s7 + $0xd0] sm:$0xff]  }
0x1beb   : > { %3735 = vmatprep.subr.bf16.mxu1 %v4116_v41 }
0x1bec   : > { %3736 = vmatpush3.bf16.msra.mxu1 %v4117_v27 }
0x1bed   : > { %3737 = vmatprep.subr.bf16.mxu1 %v4118_v19 }
0x1bf0   : > { %3738 = vmatpush3.bf16.msra.mxu1 %v4119_v25 }
0x1bf1   : > { %3739 = vmatprep.subr.bf16.mxu1 %v4120_v55 }
0x1bf4   : > { %3740 = vmatpush3.bf16.msra.mxu1 %v4121_v17 }
0x1bf5   : > { %3741 = vmatprep.subr.bf16.mxu1 %v4122_v13 }
0x1bf8   : > { %3742 = vmatpush3.bf16.msra.mxu1 %v4123_v21 }
0x1bf9   : > { %3743 = vmatprep.subr.bf16.mxu1 %v4124_v56 }
0x1bfc   : > { %3744 = vmatpush3.bf16.msra.mxu1 %v4125_v22 }
0x1bfd   : > { %3745 = vmatprep.subr.bf16.mxu1 %v4126_v18 }
0x1c00   : > { %3746 = vmatpush3.bf16.msra.mxu1 %v4127_v63 }
0x1c6a   : > { %v2863_v0 = vpop.xlane.xlu1 %2862 }
0x1c6b   : > { %v2866_v1 = vmul.f32 0.015625, %v2863_v0 }
0x1c6d   : > { %v2869_v2 = vadd.f32 1e-06, %v2866_v1 }
0x1c6f   : > { %4262 = vrsqrt.f32 %v2869_v2 }
0x1c79   : > { %v4263_v3 = vpop.eup %4262 }
0x1c7a   : > { %v2875_v38 = vmul.f32 %v4263_v3, %v2851_v50 }
0x1c7c   : > { %v2882_v4 = vmul.f32 %v3543_v45, %v2875_v38 }
0x1c7e   : > { %v2889_v28 = vadd.f32 %v3544_v49, %v2882_v4 }
0x1c80   : > { %v2891_v57 = vpack.c.bf16 %v2889_v28, %v2889_v28 }
0x1c82   : > { %3563 = vmatmul.mubr.msk.bf16.gmra.mrb[64].mxu0 %vm371_vm0, %v2891_v57 }
0x1cbc   : > { %v2994_v32 = vpop.f32.mrb[60].mxu0 }
0x1cbd   : > { %v2995_v29 = vadd.f32 %v2994_v32, %v2907_v39  ;;  %v2996_v61 = vpop.f32.mrb[61].mxu0 }
0x1cbe   : > { %v2997_v5 = vadd.f32 %v2996_v61, %v2911_v59  ;;  %v2998_v58 = vpop.f32.mrb[62].mxu0 }
0x1cbf   : > { %v3017_v62 = vmul.f32 0.044715, %v2995_v29  ;;  %v2999_v6 = vadd.f32 %v2998_v58, %v2907_v39  ;;  %v3000_v31 = vpop.f32.mrb[63].mxu0  ;;  %v3011_v52 = vmul.f32 0.5, %v2995_v29 }
0x1cc0   : > { %v3018_v7 = vmul.f32 0.044715, %v2997_v5  ;;  %v3001_v8 = vadd.f32 %v3000_v31, %v2911_v59  ;;  %v3012_v53 = vmul.f32 0.5, %v2997_v5 }
0x1cc1   : > { %v3023_v11 = vmul.f32 %v3017_v62, %v2995_v29  ;;  %v3019_v24 = vmul.f32 0.044715, %v2999_v6  ;;  %v3013_v12 = vmul.f32 0.5, %v2999_v6 }
0x1cc2   : > { %v3024_v34 = vmul.f32 %v3018_v7, %v2997_v5  ;;  %v3020_v26 = vmul.f32 0.044715, %v3001_v8  ;;  %v3014_v33 = vmul.f32 0.5, %v3001_v8 }
0x1cc3   : > { %v3029_v35 = vmul.f32 %v3023_v11, %v2995_v29  ;;  %v3025_v36 = vmul.f32 %v3019_v24, %v2999_v6 }
0x1cc4   : > { %v3030_v10 = vmul.f32 %v3024_v34, %v2997_v5  ;;  %v3026_v23 = vmul.f32 %v3020_v26, %v3001_v8 }
0x1cc5   : > { %v3035_v14 = vadd.f32 %v3029_v35, %v2995_v29  ;;  %v3031_v9 = vmul.f32 %v3025_v36, %v2999_v6  ;;  %v3612_v35 = vld [vmem:[%s5247_s2 + $0x1e] ss:$0 sm:$0xff] }
0x1cc6   : > { %v3032_v37 = vmul.f32 %v3026_v23, %v3001_v8  ;;  %v3036_v47 = vadd.f32 %v3030_v10, %v2997_v5 }
0x1cc7   : > { %v3041_v50 = vmul.f32 0.7978846, %v3035_v14  ;;  %v3037_v40 = vadd.f32 %v3031_v9, %v2999_v6 }
0x1cc8   : > { %v3038_v42 = vadd.f32 %v3032_v37, %v3001_v8  ;;  %v3042_v20 = vmul.f32 0.7978846, %v3036_v47 }
0x1cc9   : > { %4264 = vtanh.f32 %v3041_v50  ;;  %v3043_v44 = vmul.f32 0.7978846, %v3037_v40 }
0x1cca   : > { %v3044_v45 = vmul.f32 0.7978846, %v3038_v42  ;;  %4266 = vtanh.f32 %v3042_v20 }
0x1ccb   : > { %4268 = vtanh.f32 %v3043_v44 }
0x1ccc   : > { %4270 = vtanh.f32 %v3044_v45  ;;  %v4128_v45 = vld [vmem:[%s5253_s8] sm:$0xff]  }
0x1cd3   : > { %v4265_v48 = vpop.eup %4264 }
0x1cd4   : > { %v4267_v16 = vpop.eup %4266  ;;  %v3053_v43 = vadd.f32 1.0, %v4265_v48  ;;  %v4129_v48 = vld [vmem:[%s5253_s8 + $0x8] sm:$0xff]  }
0x1cd5   : > { %v4269_v49 = vpop.eup %4268  ;;  %v3054_v51 = vadd.f32 1.0, %v4267_v16  ;;  %v4130_v16 = vld [vmem:[%s5253_s8 + $0x10] sm:$0xff]  }
0x1cd6   : > { %v4271_v46 = vpop.eup %4270  ;;  %v3055_v15 = vadd.f32 1.0, %v4269_v49  ;;  %v3059_v41 = vmul.f32 %v3053_v43, %v3011_v52  ;;  %v4131_v43 = vld [vmem:[%s5253_s8 + $0x18] sm:$0xff]  }
0x1cd7   : > { %v3056_v54 = vadd.f32 1.0, %v4271_v46  ;;  %v3060_v19 = vmul.f32 %v3054_v51, %v3012_v53  ;;  %v3252_v53 = vld [vmem:[%s5247_s2 + $0x20] sm:$0x1] }
0x1cd8   : > { %v3061_v27 = vmul.f32 %v3055_v15, %v3013_v12  ;;  %v3251_v12 = vld [vmem:[%s5247_s2 + $0x1f] sm:$0x1] }
0x1cd9   : > { %v3062_v25 = vmul.f32 %v3056_v54, %v3014_v33 }
0x1cda   : > { %v3065_v55 = vpack.c.bf16 %v3061_v27, %v3059_v41  ;;  %v3277_v27 = vld [vmem:[%s5247_s2 + $0x21] sm:$0x1] }
0x1cdb   : > { %v3066_v17 = vpack.c.bf16 %v3062_v25, %v3060_v19 }
0x1cdd   : > { %3230 = vmatprep.mubr.bf16.mxu1 %v3066_v17 }
0x1cde   : > { %3231 = vmatmul.mubr.bf16.vlgmr.msra.gmra.mrb[48].mxu1 %v3065_v55 }
0x1d55   : > { %v3004_v13 = vpop.f32.mrb[64].mxu0 }
0x1d56   : > { %v3005_v21 = vadd.f32 %v3004_v13, %v2907_v39  ;;  %v3006_v56 = vpop.f32.mrb[65].mxu0 }
0x1d57   : > { %v3007_v22 = vadd.f32 %v3006_v56, %v2911_v59  ;;  %v3008_v18 = vpop.f32.mrb[66].mxu0 }
0x1d58   : > { %v3021_v63 = vmul.f32 0.044715, %v3005_v21  ;;  %v3009_v0 = vpop.f32.mrb[67].mxu0  ;;  %v3015_v5 = vmul.f32 0.5, %v3005_v21 }
0x1d59   : > { %v3022_v1 = vmul.f32 0.044715, %v3007_v22  ;;  %v3016_v58 = vmul.f32 0.5, %v3007_v22 }
0x1d5a   : > { %v3027_v2 = vmul.f32 %v3021_v63, %v3005_v21 }
0x1d5b   : > { %v3028_v3 = vmul.f32 %v3022_v1, %v3007_v22 }
0x1d5c   : > { %v3033_v38 = vmul.f32 %v3027_v2, %v3005_v21 }
0x1d5d   : > { %v3034_v4 = vmul.f32 %v3028_v3, %v3007_v22 }
0x1d5e   : > { %v3039_v28 = vadd.f32 %v3033_v38, %v3005_v21 }
0x1d5f   : > { %v3040_v57 = vadd.f32 %v3034_v4, %v3007_v22 }
0x1d60   : > { %v3045_v30 = vmul.f32 0.7978846, %v3039_v28 }
0x1d61   : > { %v3046_v32 = vmul.f32 0.7978846, %v3040_v57 }
0x1d62   : > { %4272 = vtanh.f32 %v3045_v30 }
0x1d63   : > { %4274 = vtanh.f32 %v3046_v32 }
0x1d6c   : > { %v4273_v29 = vpop.eup %4272 }
0x1d6d   : > { %v4275_v61 = vpop.eup %4274  ;;  %v3057_v39 = vadd.f32 1.0, %v4273_v29 }
0x1d6e   : > { %v3058_v59 = vadd.f32 1.0, %v4275_v61 }
0x1d6f   : > { %v3063_v62 = vmul.f32 %v3057_v39, %v3015_v5 }
0x1d70   : > { %v3064_v6 = vmul.f32 %v3058_v59, %v3016_v58 }
0x1d71   : > { %v3067_v7 = vpack.c.bf16 %v3063_v62, %v3063_v62 }
0x1d72   : > { %v3068_v31 = vpack.c.bf16 %v3064_v6, %v3064_v6 }
0x1d74   : > { %3237 = vmatprep.mubr.bf16.mxu1 %v3068_v31 }
0x1d75   : > { %3238 = vmatmul.mubr.bf16.gmra.mrb[52].mxu1 %v3067_v7 }
0x1db1   : > { %v3747_v8 = vpop.f32.mrb[48].mxu1 }
0x1db2   : > { %v3748_v11 = vpop.f32.mrb[49].mxu1 }
0x1db3   : > { %v3749_v24 = vadd.f32 %v3748_v11, %v3747_v8  ;;  %v3750_v34 = vpop.f32.mrb[50].mxu1 }
0x1db4   : > { %v3751_v26 = vpop.f32.mrb[51].mxu1 }
0x1db5   : > { %v3244_v36 = vadd.f32 %v3749_v24, %v5071_v60  ;;  %v4350_v60 = vmov 0.0  }
0x1db6   : > { %3928 = vmatprep.subr.bf16.mxu0 %v4350_v60  ;;  %3936 = vmatprep.mubr.msk.bf16.mxu0 %vm4351_vm8, %v4350_v60 }
0x1db7   : > { %v3250_v10 = vadd.f32 %v3612_v35, %v3244_v36  ;;  %3929 = vmatpush3.bf16.msra.mxu0 %v4128_v45 }
0x1db8   : > { %3930 = vmatprep.subr.bf16.mxu0 %v4350_v60 }
0x1db9   : > { %v3253_v23 = vsel %vm434_vm1, %v3250_v10, 0.0 }
0x1dba   : > { %3254 = vadd.xlane.f32.xlu0 %v3253_v23 }
0x1dbb   : > { %3931 = vmatpush3.bf16.msra.mxu0 %v4129_v48 }
0x1dbc   : > { %3932 = vmatprep.subr.bf16.mxu0 %v4350_v60 }
0x1dbf   : > { %3933 = vmatpush3.bf16.msra.mxu0 %v4130_v16 }
0x1dc0   : > { %3934 = vmatprep.subr.bf16.mxu0 %v4350_v60 }
0x1dc3   : > { %3935 = vmatpush3.bf16.msra.mxu0 %v4131_v43 }
0x1e47   : > { %v3255_v14 = vpop.xlane.xlu0 %3254 }
0x1e48   : > { %v3256_v9 = vmul.f32 0.015625, %v3255_v14  ;;  %v3753_v37 = vpop.f32.mrb[52].mxu1 }
0x1e49   : > { %v3754_v47 = vpop.f32.mrb[53].mxu1 }
0x1e4a   : > { %v3257_v50 = vsub.f32 %v3250_v10, %v3256_v9  ;;  %v3756_v40 = vpop.f32.mrb[54].mxu1 }
0x1e4b   : > { %v3757_v42 = vpop.f32.mrb[55].mxu1 }
0x1e4c   : > { %v3258_v20 = vmul.f32 %v3257_v50, %v3257_v50 }
0x1e4e   : > { %v3259_v44 = vsel %vm434_vm1, %v3258_v20, 0.0 }
0x1e4f   : > { %3260 = vadd.xlane.f32.xlu1 %v3259_v44 }
0x1edc   : > { %v3261_v49 = vpop.xlane.xlu1 %3260 }
0x1edd   : > { %v3262_v51 = vmul.f32 0.015625, %v3261_v49 }
0x1edf   : > { %v3263_v46 = vadd.f32 1e-06, %v3262_v51 }
0x1ee1   : > { %4276 = vrsqrt.f32 %v3263_v46 }
0x1eeb   : > { %v4277_v52 = vpop.eup %4276 }
0x1eec   : > { %v3265_v15 = vmul.f32 %v4277_v52, %v3257_v50 }
0x1eee   : > { %v3266_v33 = vmul.f32 %v3265_v15, %v3251_v12 }
0x1ef0   : > { %v3267_v54 = vadd.f32 %v3266_v33, %v3252_v53 }
0x1ef2   : > { %v3268_v41 = vpack.c.bf16 %v3267_v54, %v3267_v54 }
0x1ef4   : > { %3937 = vmatmul.mubr.msk.bf16.vlgmr.msra.gmra.mrb[68].mxu0 %vm371_vm0, %v3268_v41 }
0x1fc7   : > { %v3339_v19 = vpop.f32.mrb[68].mxu0 }
0x1fc8   : > { %v3340_v25 = vadd.f32 %v3339_v19, %v3277_v27  ;;  %v3938_v55 = vpop.f32.mrb[69].mxu0 }
0x1fc9   : > { %v3342_v17 = vpop.f32.mrb[70].mxu0 }
0x1fca   : > { %v3939_v13 = vpop.f32.mrb[71].mxu0  ;;  %3346 = vst.msk [vmem:[%s324_s26] sm:$0x1] %vm3345_vm9, %v3340_v25 }
0x1fcb   : > { %4291 = shalt.err (!%p4288_p3)
}
0x1fcc   : > { %s4292_s29 = scalar_lea.hbm %s5203_s24, 16  ;;  %s4296_s26 = scalar_lea.hbm %s5254_s9, 32 }
0x1fcd   : > { %p4293_p4 = scmp.ne.s32.totalorder %s5203_s24, %s4292_s29  ;;  %p4297_p9 = scmp.lt.u32.totalorder %s5203_s24, %s5254_s9 }
0x1fce   : > { %p4298_p10 = scmp.lt.u32.totalorder %s4296_s26, %s4292_s29  ;;  %p4300_p12 = scmp.lt.u32.totalorder %s4292_s29, %s5203_s24 }
0x1fcf   : > { %p4294_p7 = pnand %p4293_p4, %p4441_p5 }
0x1fd0   : > { %p4299_p11 = por %p4298_p10, %p4297_p9 }
0x1fd1   : > { %p4295_p8 = pneg %p4294_p7 }
0x1fd2   : > { %p4301_p13 = por %p4300_p12, %p4299_p11 }
0x1fd4   : > { %p4302_p0 = pnand %p4301_p13, %p4295_p8 }
0x1fd6   : > { %4305 = shalt.err (!%p4302_p0)
}
0x1fd7   : > { %3957 = dma.vmem_to_hbm [thread:$0]  (%p4441_p5), %s5205_s21, 16, %s5203_s24, %s3348_s13  }
0x1fd8 PF: > { %p3963_p1 = scmp.ge.s32.totalorder %s4340_s12, 2  ;;  %s3372_s25 = sand.u32 1, %s4328_s30  }
0x1fd9   : > { %s3373_s28 = scalar_lea.sflag [#allocation3], %s3372_s25 }
0x1fda   : > { %p3960_p2 = pnand %p3963_p1, %p4445_p6 }
0x1fdc   : > { %4323 = dma.done.wait (!%p3960_p2), %s3373_s28, 16  }
0x1fdd   : > { %4325 = vsyncadd (!%p3960_p2), %s3373_s28, 4294967280  ;;  %p19_p3 = scmp.ge.s32.totalorder %s4428_s15, 4   ;;  %s5272_s30 = smov %s4332_s10 }
0x1fde   : > { %s5273_s10 = smov %s4336_s11  ;;  %s5274_s11 = smov %s4439_s18 }
0x1fdf   : > { %s5275_s12 = smov %s4428_s15  ;;  %21 = sbr.rel (!%p19_p3) target bundleno = 3 (0x3), region = 96 }
0x1fe6   :  { %3377 = vsyncpa [#allocation3], 1 }
0x1fe7   :  { %3379 = vsyncpa [#allocation3 + $0x1], 1 }

</bundles_post_ra>
